<compile_context>
chip_gen: v7x
topology: tpu7x:2x2x1
jax: 0.10.0
libtpu: 0.0.40
codegen_flags: <defaults>
</compile_context>

<pallas_src>
import numpy as np
import jax
import jax.numpy as jnp
from jax.experimental import pallas as pl
from jax.experimental.pallas import tpu as pltpu

EPS = 1e-12  # torch.nn.functional.normalize default eps

# ---------------- model dimensions (small, synthetic, lane-aligned) ----------
N_IMG = 16          # batch of images (== TILE_N, single image tile)
M_LOC = 256         # batch of GPS locations
C, H, W = 3, 16, 16
D_IN = C * H * W    # 768 flattened image features (multiple of 128)
D_FF = 64           # Fourier feature count  (sin + phase-shifted-sin -> 128)
D_HID = 128         # hidden width of both encoder MLPs
D_EMB = 128         # shared embedding dim (lane-dense)

_TWO_PI = np.float32(2.0 * np.pi)

# Chips with a single TensorCore: collapse to one grid step. Dual-TC (v7x):
# keep two 128-wide location tiles so each core gets one.
_SINGLE_TC_TAGS = ("v5 lite", "v5e", "v6 lite", "v6e")


def _pick_tile_m(m):
    try:
        kind = jax.devices()[0].device_kind.lower()
    except Exception:
        kind = ""
    if any(t in kind for t in _SINGLE_TC_TAGS) or m < 2 * 128 or m % 128 != 0:
        return m            # one grid step
    return 128              # lane-dense tiles, one per TensorCore on v7x


def _geoclip_kernel(scale_ref,                                      # SMEM (1,)
                    ximg_ref, wi1_ref, bi1_ref, wi2_ref, bi2_ref,   # image branch
                    loct_ref, rff_ref, wl1t_ref, bl1_ref,           # location branch
                    wl2t_ref, bl2_ref,
                    logits_ref):
    f32 = jnp.float32
    bf16 = jnp.bfloat16

    # ---- image encoder MLP: (N_IMG, D_IN) -> (N_IMG, D_EMB), bf16 MXU / f32 acc
    h_img = jnp.dot(ximg_ref[...], wi1_ref[...],
                    preferred_element_type=f32) + bi1_ref[...]
    h_img = jnp.maximum(h_img, 0.0)
    f_img = jnp.dot(h_img.astype(bf16), wi2_ref[...],
                    preferred_element_type=f32) + bi2_ref[...]

    # ---- location encoder, built TRANSPOSED: (features, TILE_M) ---------------
    # proj[f, m] = scaled_B0[f]*lat[m] + scaled_B1[f]*lon[m] + phase[f]
    # (2*pi and coordinate normalisation folded into the B columns; phase is
    #  0 for the sin half, pi/2 for the cos half -> single lane-dense sin.)
    lat = loct_ref[0:1, :]                 # (1, TILE_M)
    lon = loct_ref[1:2, :]                 # (1, TILE_M)
    b0 = rff_ref[:, 0:1]                   # (2*D_FF, 1)
    b1 = rff_ref[:, 1:2]
    ph = rff_ref[:, 2:3]
    proj = b0 * lat + b1 * lon + ph        # two VPU broadcast-multiplies + adds
    ff = jnp.sin(proj)                     # (2*D_FF, TILE_M) on the EUP

    h_loc = jnp.dot(wl1t_ref[...], ff.astype(bf16),
                    preferred_element_type=f32) + bl1_ref[...]
    h_loc = jnp.maximum(h_loc, 0.0)
    f_loc = jnp.dot(wl2t_ref[...], h_loc.astype(bf16),
                    preferred_element_type=f32) + bl2_ref[...]
    # f_loc is (D_EMB, TILE_M): already transposed for the final contraction.

    # ---- F.normalize over the embedding dim: x * rsqrt(max(sum(x^2), eps^2))
    img_ss = jnp.sum(f_img * f_img, axis=1, keepdims=True)
    loc_ss = jnp.sum(f_loc * f_loc, axis=0, keepdims=True)
    f_img = f_img * jax.lax.rsqrt(jnp.maximum(img_ss, EPS * EPS))
    f_loc = f_loc * jax.lax.rsqrt(jnp.maximum(loc_ss, EPS * EPS))

    # ---- logits = logit_scale.exp() * f_img @ f_locT   (plain matmul, no
    #      transposed contraction -> no implicit XLU transpose before the store)
    sim = jnp.dot(f_img, f_loc, preferred_element_type=f32)
    logits_ref[...] = scale_ref[0] * sim


def init_params(key):
    ks = jax.random.split(key, 6)
    p = {}
    # logit_scale = log(1/0.07), same as the PyTorch __init__
    p["logit_scale"] = jnp.array(np.log(1.0 / 0.07), dtype=jnp.float32)

    # image encoder MLP (stand-in backbone): bf16 weights / f32 biases
    p["wi1"] = (jax.random.normal(ks[0], (D_IN, D_HID), jnp.float32)
                / np.sqrt(D_IN)).astype(jnp.bfloat16)
    p["bi1"] = jnp.zeros((1, D_HID), jnp.float32)
    p["wi2"] = (jax.random.normal(ks[1], (D_HID, D_EMB), jnp.float32)
                / np.sqrt(D_HID)).astype(jnp.bfloat16)
    p["bi2"] = jnp.zeros((1, D_EMB), jnp.float32)

    # location encoder: random Fourier projection packed as three columns
    # [scaled_B_lat | scaled_B_lon | phase | 0], duplicated across the sin/cos
    # halves.  2*pi and the lat/lon normalisation (stand-in for equal-earth)
    # are folded into the B columns; pi/2 phase implements cos as shifted sin.
    loc_B = jax.random.normal(ks[2], (2, D_FF), jnp.float32)
    b0 = jnp.tile(loc_B[0], 2) * (_TWO_PI / 90.0)    # (2*D_FF,)
    b1 = jnp.tile(loc_B[1], 2) * (_TWO_PI / 180.0)
    phase = jnp.concatenate([jnp.zeros((D_FF,), jnp.float32),
                             jnp.full((D_FF,), np.float32(np.pi / 2.0))])
    p["rff_cols"] = jnp.stack([b0, b1, phase, jnp.zeros_like(b0)],
                              axis=1)                # (2*D_FF, 4) f32

    # first location layer, sin/cos halves merged and pre-transposed (H, 2*D_FF)
    wl1_sin = jax.random.normal(ks[3], (D_FF, D_HID), jnp.float32) / np.sqrt(2 * D_FF)
    wl1_cos = jax.random.normal(ks[4], (D_FF, D_HID), jnp.float32) / np.sqrt(2 * D_FF)
    p["wl1_t"] = jnp.concatenate([wl1_sin, wl1_cos], axis=0).T.astype(jnp.bfloat16)
    p["bl1"] = jnp.zeros((D_HID, 1), jnp.float32)
    wl2 = jax.random.normal(ks[5], (D_HID, D_EMB), jnp.float32) / np.sqrt(D_HID)
    p["wl2_t"] = wl2.T.astype(jnp.bfloat16)          # (D_EMB, D_HID)
    p["bl2"] = jnp.zeros((D_EMB, 1), jnp.float32)
    return p


def geoclip_forward(params, images, locations, *, tile_m=None):
    """images: (n, 3, H, W) float32 NCHW; locations: (m, 2) float32.
    Returns {'logits': (n, m) float32}."""
    n = images.shape[0]
    m = locations.shape[0]
    if tile_m is None:
        tile_m = _pick_tile_m(m)
    assert m % tile_m == 0, "location batch must tile cleanly"

    # glue: flatten NCHW images row-major, cast to bf16 at the boundary
    x_img = images.reshape(n, -1).astype(jnp.bfloat16)
    # glue: locations transposed to (2, m) so each tile is lane-dense
    loc_t = locations.astype(jnp.float32).T

    # glue: logit_scale.exp() — scalar delivered via scalar prefetch (SMEM)
    scale = jnp.exp(params["logit_scale"]).reshape(1).astype(jnp.float32)

    grid = (m // tile_m,)

    grid_spec = pltpu.PrefetchScalarGridSpec(
        num_scalar_prefetch=1,
        grid=grid,
        in_specs=[
            # image branch (all resident via constant index_maps)
            pl.BlockSpec((n, D_IN),          lambda j, s: (0, 0)),
            pl.BlockSpec((D_IN, D_HID),      lambda j, s: (0, 0)),
            pl.BlockSpec((1, D_HID),         lambda j, s: (0, 0)),
            pl.BlockSpec((D_HID, D_EMB),     lambda j, s: (0, 0)),
            pl.BlockSpec((1, D_EMB),         lambda j, s: (0, 0)),
            # location branch
            pl.BlockSpec((2, tile_m),        lambda j, s: (0, j)),
            pl.BlockSpec((2 * D_FF, 4),      lambda j, s: (0, 0)),
            pl.BlockSpec((D_HID, 2 * D_FF),  lambda j, s: (0, 0)),
            pl.BlockSpec((D_HID, 1),         lambda j, s: (0, 0)),
            pl.BlockSpec((D_EMB, D_HID),     lambda j, s: (0, 0)),
            pl.BlockSpec((D_EMB, 1),         lambda j, s: (0, 0)),
        ],
        out_specs=pl.BlockSpec((n, tile_m),  lambda j, s: (0, j)),
    )

    logits = pl.pallas_call(
        _geoclip_kernel,
        out_shape=jax.ShapeDtypeStruct((n, m), jnp.float32),
        grid_spec=grid_spec,
        compiler_params=pltpu.CompilerParams(
            dimension_semantics=("parallel",)),
    )(scale,
      x_img, params["wi1"], params["bi1"], params["wi2"], params["bi2"],
      loc_t, params["rff_cols"], params["wl1_t"], params["bl1"],
      params["wl2_t"], params["bl2"])

    return {"logits": logits}


def geoclip_reference(params, images, locations):
    """Plain-JAX reference of the same forward pass (for correctness check)."""
    f32, bf16 = jnp.float32, jnp.bfloat16
    n = images.shape[0]
    x_img = images.reshape(n, -1).astype(bf16)

    h_img = jnp.maximum(
        jnp.dot(x_img, params["wi1"], preferred_element_type=f32)
        + params["bi1"], 0.0)
    f_img = jnp.dot(h_img.astype(bf16), params["wi2"],
                    preferred_element_type=f32) + params["bi2"]

    loc_t = locations.astype(f32).T                     # (2, m)
    rff = params["rff_cols"]
    proj = (rff[:, 0:1] * loc_t[0:1, :]
            + rff[:, 1:2] * loc_t[1:2, :]
            + rff[:, 2:3])
    ff = jnp.sin(proj)                                  # (2*D_FF, m)
    h_loc = jnp.maximum(
        jnp.dot(params["wl1_t"], ff.astype(bf16), preferred_element_type=f32)
        + params["bl1"], 0.0)
    f_loc = jnp.dot(params["wl2_t"], h_loc.astype(bf16),
                    preferred_element_type=f32) + params["bl2"]

    f_img = f_img * jax.lax.rsqrt(
        jnp.maximum(jnp.sum(f_img ** 2, axis=1, keepdims=True), EPS * EPS))
    f_loc = f_loc * jax.lax.rsqrt(
        jnp.maximum(jnp.sum(f_loc ** 2, axis=0, keepdims=True), EPS * EPS))

    return jnp.exp(params["logit_scale"]) * jnp.dot(f_img, f_loc)


if __name__ == "__main__":
    key = jax.random.PRNGKey(0)
    k_params, k_img, k_loc = jax.random.split(key, 3)

    params = init_params(k_params)
    images = jax.random.normal(k_img, (N_IMG, C, H, W), jnp.float32)
    # GPS-like coordinates: lat in [-90, 90], lon in [-180, 180]
    locations = jax.random.uniform(
        k_loc, (M_LOC, 2), jnp.float32, minval=-1.0, maxval=1.0
    ) * jnp.array([90.0, 180.0], jnp.float32)

    out = geoclip_forward(params, images, locations)
    logits = jax.block_until_ready(out["logits"])

    ref = jax.block_until_ready(geoclip_reference(params, images, locations))
    assert logits.shape == (N_IMG, M_LOC)
    assert np.allclose(np.asarray(logits), np.asarray(ref), rtol=2e-3, atol=2e-3)

    print("KERNEL_OK")
</pallas_src>

<mosaic_0001>
module attributes {stable_mosaic.version = 11 : i64} {
  func.func @_geoclip_kernel(%arg0: i32, %arg1: memref<1xf32, #tpu.memory_space<smem>>, %arg2: memref<16x768xbf16, #tpu.memory_space<vmem>>, %arg3: memref<768x128xbf16, #tpu.memory_space<vmem>>, %arg4: memref<1x128xf32, #tpu.memory_space<vmem>>, %arg5: memref<128x128xbf16, #tpu.memory_space<vmem>>, %arg6: memref<1x128xf32, #tpu.memory_space<vmem>>, %arg7: memref<2x128xf32, #tpu.memory_space<vmem>>, %arg8: memref<128x4xf32, #tpu.memory_space<vmem>>, %arg9: memref<128x128xbf16, #tpu.memory_space<vmem>>, %arg10: memref<128x1xf32, #tpu.memory_space<vmem>>, %arg11: memref<128x128xbf16, #tpu.memory_space<vmem>>, %arg12: memref<128x1xf32, #tpu.memory_space<vmem>>, %arg13: memref<16x128xf32, #tpu.memory_space<vmem>>) attributes {dimension_semantics = [#tpu.dimension_semantics<parallel>], iteration_bounds = array<i64: 2>, scalar_prefetch = 1 : i64, scratch_operands = 0 : i64, tpu.core_type = #tpu.core_type<tc>, window_params = [{pipeline_mode = #tpu.pipeline_mode<synchronous>, transform_indices = @transform_0, window_bounds = array<i64: 16, 768>}, {pipeline_mode = #tpu.pipeline_mode<synchronous>, transform_indices = @transform_1, window_bounds = array<i64: 768, 128>}, {pipeline_mode = #tpu.pipeline_mode<synchronous>, transform_indices = @transform_2, window_bounds = array<i64: 1, 128>}, {pipeline_mode = #tpu.pipeline_mode<synchronous>, transform_indices = @transform_3, window_bounds = array<i64: 128, 128>}, {pipeline_mode = #tpu.pipeline_mode<synchronous>, transform_indices = @transform_4, window_bounds = array<i64: 1, 128>}, {transform_indices = @transform_5, window_bounds = array<i64: 2, 128>}, {pipeline_mode = #tpu.pipeline_mode<synchronous>, transform_indices = @transform_6, window_bounds = array<i64: 128, 4>}, {pipeline_mode = #tpu.pipeline_mode<synchronous>, transform_indices = @transform_7, window_bounds = array<i64: 128, 128>}, {pipeline_mode = #tpu.pipeline_mode<synchronous>, transform_indices = @transform_8, window_bounds = array<i64: 128, 1>}, {pipeline_mode = #tpu.pipeline_mode<synchronous>, transform_indices = @transform_9, window_bounds = array<i64: 128, 128>}, {pipeline_mode = #tpu.pipeline_mode<synchronous>, transform_indices = @transform_10, window_bounds = array<i64: 128, 1>}, {transform_indices = @transform_11, window_bounds = array<i64: 16, 128>}]} {
    %c0 = arith.constant 0 : index
    %c0_0 = arith.constant 0 : index
    %0 = vector.load %arg2[%c0, %c0_0] : memref<16x768xbf16, #tpu.memory_space<vmem>>, vector<16x768xbf16>
    %c0_1 = arith.constant 0 : index
    %c0_2 = arith.constant 0 : index
    %1 = vector.load %arg3[%c0_1, %c0_2] : memref<768x128xbf16, #tpu.memory_space<vmem>>, vector<768x128xbf16>
    %cst = arith.constant dense<0.000000e+00> : vector<16x128xf32>
    %2 = tpu.matmul %0, %1, %cst {dimension_numbers = #tpu.dot_dimension_numbers<[1], [0], [0], [1], [0, 0, 1, 1], [], []>} : vector<16x768xbf16>, vector<768x128xbf16>, vector<16x128xf32> -> vector<16x128xf32>
    %c0_3 = arith.constant 0 : index
    %c0_4 = arith.constant 0 : index
    %3 = vector.load %arg4[%c0_3, %c0_4] : memref<1x128xf32, #tpu.memory_space<vmem>>, vector<1x128xf32>
    %4 = vector.broadcast %3 : vector<1x128xf32> to vector<16x128xf32>
    %5 = arith.addf %2, %4 : vector<16x128xf32>
    %cst_5 = arith.constant 0.000000e+00 : f32
    %6 = vector.broadcast %cst_5 : f32 to vector<16x128xf32>
    %7 = arith.maximumf %5, %6 : vector<16x128xf32>
    %8 = arith.truncf %7 : vector<16x128xf32> to vector<16x128xbf16>
    %c0_6 = arith.constant 0 : index
    %c0_7 = arith.constant 0 : index
    %9 = vector.load %arg5[%c0_6, %c0_7] : memref<128x128xbf16, #tpu.memory_space<vmem>>, vector<128x128xbf16>
    %cst_8 = arith.constant dense<0.000000e+00> : vector<16x128xf32>
    %10 = tpu.matmul %8, %9, %cst_8 {dimension_numbers = #tpu.dot_dimension_numbers<[1], [0], [0], [1], [0, 0, 1, 1], [], []>} : vector<16x128xbf16>, vector<128x128xbf16>, vector<16x128xf32> -> vector<16x128xf32>
    %c0_9 = arith.constant 0 : index
    %c0_10 = arith.constant 0 : index
    %11 = vector.load %arg6[%c0_9, %c0_10] : memref<1x128xf32, #tpu.memory_space<vmem>>, vector<1x128xf32>
    %12 = vector.broadcast %11 : vector<1x128xf32> to vector<16x128xf32>
    %13 = arith.addf %10, %12 : vector<16x128xf32>
    %c0_11 = arith.constant 0 : index
    %c0_12 = arith.constant 0 : index
    %14 = vector.load %arg7[%c0_11, %c0_12] : memref<2x128xf32, #tpu.memory_space<vmem>>, vector<1x128xf32>
    %c1 = arith.constant 1 : index
    %c0_13 = arith.constant 0 : index
    %15 = vector.load %arg7[%c1, %c0_13] : memref<2x128xf32, #tpu.memory_space<vmem>>, vector<1x128xf32>
    %c0_14 = arith.constant 0 : index
    %c0_15 = arith.constant 0 : index
    %16 = vector.load %arg8[%c0_14, %c0_15] : memref<128x4xf32, #tpu.memory_space<vmem>>, vector<128x1xf32>
    %c0_16 = arith.constant 0 : index
    %c1_17 = arith.constant 1 : index
    %17 = vector.load %arg8[%c0_16, %c1_17] : memref<128x4xf32, #tpu.memory_space<vmem>>, vector<128x1xf32>
    %c0_18 = arith.constant 0 : index
    %c2 = arith.constant 2 : index
    %18 = vector.load %arg8[%c0_18, %c2] : memref<128x4xf32, #tpu.memory_space<vmem>>, vector<128x1xf32>
    %19 = vector.broadcast %16 : vector<128x1xf32> to vector<128x128xf32>
    %20 = vector.broadcast %14 : vector<1x128xf32> to vector<128x128xf32>
    %21 = arith.mulf %19, %20 : vector<128x128xf32>
    %22 = vector.broadcast %17 : vector<128x1xf32> to vector<128x128xf32>
    %23 = vector.broadcast %15 : vector<1x128xf32> to vector<128x128xf32>
    %24 = arith.mulf %22, %23 : vector<128x128xf32>
    %25 = arith.addf %21, %24 : vector<128x128xf32>
    %26 = vector.broadcast %18 : vector<128x1xf32> to vector<128x128xf32>
    %27 = arith.addf %25, %26 : vector<128x128xf32>
    %28 = math.sin %27 : vector<128x128xf32>
    %c0_19 = arith.constant 0 : index
    %c0_20 = arith.constant 0 : index
    %29 = vector.load %arg9[%c0_19, %c0_20] : memref<128x128xbf16, #tpu.memory_space<vmem>>, vector<128x128xbf16>
    %30 = arith.truncf %28 : vector<128x128xf32> to vector<128x128xbf16>
    %cst_21 = arith.constant dense<0.000000e+00> : vector<128x128xf32>
    %31 = tpu.matmul %29, %30, %cst_21 {dimension_numbers = #tpu.dot_dimension_numbers<[1], [0], [0], [1], [0, 0, 1, 1], [], []>} : vector<128x128xbf16>, vector<128x128xbf16>, vector<128x128xf32> -> vector<128x128xf32>
    %c0_22 = arith.constant 0 : index
    %c0_23 = arith.constant 0 : index
    %32 = vector.load %arg10[%c0_22, %c0_23] : memref<128x1xf32, #tpu.memory_space<vmem>>, vector<128x1xf32>
    %33 = vector.broadcast %32 : vector<128x1xf32> to vector<128x128xf32>
    %34 = arith.addf %31, %33 : vector<128x128xf32>
    %cst_24 = arith.constant 0.000000e+00 : f32
    %35 = vector.broadcast %cst_24 : f32 to vector<128x128xf32>
    %36 = arith.maximumf %34, %35 : vector<128x128xf32>
    %c0_25 = arith.constant 0 : index
    %c0_26 = arith.constant 0 : index
    %37 = vector.load %arg11[%c0_25, %c0_26] : memref<128x128xbf16, #tpu.memory_space<vmem>>, vector<128x128xbf16>
    %38 = arith.truncf %36 : vector<128x128xf32> to vector<128x128xbf16>
    %cst_27 = arith.constant dense<0.000000e+00> : vector<128x128xf32>
    %39 = tpu.matmul %37, %38, %cst_27 {dimension_numbers = #tpu.dot_dimension_numbers<[1], [0], [0], [1], [0, 0, 1, 1], [], []>} : vector<128x128xbf16>, vector<128x128xbf16>, vector<128x128xf32> -> vector<128x128xf32>
    %c0_28 = arith.constant 0 : index
    %c0_29 = arith.constant 0 : index
    %40 = vector.load %arg12[%c0_28, %c0_29] : memref<128x1xf32, #tpu.memory_space<vmem>>, vector<128x1xf32>
    %41 = vector.broadcast %40 : vector<128x1xf32> to vector<128x128xf32>
    %42 = arith.addf %39, %41 : vector<128x128xf32>
    %43 = arith.mulf %13, %13 : vector<16x128xf32>
    %cst_30 = arith.constant dense<0.000000e+00> : vector<16xf32>
    %44 = vector.multi_reduction <add>, %43, %cst_30 [1] : vector<16x128xf32> to vector<16xf32>
    %45 = vector.shape_cast %44 : vector<16xf32> to vector<16x1xf32>
    %46 = arith.mulf %42, %42 : vector<128x128xf32>
    %cst_31 = arith.constant dense<0.000000e+00> : vector<128xf32>
    %47 = vector.multi_reduction <add>, %46, %cst_31 [0] : vector<128x128xf32> to vector<128xf32>
    %48 = vector.shape_cast %47 : vector<128xf32> to vector<1x128xf32>
    %cst_32 = arith.constant 1.000000e-24 : f32
    %49 = vector.broadcast %cst_32 : f32 to vector<16x1xf32>
    %50 = arith.maximumf %45, %49 : vector<16x1xf32>
    %51 = math.rsqrt %50 : vector<16x1xf32>
    %52 = vector.broadcast %51 : vector<16x1xf32> to vector<16x128xf32>
    %53 = arith.mulf %13, %52 : vector<16x128xf32>
    %cst_33 = arith.constant 1.000000e-24 : f32
    %54 = vector.broadcast %cst_33 : f32 to vector<1x128xf32>
    %55 = arith.maximumf %48, %54 : vector<1x128xf32>
    %56 = math.rsqrt %55 : vector<1x128xf32>
    %57 = vector.broadcast %56 : vector<1x128xf32> to vector<128x128xf32>
    %58 = arith.mulf %42, %57 : vector<128x128xf32>
    %cst_34 = arith.constant dense<0.000000e+00> : vector<16x128xf32>
    %59 = tpu.matmul %53, %58, %cst_34 {dimension_numbers = #tpu.dot_dimension_numbers<[1], [0], [0], [1], [0, 0, 1, 1], [], []>} : vector<16x128xf32>, vector<128x128xf32>, vector<16x128xf32> -> vector<16x128xf32>
    %c0_35 = arith.constant 0 : index
    %60 = memref.load %arg1[%c0_35] : memref<1xf32, #tpu.memory_space<smem>>
    %61 = vector.broadcast %60 : f32 to vector<16x128xf32>
    %62 = arith.mulf %61, %59 : vector<16x128xf32>
    %c0_36 = arith.constant 0 : index
    %c0_37 = arith.constant 0 : index
    %63 = vector.load %arg13[%c0_36, %c0_37] : memref<16x128xf32, #tpu.memory_space<vmem>>, vector<16x128xf32>
    tpu.vector_store %arg13[%c0_36, %c0_37], %62 {strides = array<i32>} : memref<16x128xf32, #tpu.memory_space<vmem>>, vector<16x128xf32>,
    return
  }
  func.func @transform_0(%arg0: i32, %arg1: memref<1xf32, #tpu.memory_space<smem>>) -> (i32, i32) {
    %c0_i32 = arith.constant 0 : i32
    %c0_i32_0 = arith.constant 0 : i32
    %c0_i32_1 = arith.constant 0 : i32
    return %c0_i32, %c0_i32_0 : i32, i32
  }
  func.func @transform_1(%arg0: i32, %arg1: memref<1xf32, #tpu.memory_space<smem>>) -> (i32, i32) {
    %c0_i32 = arith.constant 0 : i32
    %c0_i32_0 = arith.constant 0 : i32
    %c0_i32_1 = arith.constant 0 : i32
    return %c0_i32, %c0_i32_0 : i32, i32
  }
  func.func @transform_2(%arg0: i32, %arg1: memref<1xf32, #tpu.memory_space<smem>>) -> (i32, i32) {
    %c0_i32 = arith.constant 0 : i32
    %c0_i32_0 = arith.constant 0 : i32
    %c0_i32_1 = arith.constant 0 : i32
    return %c0_i32, %c0_i32_0 : i32, i32
  }
  func.func @transform_3(%arg0: i32, %arg1: memref<1xf32, #tpu.memory_space<smem>>) -> (i32, i32) {
    %c0_i32 = arith.constant 0 : i32
    %c0_i32_0 = arith.constant 0 : i32
    %c0_i32_1 = arith.constant 0 : i32
    return %c0_i32, %c0_i32_0 : i32, i32
  }
  func.func @transform_4(%arg0: i32, %arg1: memref<1xf32, #tpu.memory_space<smem>>) -> (i32, i32) {
    %c0_i32 = arith.constant 0 : i32
    %c0_i32_0 = arith.constant 0 : i32
    %c0_i32_1 = arith.constant 0 : i32
    return %c0_i32, %c0_i32_0 : i32, i32
  }
  func.func @transform_5(%arg0: i32, %arg1: memref<1xf32, #tpu.memory_space<smem>>) -> (i32, i32) {
    %c0_i32 = arith.constant 0 : i32
    %c0_i32_0 = arith.constant 0 : i32
    return %c0_i32, %arg0 : i32, i32
  }
  func.func @transform_6(%arg0: i32, %arg1: memref<1xf32, #tpu.memory_space<smem>>) -> (i32, i32) {
    %c0_i32 = arith.constant 0 : i32
    %c0_i32_0 = arith.constant 0 : i32
    %c0_i32_1 = arith.constant 0 : i32
    return %c0_i32, %c0_i32_0 : i32, i32
  }
  func.func @transform_7(%arg0: i32, %arg1: memref<1xf32, #tpu.memory_space<smem>>) -> (i32, i32) {
    %c0_i32 = arith.constant 0 : i32
    %c0_i32_0 = arith.constant 0 : i32
    %c0_i32_1 = arith.constant 0 : i32
    return %c0_i32, %c0_i32_0 : i32, i32
  }
  func.func @transform_8(%arg0: i32, %arg1: memref<1xf32, #tpu.memory_space<smem>>) -> (i32, i32) {
    %c0_i32 = arith.constant 0 : i32
    %c0_i32_0 = arith.constant 0 : i32
    %c0_i32_1 = arith.constant 0 : i32
    return %c0_i32, %c0_i32_0 : i32, i32
  }
  func.func @transform_9(%arg0: i32, %arg1: memref<1xf32, #tpu.memory_space<smem>>) -> (i32, i32) {
    %c0_i32 = arith.constant 0 : i32
    %c0_i32_0 = arith.constant 0 : i32
    %c0_i32_1 = arith.constant 0 : i32
    return %c0_i32, %c0_i32_0 : i32, i32
  }
  func.func @transform_10(%arg0: i32, %arg1: memref<1xf32, #tpu.memory_space<smem>>) -> (i32, i32) {
    %c0_i32 = arith.constant 0 : i32
    %c0_i32_0 = arith.constant 0 : i32
    %c0_i32_1 = arith.constant 0 : i32
    return %c0_i32, %c0_i32_0 : i32, i32
  }
  func.func @transform_11(%arg0: i32, %arg1: memref<1xf32, #tpu.memory_space<smem>>) -> (i32, i32) {
    %c0_i32 = arith.constant 0 : i32
    %c0_i32_0 = arith.constant 0 : i32
    return %c0_i32, %arg0 : i32, i32
  }
}

</mosaic_0001>

<bundles_post_ra>
// kernel: tpu_custom_call.1
= control target key start
LH: loop header
LB: loop body
LE: loop exit
PB: predicated region body
PF: predicated region fallthrough
CT: control target
= control target key end

     0   :  { %s7180_s0 = inlined_call_operand.<no memory space> [shape: f32[1], index: 0, kind: input, shape index: {}]   ;;  %s7181_s1 = inlined_call_operand.hbm [shape: bf16[16,768], index: 1, kind: input, shape index: {}]   ;;  %s7182_s2 = inlined_call_operand.vmem [shape: bf16[768,128], index: 2, kind: input, shape index: {}]   ;;  %s7183_s3 = inlined_call_operand.vmem [shape: f32[1,128], index: 3, kind: input, shape index: {}]   ;;  %s7184_s4 = inlined_call_operand.hbm [shape: bf16[128,128], index: 4, kind: input, shape index: {}]   ;;  %s7185_s5 = inlined_call_operand.vmem [shape: f32[1,128], index: 5, kind: input, shape index: {}]   ;;  %s7186_s6 = inlined_call_operand.vmem [shape: f32[2,256], index: 6, kind: input, shape index: {}]   ;;  %s7187_s7 = inlined_call_operand.vmem [shape: f32[128,4], index: 7, kind: input, shape index: {}]   ;;  %s7188_s8 = inlined_call_operand.hbm [shape: bf16[128,128], index: 8, kind: input, shape index: {}]   ;;  %s7189_s9 = inlined_call_operand.vmem [shape: f32[128,1], index: 9, kind: input, shape index: {}]   ;;  %s7190_s10 = inlined_call_operand.hbm [shape: bf16[128,128], index: 10, kind: input, shape index: {}]   ;;  %s7191_s11 = inlined_call_operand.vmem [shape: f32[128,1], index: 11, kind: input, shape index: {}]   ;;  %s7192_s12 = inlined_call_operand.hbm [shape: f32[16,256], index: 12, kind: output, shape index: {}]  }
   0x1   :  { %7292 = sst [smem:[#allocation58_spill]] %s7184_s4 }
   0x2   :  { %17 = sst [smem:[#allocation3]] %s7180_s0 }
   0x3   :  { %18 = vsyncpa [#allocation5], 0 }
   0x4   :  { %19 = vsyncpa [#allocation8], 0 }
   0x5   :  { %20 = vsyncpa [#allocation11], 0 }
   0x6   :  { %21 = vsyncpa [#allocation6], 0 }
   0x7   :  { %23 = vsyncpa [#allocation6 + $0x1], 0  ;;  %s4944_s23 = smov 0   ;;  %s4946_s24 = smov 0  }
   0x8   :  { %s4948_s25 = smov 0   ;;  %s4950_s26 = smov 0  }
   0x9 LB: > { %7293 = sst [smem:[#allocation17_spill]] %s4839_s23  ;;  %s4965_s0 = sadd.s32 4294967295, %s4851_s26   ;;  %s4851_s26 = sphi %s4950_s26, %s7477_s26   ;;  %s4847_s25 = sphi %s4948_s25, %s7479_s25   ;;  %s4843_s24 = sphi %s4946_s24, %s7481_s24   ;;  %s4839_s23 = sphi %s4944_s23, %s7480_s23  }
   0xa   : > { %7294 = sst [smem:[#allocation18_spill]] %s4847_s25  ;;  %s3881_s27 = sadd.s32 4294967294, %s4851_s26  }
   0xb   : > { %7295 = sst [smem:[#allocation19_spill]] %s4851_s26  ;;  %s4969_s28 = sadd.s32 1, %s4851_s26  }
   0xc   : > { %7296 = sst [smem:[#allocation20_spill]] %s4969_s28  ;;  %s272_s29 = sadd.s32 1, %s4847_s25 }
   0xd   : > { %s269_s30 = ssub.s32 %s4851_s26, %s4969_s28  ;;  %p282_p0 = scmp.ne.s32.totalorder %s4847_s25, %s4843_s24 }
   0xe   : > { %p270_p1 = scmp.eq.s32.totalorder %s269_s30, 0  ;;  %p283_p2 = scmp.eq.s32.totalorder %s4965_s0, 1 }
   0xf   : > { %p288_p3 = scmp.ne.s32.totalorder %s4843_s24, %s4839_s23  ;;  %p289_p4 = scmp.eq.s32.totalorder %s3881_s27, 1 }
  0x10   : > { %s4980_s13 = scalar_select %p270_p1, %s4847_s25, %s272_s29  }
  0x11   : > { %p4982_p5 = por %p283_p2, %p282_p0  ;;  %p4986_p6 = por %p289_p4, %p288_p3 }
  0x12   : > { %7297 = sst [smem:[#allocation21_spill]] %s4980_s13  ;;  %p3882_p7 = scmp.ge.s32.totalorder %s4851_s26, 1 }
  0x13   : > { %s7298_s14 = scalar_select %p4982_p5, 1, 0 }
  0x14   : > { %s7299_s15 = scalar_select %p4986_p6, 1, 0 }
  0x15   : > { %p296_p8 = scmp.lt.s32.totalorder %s4851_s26, 3  ;;  %p7194_p9 = scmp.eq.s32.totalorder %s4965_s0, 0 }
  0x16   : > { %7300 = sst [smem:[#allocation22_spill]] %s7299_s15  ;;  %s4853_s17 = smov [#allocation7]  }
  0x17   : > { %p4993_p10 = pnand %p3882_p7, %p296_p8  ;;  %s327_s18 = sshll.u32 %s4853_s17, 4  ;;  %s328_s18 = int_to_ptr.vmem [resolvable:$true] %s327_s18 }
  0x18   : > { %s4854_s20 = smov [#allocation4]   ;;  %s7303_s4 = sld [smem:[#allocation58_spill]] }
  0x19   : > { %s7301_s16 = scalar_select %p4993_p10, 1, 0 }
  0x1a   : > { %p4403_p11 = pneg %p4993_p10  ;;  %s308_s21 = sshll.u32 %s4854_s20, 4  ;;  %s5005_s21 = int_to_ptr.vmem [resolvable:$true] %s308_s21 }
  0x1c   : > { %p5001_p12 = pnand %p7194_p9, %p4403_p11 }
  0x1e   : > { %s4665_s29 = scalar_lea.hbm %s7303_s4, 1024  ;;  %p5015_p0 = pneg %p5001_p12 }
  0x1f   : > { %p4666_p13 = scmp.ne.s32.totalorder %s7303_s4, %s4665_s29  ;;  %p4672_p3 = scmp.lt.u32.totalorder %s4665_s29, %s7303_s4 }
  0x21   : > { %p4668_p1 = pnand %p5015_p0, %p4666_p13 }
  0x23   : > { %p4669_p2 = pneg %p4668_p1 }
  0x25   : > { %p4674_p4 = pnand %p4672_p3, %p4669_p2 }
  0x27   : > { %4677 = shalt.err (!%p4674_p4)
}
  0x28   : > { %s4678_s22 = scalar_lea.vmem %s328_s18, 1024  ;;  %p4686_p9 = scmp.lt.s32.totalorder %s328_s18, %s328_s18 }
  0x29   : > { %p4679_p7 = scmp.ne.s32.totalorder %s328_s18, %s4678_s22  ;;  %p4687_p6 = scmp.lt.s32.totalorder %s4678_s22, %s4678_s22 }
  0x2b   : > { %p4681_p8 = pnand %p4679_p7, %p5015_p0  ;;  %p4688_p5 = por %p4687_p6, %p4686_p9 }
  0x2d   : > { %p4682_p11 = pneg %p4681_p8 }
  0x2f   : > { %p4689_p10 = pnand %p4688_p5, %p4682_p11 }
  0x31   : > { %4692 = shalt.err (!%p4689_p10)
}
  0x32   : > { %s7202_s13 = smov 64   ;;  %s7204_s27 = smov 4  }
  0x33   : > { %4409 = dma.hbm_to_vmem [thread:$0]  (!%p5001_p12), %s7303_s4, 1024, %s328_s18, [#allocation8], %s7202_s13, %s7202_s13, %s7204_s27  }
  0x34   : > { %s4693_s28 = scalar_lea.hbm %s7181_s1, 768 }
  0x35   : > { %p4694_p5 = scmp.ne.s32.totalorder %s7181_s1, %s4693_s28  ;;  %p4700_p10 = scmp.lt.u32.totalorder %s4693_s28, %s7181_s1 }
  0x37   : > { %p4696_p6 = pnand %p4694_p5, %p5015_p0 }
  0x39   : > { %p4697_p9 = pneg %p4696_p6 }
  0x3b   : > { %p4702_p13 = pnand %p4700_p10, %p4697_p9 }
  0x3d   : > { %4705 = shalt.err (!%p4702_p13)
}
  0x3e   : > { %s4706_s18 = scalar_lea.vmem %s5005_s21, 768  ;;  %p4714_p4 = scmp.lt.s32.totalorder %s5005_s21, %s5005_s21 }
  0x3f   : > { %p4707_p1 = scmp.ne.s32.totalorder %s5005_s21, %s4706_s18  ;;  %p4715_p7 = scmp.lt.s32.totalorder %s4706_s18, %s4706_s18 }
  0x41   : > { %p4709_p2 = pnand %p4707_p1, %p5015_p0  ;;  %p4716_p8 = por %p4715_p7, %p4714_p4 }
  0x43   : > { %p4710_p3 = pneg %p4709_p2 }
  0x45   : > { %p4717_p11 = pnand %p4716_p8, %p4710_p3 }
  0x47   : > { %4720 = shalt.err (!%p4717_p11)
}
  0x48   : > { %s4857_s15 = smov 384   ;;  %s4858_s23 = smov 24  }
  0x49   : > { %4406 = dma.hbm_to_vmem [thread:$0]  (!%p5001_p12), %s7181_s1, 768, %s5005_s21, [#allocation5], %s4857_s15, %s4857_s15, %s4858_s23  }
  0x4a   : > { %s4859_s25 = smov [#allocation9]   ;;  %s4860_s30 = smov [#allocation10]  }
  0x4b   : > { %s346_s29 = sshll.u32 %s4859_s25, 4  ;;  %s362_s20 = sshll.u32 %s4860_s30, 4  ;;  %s347_s29 = int_to_ptr.vmem [resolvable:$true] %s346_s29  ;;  %s5057_s20 = int_to_ptr.vmem [resolvable:$true] %s362_s20 }
  0x4c   : > { %s4721_s13 = scalar_lea.hbm %s7188_s8, 1024 }
  0x4d   : > { %p4722_p5 = scmp.ne.s32.totalorder %s7188_s8, %s4721_s13  ;;  %p4728_p10 = scmp.lt.u32.totalorder %s4721_s13, %s7188_s8 }
  0x4f   : > { %p4724_p6 = pnand %p4722_p5, %p5015_p0 }
  0x51   : > { %p4725_p9 = pneg %p4724_p6 }
  0x53   : > { %p4730_p13 = pnand %p4728_p10, %p4725_p9 }
  0x55   : > { %4733 = shalt.err (!%p4730_p13)
}
  0x56   : > { %s4734_s15 = scalar_lea.vmem %s347_s29, 1024  ;;  %p4742_p4 = scmp.lt.s32.totalorder %s347_s29, %s347_s29 }
  0x57   : > { %p4735_p1 = scmp.ne.s32.totalorder %s347_s29, %s4734_s15  ;;  %p4743_p7 = scmp.lt.s32.totalorder %s4734_s15, %s4734_s15 }
  0x59   : > { %p4737_p2 = pnand %p4735_p1, %p5015_p0  ;;  %p4744_p8 = por %p4743_p7, %p4742_p4 }
  0x5b   : > { %p4738_p3 = pneg %p4737_p2 }
  0x5d   : > { %p4745_p11 = pnand %p4744_p8, %p4738_p3 }
  0x5f   : > { %4748 = shalt.err (!%p4745_p11)
}
  0x60   : > { %s7305_s4 = smov 4   ;;  %s7306_s27 = smov 64  }
  0x61   : > { %4412 = dma.hbm_to_vmem [thread:$0]  (!%p5001_p12), %s7188_s8, 1024, %s347_s29, [#allocation8], %s7306_s27, %s7306_s27, %s7305_s4  }
  0x62   : > { %s4749_s30 = scalar_lea.hbm %s7190_s10, 1024 }
  0x63   : > { %p4750_p5 = scmp.ne.s32.totalorder %s7190_s10, %s4749_s30  ;;  %p4756_p10 = scmp.lt.u32.totalorder %s4749_s30, %s7190_s10 }
  0x65   : > { %p4752_p6 = pnand %p4750_p5, %p5015_p0 }
  0x67   : > { %p4753_p9 = pneg %p4752_p6 }
  0x69   : > { %p4758_p13 = pnand %p4756_p10, %p4753_p9 }
  0x6b   : > { %4761 = shalt.err (!%p4758_p13)
}
  0x6c   : > { %s4762_s29 = scalar_lea.vmem %s5057_s20, 1024  ;;  %p4770_p4 = scmp.lt.s32.totalorder %s5057_s20, %s5057_s20 }
  0x6d   : > { %p4763_p1 = scmp.ne.s32.totalorder %s5057_s20, %s4762_s29  ;;  %p4771_p7 = scmp.lt.s32.totalorder %s4762_s29, %s4762_s29 }
  0x6f   : > { %p4765_p2 = pnand %p4763_p1, %p5015_p0  ;;  %p4772_p8 = por %p4771_p7, %p4770_p4 }
  0x71   : > { %p4766_p3 = pneg %p4765_p2 }
  0x73   : > { %p4773_p11 = pnand %p4772_p8, %p4766_p3 }
  0x75   : > { %4776 = shalt.err (!%p4773_p11)
}
  0x76   : > { %4415 = dma.hbm_to_vmem [thread:$0]  (!%p5001_p12), %s7190_s10, 1024, %s5057_s20, [#allocation11], %s7306_s27, %s7306_s27, %s7305_s4  }
  0x77   : > { %p7307_p5 = scmp.ne.s32.totalorder %s7301_s16, 0 }
  0x79   : > { %388 = sbr.rel (%p7307_p5) target bundleno = 1524 (0x5f4), region = 64 }
  0x80   : > { %p7308_p0 = scmp.eq.s32.totalorder %s4965_s0, 0 }
  0x82   : > { %4822 = dma.done.wait (%p7308_p0), [#allocation5], 768   ;;  %p7309_p6 = pmov %p7308_p0 }
  0x83   : > { %p7310_p9 = pmov %p7308_p0 }
  0x84   : > { %4824 = vsyncadd (%p7309_p6), [#allocation5], 4294966528 }
  0x85   : > { %4826 = dma.done.wait (%p7310_p9), [#allocation8], 2048   ;;  %p7311_p10 = pmov %p7308_p0 }
  0x86   : > { %p7312_p13 = pmov %p7308_p0 }
  0x87   : > { %4828 = vsyncadd (%p7311_p10), [#allocation8], 4294965248 }
  0x88   : > { %4830 = dma.done.wait (%p7312_p13), [#allocation11], 1024   ;;  %p7313_p12 = pmov %p7308_p0 }
  0x89   : > { %v4861_v0 = vmov 1   ;;  %v4862_v1 = vmov 0   ;;  %v1111_v2 = vld [vmem:[%s7187_s7] sm:$0xff]  ;;  %v5128_v3 = vld [vmem:[%s7187_s7 + $0x8] sm:$0xff]  ;;  %v5133_v4 = vld [vmem:[%s7187_s7 + $0x10] sm:$0xff]  ;;  %v4863_v17 = vmov 2  }
  0x8a   : > { %4832 = vsyncadd (%p7313_p12), [#allocation11], 4294966272  ;;  %4484 = vset.pattern.permute.xlu1 %v4861_v0  ;;  %4483 = vset.pattern.permute.xlu0 %v4862_v1  ;;  %v5140_v5 = vld [vmem:[%s7187_s7 + $0x18] sm:$0xff]  ;;  %v4510_v6 = vld [vmem:[%s7182_s2 + $0x40] sm:$0xff]   ;;  %p439_p1 = scmp.lt.s32.totalorder %s4965_s0, 1  ;;  %s436_s29 = sand.u32 1, %s4843_s24  }
  0x8b   : > { %1228 = vperm.xlu1 %4484, %v1111_v2   ;;  %1129 = vperm.xlu0 %4483, %v1111_v2   ;;  %v4511_v7 = vld [vmem:[%s7182_s2] sm:$0xff]   ;;  %v4512_v8 = vld [vmem:[%s7182_s2 + $0x48] sm:$0xff]   ;;  %v4514_v10 = vld [vmem:[%s7182_s2 + $0x50] sm:$0xff]   ;;  %s3759_s15 = sld [smem:[#allocation3]]  ;;  %s3893_s23 = sshll.u32 %s436_s29, 4 }
  0x8c   : > { %4045 = vmatprep.subr.bf16.mxu0 %v4510_v6  ;;  %v4513_v9 = vld [vmem:[%s7182_s2 + $0x8] sm:$0xff]   ;;  %v4515_v11 = vld [vmem:[%s7182_s2 + $0x10] sm:$0xff]   ;;  %v4516_v12 = vld [vmem:[%s7182_s2 + $0x58] sm:$0xff]   ;;  %s440_s30 = scalar_select %p439_p1, %s4965_s0, 1 }
  0x8d   : > { %4046 = vmatpush3.bf16.msra.mxu0 %v4511_v7  ;;  %v5173_v13 = vld [vmem:[%s7187_s7 + $0x20] sm:$0xff]  ;;  %v4517_v14 = vld [vmem:[%s7182_s2 + $0x18] sm:$0xff]   ;;  %v5185_v16 = vld [vmem:[%s7187_s7 + $0x30] sm:$0xff]  ;;  %s438_s16 = scalar_lea.vmem [#allocation12], %s3893_s23  ;;  %s4042_s17 = sshll.u32 %s4965_s0, 7 }
  0x8e   : > { %4047 = vmatprep.subr.bf16.mxu0 %v4512_v8  ;;  %v4518_v15 = vld [vmem:[%s7182_s2 + $0x60] sm:$0xff]   ;;  %v4520_v19 = vld [vmem:[%s7182_s2 + $0x68] sm:$0xff]   ;;  %v5219_v26 = vld [vmem:[%s7187_s7 + $0x50] sm:$0xff]  ;;  %s3894_s22 = sshll.u32 %s440_s30, 1  ;;  %s3778_s19 = sshll.u32 %s438_s16, 4  ;;  %s7132_s19 = int_to_ptr.vmem [resolvable:$true] %s3778_s19 }
  0x8f   : > { %1232 = vperm.xlu1 %4484, %v5128_v3   ;;  %1134 = vperm.xlu0 %4483, %v5128_v3   ;;  %v4519_v18 = vld [vmem:[%s7182_s2 + $0x20] sm:$0xff]   ;;  %v5210_v24 = vld [vmem:[%s7187_s7 + $0x28] sm:$0xff]  ;;  %v4522_v27 = vld [vmem:[%s7182_s2 + $0x70] sm:$0xff]   ;;  %s5392_s21 = scalar_lea.vmem %s7186_s6, %s3894_s22  ;;  %s7137_s27 = scalar_lea.hbm %s7192_s12, %s4042_s17 }
  0x90   : > { %v4526_v20 = vld [vmem:[%s7182_s2 + $0xc0] sm:$0xff]   ;;  %v4521_v25 = vld [vmem:[%s7182_s2 + $0x28] sm:$0xff]   ;;  %v4523_v28 = vld [vmem:[%s7182_s2 + $0x30] sm:$0xff]   ;;  %s7139_s13 = scalar_lea.sflag [#allocation6], %s436_s29  ;;  %s4777_s28 = scalar_lea.vmem %s7132_s19, 256 }
  0x91   : > { %4048 = vmatpush3.bf16.msra.mxu0 %v4513_v9  ;;  %v4527_v21 = vld [vmem:[%s7182_s2 + $0x80] sm:$0xff]   ;;  %4067 = vmatprep.subr.bf16.mxu1 %v4526_v20  ;;  %v4533_v29 = vld [vmem:[%s7182_s2 + $0xc8] sm:$0xff]   ;;  %v4524_v32 = vld [vmem:[%s7182_s2 + $0x78] sm:$0xff]   ;;  %p4778_p2 = scmp.ne.s32.totalorder %s7132_s19, %s4777_s28  ;;  %p7472_p3 = scmp.ne.s32.totalorder %s7298_s14, 0 }
  0x92   : > { %4049 = vmatprep.subr.bf16.mxu0 %v4514_v10  ;;  %v5204_v22 = vld [vmem:[%s7187_s7 + $0x40] sm:$0xff]  ;;  %4068 = vmatpush3.bf16.msra.mxu1 %v4527_v21  ;;  %v4534_v30 = vld [vmem:[%s7182_s2 + $0x88] sm:$0xff]   ;;  %v4525_v33 = vld [vmem:[%s7182_s2 + $0x38] sm:$0xff]   ;;  %s4872_s0 = smov [#allocation12]  }
  0x93   : > { %4485 = vset.pattern.permute.xlu1 %v4862_v1  ;;  %1139 = vperm.xlu0 %4483, %v5133_v4   ;;  %v4530_v23 = vld [vmem:[#allocation4 + $0x4] ss:$24 sps:$4 sm:$0xff]   ;;  %v4537_v34 = vld [vmem:[%s7182_s2 + $0xd0] sm:$0xff]   ;;  %v4528_v37 = vld [vmem:[#allocation4] ss:$24 sps:$4 sm:$0xff]   ;;  %p4779_p4 = pnand %p4778_p2, %p7472_p3  ;;  %s4781_s25 = sshll.u32 %s4872_s0, 4  ;;  %s4782_s25 = int_to_ptr.vmem [resolvable:$false] %s4781_s25 }
  0x94   : > { %1144 = vperm.xlu1 %4485, %v5140_v5   ;;  %903 = vmatprep.mubr.bf16.mxu0 %v4530_v23  ;;  %v5238_v31 = vld [vmem:[%s7187_s7 + $0x60] sm:$0xff]  ;;  %v4538_v35 = vld [vmem:[%s7182_s2 + $0x90] sm:$0xff]   ;;  %v4541_v40 = vld [vmem:[%s7182_s2 + $0xd8] sm:$0xff]   ;;  %s4783_s30 = scalar_lea.vmem %s4782_s25, 512  ;;  %p4784_p8 = scmp.lt.s32.totalorder %s7132_s19, %s4782_s25 }
  0x95   : > { %4050 = vmatpush3.bf16.msra.mxu0 %v4515_v11  ;;  %4069 = vmatprep.subr.bf16.mxu1 %v4533_v29  ;;  %v5257_v36 = vld [vmem:[%s7187_s7 + $0x70] sm:$0xff]  ;;  %v4531_v38 = vld [vmem:[%s7182_s2 + $0x140] sm:$0xff]   ;;  %v4542_v41 = vld [vmem:[%s7182_s2 + $0x98] sm:$0xff]   ;;  %p4780_p7 = pneg %p4779_p4  ;;  %p4785_p11 = scmp.lt.s32.totalorder %s4783_s30, %s4777_s28 }
  0x96   : > { %4051 = vmatprep.subr.bf16.mxu0 %v4516_v12  ;;  %4070 = vmatpush3.bf16.msra.mxu1 %v4534_v30  ;;  %v4532_v39 = vld [vmem:[%s7182_s2 + $0x100] sm:$0xff]   ;;  %v4535_v42 = vld [vmem:[%s7182_s2 + $0x148] sm:$0xff]   ;;  %v4539_v45 = vld [vmem:[%s7182_s2 + $0x150] sm:$0xff]  }
  0x97   : > { %4486 = vset.pattern.permute.xlu0 %v4861_v0  ;;  %4071 = vmatprep.subr.bf16.mxu1 %v4537_v34  ;;  %v4536_v43 = vld [vmem:[%s7182_s2 + $0x108] sm:$0xff]   ;;  %v4545_v44 = vld [vmem:[%s7182_s2 + $0xe0] sm:$0xff]   ;;  %v1118_v47 = vld [vmem:[%s7187_s7 + $0x38] sm:$0xff]  ;;  %p4786_p5 = por %p4785_p11, %p4784_p8 }
  0x98   : > { %4487 = vset.pattern.permute.xlu1 %v4861_v0  ;;  %1236 = vperm.xlu0 %4486, %v5133_v4   ;;  %v4546_v46 = vld [vmem:[%s7182_s2 + $0xa0] sm:$0xff]   ;;  %v4549_v48 = vld [vmem:[%s7182_s2 + $0xe8] sm:$0xff]   ;;  %v4540_v49 = vld [vmem:[%s7182_s2 + $0x110] sm:$0xff]  }
  0x99   : > { %1240 = vperm.xlu1 %4487, %v5140_v5   ;;  %4052 = vmatpush3.bf16.msra.mxu0 %v4517_v14  ;;  %v4543_v50 = vld [vmem:[%s7182_s2 + $0x158] sm:$0xff]   ;;  %v4550_v51 = vld [vmem:[%s7182_s2 + $0xa8] sm:$0xff]   ;;  %v4553_v52 = vld [vmem:[%s7182_s2 + $0xf0] sm:$0xff]   ;;  %p4787_p0 = pnand %p4786_p5, %p4780_p7 }
  0x9a   : > { %4053 = vmatprep.subr.bf16.mxu0 %v4518_v15  ;;  %4072 = vmatpush3.bf16.msra.mxu1 %v4538_v35  ;;  %v4544_v53 = vld [vmem:[%s7182_s2 + $0x118] sm:$0xff]   ;;  %v4547_v54 = vld [vmem:[%s7182_s2 + $0x160] sm:$0xff]   ;;  %v4554_v55 = vld [vmem:[%s7182_s2 + $0xb0] sm:$0xff]  }
  0x9b   : > { %4073 = vmatprep.subr.bf16.mxu1 %v4541_v40  ;;  %v4548_v56 = vld [vmem:[%s7182_s2 + $0x120] sm:$0xff]   ;;  %v4557_v57 = vld [vmem:[%s7182_s2 + $0xf8] sm:$0xff]   ;;  %v4551_v58 = vld [vmem:[%s7182_s2 + $0x168] sm:$0xff]  }
  0x9c   : > { %1244 = vperm.xlu0 %4486, %v5173_v13   ;;  %v4558_v59 = vld [vmem:[%s7182_s2 + $0xb8] sm:$0xff]   ;;  %v4552_v60 = vld [vmem:[%s7182_s2 + $0x128] sm:$0xff]   ;;  %v4555_v62 = vld [vmem:[%s7182_s2 + $0x170] sm:$0xff]  }
  0x9d   : > { %4488 = vset.pattern.permute.xlu1 %v4863_v17  ;;  %4054 = vmatpush3.bf16.msra.mxu0 %v4519_v18  ;;  %v4562_v61 = vld [vmem:[#allocation4 + $0xc] ss:$24 sps:$4 sm:$0xff]   ;;  %v4560_v63 = vld [vmem:[#allocation4 + $0x8] ss:$24 sps:$4 sm:$0xff]   ;;  %v1122_v6 = vld [vmem:[%s7187_s7 + $0x58] sm:$0xff] }
  0x9e   : > { %1328 = vperm.xlu1 %4488, %v1111_v2   ;;  %4055 = vmatprep.subr.bf16.mxu0 %v4520_v19  ;;  %v4566_v2 = vld [vmem:[#allocation4 + $0x14] ss:$24 sps:$4 sm:$0xff]   ;;  %v4563_v7 = vld [vmem:[%s7182_s2 + $0x138] sm:$0xff]   ;;  %v4564_v9 = vld [vmem:[#allocation4 + $0x10] ss:$24 sps:$4 sm:$0xff]  }
  0x9f   : > { %4074 = vmatpush3.bf16.msra.mxu1 %v4542_v41  ;;  %944 = vmatprep.mubr.bf16.mxu1 %v4562_v61  ;;  %v1124_v8 = vld [vmem:[%s7187_s7 + $0x68] sm:$0xff]  ;;  %v1126_v10 = vld [vmem:[%s7187_s7 + $0x78] sm:$0xff]  ;;  %v5401_v18 = vld [vmem:[%s5392_s21] ss:$0 sm:$0xff] }
  0xa0   : > { %1252 = vperm.xlu0 %4486, %v5185_v16   ;;  %4075 = vmatprep.subr.bf16.mxu1 %v4545_v44 }
  0xa1   : > { %4056 = vmatpush3.bf16.msra.mxu0 %v4521_v25 }
  0xa2   : > { %4489 = vset.pattern.permute.xlu1 %v4862_v1  ;;  %4057 = vmatprep.subr.bf16.mxu0 %v4522_v27 }
  0xa3   : > { %1149 = vperm.xlu1 %4489, %v5173_v13   ;;  %4076 = vmatpush3.bf16.msra.mxu1 %v4546_v46 }
  0xa4   : > { %1260 = vperm.xlu0 %4486, %v5204_v22   ;;  %4077 = vmatprep.subr.bf16.mxu1 %v4549_v48 }
  0xa5   : > { %4058 = vmatpush3.bf16.msra.mxu0 %v4523_v28 }
  0xa6   : > { %4059 = vmatprep.subr.bf16.mxu0 %v4524_v32 }
  0xa7   : > { %1154 = vperm.xlu1 %4489, %v5210_v24   ;;  %4078 = vmatpush3.bf16.msra.mxu1 %v4550_v51 }
  0xa8   : > { %1268 = vperm.xlu0 %4486, %v5219_v26   ;;  %4079 = vmatprep.subr.bf16.mxu1 %v4553_v52  ;;  %v7221_v52 = vmov 683565275  }
  0xa9   : > { %4060 = vmatpush3.bf16.msra.mxu0 %v4525_v33 }
  0xaa   : > { %4089 = vmatprep.subr.bf16.mxu0 %v4531_v38 }
  0xab   : > { %4490 = vset.pattern.permute.xlu1 %v4861_v0  ;;  %4080 = vmatpush3.bf16.msra.mxu1 %v4554_v55 }
  0xac   : > { %1248 = vperm.xlu1 %4490, %v5210_v24   ;;  %1276 = vperm.xlu0 %4486, %v5238_v31  }
  0xad   : > { %904 = vmatmul.mubr.bf16.vlgmr.msra.gmra.mrb[0].mxu0 %v4528_v37  ;;  %4081 = vmatprep.subr.bf16.mxu1 %v4557_v57 }
  0xae   : > { %4090 = vmatpush3.bf16.msra.mxu0 %v4532_v39  ;;  %985 = vmatprep.mubr.bf16.mxu0 %v4566_v2 }
  0xaf   : > { %4091 = vmatprep.subr.bf16.mxu0 %v4535_v42  ;;  %4082 = vmatpush3.bf16.msra.mxu1 %v4558_v59  ;;  %v7233_v59 = vmov 2131351028  }
  0xb0   : > { %4491 = vset.pattern.permute.xlu1 %v4863_v17  ;;  %1284 = vperm.xlu0 %4486, %v5257_v36  }
  0xb1   : > { %1336 = vperm.xlu1 %4491, %v5133_v4   ;;  %v4556_v4 = vld [vmem:[%s7182_s2 + $0x130] sm:$0xff]  }
  0xb2   : > { %4092 = vmatpush3.bf16.msra.mxu0 %v4536_v43  ;;  %945 = vmatmul.mubr.bf16.vlgmr.msra.gmra.mrb[0].mxu1 %v4560_v63 }
  0xb3   : > { %4093 = vmatprep.subr.bf16.mxu0 %v4539_v45 }
  0xb4   : > { %4505 = vset.pattern.permute.xlu0 %v4863_v17 }
  0xb5   : > { %4492 = vset.pattern.permute.xlu1 %v4862_v1  ;;  %1332 = vperm.xlu0 %4505, %v5128_v3   ;;  %v1120_v3 = vld [vmem:[%s7187_s7 + $0x48] sm:$0xff] }
  0xb6   : > { %1159 = vperm.xlu1 %4492, %v5185_v16   ;;  %4094 = vmatpush3.bf16.msra.mxu0 %v4540_v49 }
  0xb7   : > { %4095 = vmatprep.subr.bf16.mxu0 %v4543_v50 }
  0xb9   : > { %1340 = vperm.xlu0 %4505, %v5140_v5   ;;  %v4559_v5 = vld [vmem:[%s7182_s2 + $0x178] sm:$0xff]  }
  0xba   : > { %1164 = vperm.xlu1 %4492, %v1118_v47   ;;  %4096 = vmatpush3.bf16.msra.mxu0 %v4544_v53 }
  0xbb   : > { %4097 = vmatprep.subr.bf16.mxu0 %v4547_v54  ;;  %v7226_v54 = vmov 2475754826  }
  0xbd   : > { %1348 = vperm.xlu0 %4505, %v5210_v24  }
  0xbe   : > { %4493 = vset.pattern.permute.xlu1 %v4861_v0  ;;  %4098 = vmatpush3.bf16.msra.mxu0 %v4548_v56 }
  0xbf   : > { %1256 = vperm.xlu1 %4493, %v1118_v47   ;;  %4099 = vmatprep.subr.bf16.mxu0 %v4551_v58 }
  0xc1   : > { %1356 = vperm.xlu0 %4505, %v1118_v47  }
  0xc2   : > { %4100 = vmatpush3.bf16.msra.mxu0 %v4552_v60 }
  0xc3   : > { %4494 = vset.pattern.permute.xlu1 %v4863_v17  ;;  %4101 = vmatprep.subr.bf16.mxu0 %v4555_v62  ;;  %v7217_v62 = vmov 2102212464  }
  0xc4   : > { %1344 = vperm.xlu1 %4494, %v5173_v13  }
  0xc5   : > { %1364 = vperm.xlu0 %4505, %v1120_v3  }
  0xc6   : > { %4102 = vmatpush3.bf16.msra.mxu0 %v4556_v4 }
  0xc7   : > { %4103 = vmatprep.subr.bf16.mxu0 %v4559_v5 }
  0xc8   : > { %4495 = vset.pattern.permute.xlu1 %v4862_v1 }
  0xc9   : > { %1169 = vperm.xlu1 %4495, %v5204_v22   ;;  %1372 = vperm.xlu0 %4505, %v1122_v6  }
  0xca   : > { %4104 = vmatpush3.bf16.msra.mxu0 %v4563_v7 }
  0xcd   : > { %1174 = vperm.xlu1 %4495, %v1120_v3   ;;  %1380 = vperm.xlu0 %4505, %v1124_v8  }
  0xce   : > { %986 = vmatmul.mubr.bf16.vlgmr.msra.gmra.mrb[4].mxu0 %v4564_v9 }
  0xd1   : > { %4496 = vset.pattern.permute.xlu1 %v4861_v0  ;;  %4508 = vset.pattern.permute.xlu0 %v4862_v1 }
  0xd2   : > { %1264 = vperm.xlu1 %4496, %v1120_v3   ;;  %v7215_v3 = vmov 920167782  }
  0xd6   : > { %4497 = vset.pattern.permute.xlu1 %v4863_v17 }
  0xd7   : > { %1352 = vperm.xlu1 %4497, %v5185_v16   ;;  %v5398_v16 = vld [vmem:[%s5392_s21 + $0x1] ss:$0 sm:$0xff] }
  0xdb   : > { %4498 = vset.pattern.permute.xlu1 %v4862_v1 }
  0xdc   : > { %1179 = vperm.xlu1 %4498, %v5219_v26  }
  0xe0   : > { %1184 = vperm.xlu1 %4498, %v1122_v6  }
  0xe4   : > { %4499 = vset.pattern.permute.xlu1 %v4861_v0 }
  0xe5   : > { %1272 = vperm.xlu1 %4499, %v1122_v6   ;;  %v7211_v6 = vmov 1326507024  }
  0xe9   : > { %4500 = vset.pattern.permute.xlu1 %v4863_v17 }
  0xea   : > { %1360 = vperm.xlu1 %4500, %v5204_v22  }
  0xee   : > { %4501 = vset.pattern.permute.xlu1 %v4862_v1 }
  0xef   : > { %1189 = vperm.xlu1 %4501, %v5238_v31  }
  0xf3   : > { %1194 = vperm.xlu1 %4501, %v1124_v8  }
  0xf7   : > { %4502 = vset.pattern.permute.xlu1 %v4861_v0 }
  0xf8   : > { %1280 = vperm.xlu1 %4502, %v1124_v8  }
  0xfc   : > { %4503 = vset.pattern.permute.xlu1 %v4863_v17 }
  0xfd   : > { %1368 = vperm.xlu1 %4503, %v5219_v26  }
 0x101   : > { %4504 = vset.pattern.permute.xlu1 %v4862_v1 }
 0x102   : > { %1199 = vperm.xlu1 %4504, %v5257_v36  }
 0x106   : > { %1204 = vperm.xlu1 %4504, %v1126_v10  }
 0x10a   : > { %4506 = vset.pattern.permute.xlu1 %v4861_v0  ;;  %v1229_v11 = vpop.permute.xlu1 %1228  ;;  %v1130_v12 = vpop.permute.xlu0 %1129 }
 0x10b   : > { %1288 = vperm.xlu1 %4506, %v1126_v10   ;;  %v1211_v20 = vmul.f32 %v5401_v18, %v1130_v12 }
 0x10e   : > { %v1233_v13 = vpop.permute.xlu1 %1232  ;;  %v1135_v14 = vpop.permute.xlu0 %1134 }
 0x10f   : > { %4507 = vset.pattern.permute.xlu1 %v4863_v17  ;;  %v1295_v17 = vmul.f32 %v5398_v16, %v1229_v11  ;;  %v1296_v38 = vmul.f32 %v5398_v16, %v1233_v13  ;;  %v1212_v40 = vmul.f32 %v5401_v18, %v1135_v14 }
 0x110   : > { %1376 = vperm.xlu1 %4507, %v5238_v31  }
 0x111   : > { %v1311_v23 = vadd.f32 %v1295_v17, %v1211_v20  ;;  %v1312_v51 = vadd.f32 %v1296_v38, %v1212_v40 }
 0x112   : > { %v1140_v15 = vpop.permute.xlu0 %1139 }
 0x113   : > { %v5394_v0 = vpop.permute.xlu1 %1144  ;;  %v1213_v41 = vmul.f32 %v5401_v18, %v1140_v15 }
 0x114   : > { %1384 = vperm.xlu1 %4507, %v5257_v36  }
 0x117   : > { %v1237_v19 = vpop.permute.xlu0 %1236 }
 0x118   : > { %1388 = vperm.xlu1 %4507, %v1126_v10   ;;  %v5405_v21 = vpop.permute.xlu1 %1240  ;;  %v1297_v42 = vmul.f32 %v5398_v16, %v1237_v19 }
 0x11a   : > { %v1313_v50 = vadd.f32 %v1297_v42, %v1213_v41 }
 0x11b   : > { %v1245_v22 = vpop.permute.xlu0 %1244 }
 0x11c   : > { %4509 = vset.pattern.permute.xlu1 %v4862_v1  ;;  %v1299_v28 = vmul.f32 %v5398_v16, %v1245_v22 }
 0x11d   : > { %v1329_v24 = vpop.permute.xlu1 %1328 }
 0x11e   : > { %v5408_v25 = vadd.f32 %v1329_v24, %v1311_v23 }
 0x11f   : > { %v5410_v26 = vpop.permute.xlu0 %1252 }
 0x120   : > { %v1410_v27 = vand.u32 2139095040, %v5408_v25  ;;  %v1407_v29 = vand.u32 2147483647, %v5408_v25 }
 0x122   : > { %v1411_v30 = vshrl.u32 %v1410_v27, 23  ;;  %v1150_v31 = vpop.permute.xlu1 %1149  ;;  %v1414_v1 = vand.u32 8388607, %v1407_v29 }
 0x123   : > { %v1215_v32 = vmul.f32 %v5401_v18, %v1150_v31  ;;  %v5416_v33 = vpop.permute.xlu0 %1260 }
 0x124   : > { %v3961_v34 = vadd.s32 4294967169, %v1411_v30  ;;  %v1415_v43 = vor.u32 8388608, %v1414_v1 }
 0x125   : > { %v5420_v35 = vadd.f32 %v1299_v28, %v1215_v32 }
 0x126   : > { %v1417_v36 = vadd.s32 1, %v3961_v34  ;;  %v1155_v37 = vpop.permute.xlu1 %1154  ;;  %v5432_v56 = vshll.u32 %v1415_v43, 8 }
 0x127   : > { %v5423_v39 = vpop.permute.xlu0 %1268  ;;  %v1216_v57 = vmul.f32 %v5401_v18, %v1155_v37 }
 0x128   : > { %vm1418_vm0 = vcmp.gt.s32.totalorder %v1417_v36, 0 }
 0x129   : > { %v1419_v44 = vsel %vm1418_vm0, %v1417_v36, 0 }
 0x12a   : > { %v1421_v45 = vand.u32 31, %v1419_v44  ;;  %v1420_v48 = vshrl.u32 %v1419_v44, 5 }
 0x12b   : > { %v1249_v46 = vpop.permute.xlu1 %1248  ;;  %v5428_v47 = vpop.permute.xlu0 %1276 }
 0x12c   : > { %v1422_v49 = vsub.s32 32, %v1421_v45  ;;  %v1424_v53 = vshll.u32 %v7221_v52, %v1421_v45  ;;  %v1427_v55 = vshll.u32 %v7226_v54, %v1421_v45  ;;  %v1430_v61 = vshll.u32 %v7233_v59, %v1421_v45 }
 0x12d   : > { %v1433_v2 = vshll.u32 %v7217_v62, %v1421_v45  ;;  %v1436_v5 = vshll.u32 %v7215_v3, %v1421_v45  ;;  %vm1439_vm1 = vcmp.lt.s32.totalorder %v1420_v48, 1  ;;  %vm1442_vm2 = vcmp.lt.s32.totalorder %v1420_v48, 4 }
 0x12e   : > { %v1425_v58 = vshrl.u32 %v7226_v54, %v1422_v49  ;;  %v1428_v60 = vshrl.u32 %v7233_v59, %v1422_v49  ;;  %v1431_v63 = vshrl.u32 %v7217_v62, %v1422_v49  ;;  %v1434_v4 = vshrl.u32 %v7215_v3, %v1422_v49 }
 0x12f   : > { %v1437_v7 = vshrl.u32 %v7211_v6, %v1422_v49  ;;  %v5443_v8 = vpop.permute.xlu0 %1284  ;;  %v1423_v19 = vshrl.u32 %v7221_v52, %v1422_v49  ;;  %vm1440_vm3 = vcmp.lt.s32.totalorder %v1420_v48, 2  ;;  %vm1441_vm4 = vcmp.lt.s32.totalorder %v1420_v48, 3 }
 0x130   : > { %v1426_v9 = vor.u32 %v1425_v58, %v1424_v53  ;;  %v1429_v10 = vor.u32 %v1428_v60, %v1427_v55  ;;  %v1432_v11 = vor.u32 %v1431_v63, %v1430_v61  ;;  %v1337_v12 = vpop.permute.xlu1 %1336  ;;  %v1435_v13 = vor.u32 %v1434_v4, %v1433_v2 }
 0x131   : > { %v1438_v14 = vor.u32 %v1437_v7, %v1436_v5  ;;  %v5445_v15 = vadd.f32 %v1337_v12, %v1313_v50  ;;  %v1300_v31 = vmul.f32 %v5398_v16, %v1249_v46  ;;  %v1298_v45 = vmul.f32 %v5398_v16, %v5405_v21 }
 0x132   : > { %v1444_v17 = vsel %vm1442_vm2, %v1432_v11, 2102212464  ;;  %v1447_v20 = vsel %vm1439_vm1, %v1426_v9, %v1429_v10  ;;  %v1451_v22 = vsel %vm1439_vm1, %v1429_v10, %v1432_v11  ;;  %v1448_v23 = vsel %vm1442_vm2, %v1435_v13, 920167782 }
 0x133   : > { %v1452_v24 = vsel %vm1442_vm2, %v1438_v14, 1326507024  ;;  %v1443_v27 = vsel %vm1439_vm1, %v1423_v19, %v1426_v9  ;;  %v1449_v28 = vsel %vm1441_vm4, %v1432_v11, %v1448_v23  ;;  %v1445_v34 = vsel %vm1441_vm4, %v1429_v10, %v1444_v17 }
 0x134   : > { %v1453_v30 = vsel %vm1441_vm4, %v1435_v13, %v1452_v24  ;;  %v1333_v32 = vpop.permute.xlu0 %1332  ;;  %v1450_v1 = vsel %vm1440_vm3, %v1447_v20, %v1449_v28  ;;  %v1615_v37 = vand.u32 2147483647, %v5445_v15  ;;  %v1618_v43 = vand.u32 2139095040, %v5445_v15 }
 0x135   : > { %v1454_v36 = vsel %vm1440_vm3, %v1451_v22, %v1453_v30  ;;  %v5457_v41 = vmul.u32.u64.low %v5432_v56, %v1450_v1  ;;  %v5458_v42 = vmul.u32.u64.high %v5432_v56, %v1450_v1, %v5457_v41  ;;  %v5462_v44 = vadd.f32 %v1333_v32, %v1312_v51 }
 0x136   : > { %v5453_v38 = vmul.u32.u64.low %v5432_v56, %v1454_v36  ;;  %v5454_v40 = vmul.u32.u64.high %v5432_v56, %v1454_v36, %v5453_v38  ;;  %v1446_v46 = vsel %vm1440_vm3, %v1443_v27, %v1445_v34  ;;  %v5467_v49 = vadd.f32 %v1300_v31, %v1216_v57 }
 0x137   : > { %v1214_v50 = vmul.f32 %v5401_v18, %v5394_v0  ;;  %v1619_v53 = vshrl.u32 %v1618_v43, 23  ;;  %v1622_v55 = vand.u32 8388607, %v1615_v37  ;;  %v1465_v51 = vadd.s32 1, %v5458_v42 }
 0x138   : > { %vm1464_vm5 = vc.u32 %v5454_v40, %v5457_v41  ;;  %v7208_v58 = vand.u32 2147483647, %v5462_v44  ;;  %v1514_v21 = vand.u32 2139095040, %v5462_v44  ;;  %v1462_v48 = vmul.u32 %v5432_v56, %v1446_v46  ;;  %v1341_v60 = vpop.permute.xlu0 %1340 }
 0x139   : > { %v3969_v57 = vadd.s32 4294967169, %v1619_v53  ;;  %v1466_v61 = vsel %vm1464_vm5, %v1465_v51, %v5458_v42  ;;  %v1314_v63 = vadd.f32 %v1298_v45, %v1214_v50  ;;  %v1623_v5 = vor.u32 8388608, %v1622_v55 }
 0x13a   : > { %v1515_v0 = vshrl.u32 %v1514_v21, 23  ;;  %v1467_v2 = vadd.s32 %v1466_v61, %v1462_v48  ;;  %v5482_v9 = vand.u32 8388607, %v7208_v58  ;;  %vm1409_vm5 = vcmp.lt.s32.totalorder %v5408_v25, 0 }
 0x13b   : > { %v1625_v4 = vadd.s32 1, %v3969_v57  ;;  %v5484_v10 = vadd.f32 %v1341_v60, %v1314_v63  ;;  %v5488_v17 = vshll.u32 %v1623_v5, 8 }
 0x13c   : > { %v3965_v7 = vadd.s32 4294967169, %v1515_v0  ;;  %v1468_v11 = vadd.s32 536870912, %v1467_v2  ;;  %v1519_v20 = vor.u32 8388608, %v5482_v9 }
 0x13d   : > { %7314 = vst [vmem:[#allocation23_spill] sm:$0xff] %v5484_v10  ;;  %vm1626_vm6 = vcmp.gt.s32.totalorder %v1625_v4, 0  ;;  %v1722_v22 = vand.u32 2139095040, %v5484_v10 }
 0x13e   : > { %v1627_v12 = vsel %vm1626_vm6, %v1625_v4, 0  ;;  %v1521_v56 = vadd.s32 1, %v3965_v7  ;;  %v5486_v13 = vshrl.u32 %v1468_v11, 30 }
 0x13f   : > { %v1628_v14 = vshrl.u32 %v1627_v12, 5  ;;  %v1629_v19 = vand.u32 31, %v1627_v12 }
 0x140   : > { %vm1522_vm7 = vcmp.gt.s32.totalorder %v1521_v56, 0  ;;  %v1470_v23 = vshll.u32 %v5486_v13, 30 }
 0x141   : > { %v1630_v24 = vsub.s32 32, %v1629_v19  ;;  %v1632_v27 = vshll.u32 %v7221_v52, %v1629_v19  ;;  %v1635_v28 = vshll.u32 %v7226_v54, %v1629_v19  ;;  %v1638_v30 = vshll.u32 %v7233_v59, %v1629_v19 }
 0x142   : > { %v1641_v31 = vshll.u32 %v7217_v62, %v1629_v19  ;;  %v1644_v32 = vshll.u32 %v7215_v3, %v1629_v19  ;;  %vm1647_vm8 = vcmp.lt.s32.totalorder %v1628_v14, 1  ;;  %v5498_v34 = vsub.s32 %v1467_v2, %v1470_v23 }
 0x143   : > { %v1631_v1 = vshrl.u32 %v7221_v52, %v1630_v24  ;;  %v1633_v36 = vshrl.u32 %v7226_v54, %v1630_v24  ;;  %v1636_v38 = vshrl.u32 %v7233_v59, %v1630_v24  ;;  %v1639_v42 = vshrl.u32 %v7217_v62, %v1630_v24 }
 0x144   : > { %v1642_v43 = vshrl.u32 %v7215_v3, %v1630_v24  ;;  %v1645_v45 = vshrl.u32 %v7211_v6, %v1630_v24  ;;  %vm1648_vm9 = vcmp.lt.s32.totalorder %v1628_v14, 2  ;;  %v1473_v46 = vsub.s32 0, %v5498_v34 }
 0x145   : > { %v1634_v50 = vor.u32 %v1633_v36, %v1632_v27  ;;  %v1637_v53 = vor.u32 %v1636_v38, %v1635_v28  ;;  %vm1649_vm10 = vcmp.lt.s32.totalorder %v1628_v14, 3  ;;  %v1640_v55 = vor.u32 %v1639_v42, %v1638_v30 }
 0x146   : > { %v1643_v51 = vor.u32 %v1642_v43, %v1641_v31  ;;  %v1646_v21 = vor.u32 %v1645_v45, %v1644_v32  ;;  %vm1650_vm11 = vcmp.lt.s32.totalorder %v1628_v14, 4  ;;  %v3962_v48 = vmin.u32 %v1473_v46, %v5498_v34 }
 0x147   : > { %v1651_v57 = vsel %vm1647_vm8, %v1631_v1, %v1634_v50  ;;  %v1655_v60 = vsel %vm1647_vm8, %v1634_v50, %v1637_v53  ;;  %v1523_v61 = vsel %vm1522_vm7, %v1521_v56, 0  ;;  %v1652_v0 = vsel %vm1650_vm11, %v1640_v55, 2102212464 }
 0x148   : > { %v1656_v63 = vsel %vm1650_vm11, %v1643_v51, 920167782  ;;  %v1659_v2 = vsel %vm1647_vm8, %v1637_v53, %v1640_v55  ;;  %v1660_v4 = vsel %vm1650_vm11, %v1646_v21, 1326507024  ;;  %v1475_v5 = vclz %v3962_v48 }
 0x149   : > { %v1653_v7 = vsel %vm1649_vm10, %v1637_v53, %v1652_v0  ;;  %v1657_v9 = vsel %vm1649_vm10, %v1640_v55, %v1656_v63  ;;  %v1661_v11 = vsel %vm1649_vm10, %v1643_v51, %v1660_v4  ;;  %v7207_v23 = vand.u32 2147483647, %v5484_v10 }
 0x14a   : > { %v1658_v12 = vsel %vm1648_vm9, %v1655_v60, %v1657_v9  ;;  %v1662_v19 = vsel %vm1648_vm9, %v1659_v2, %v1661_v11  ;;  %v1723_v24 = vshrl.u32 %v1722_v22, 23  ;;  %v3963_v56 = vadd.s32 4294967294, %v1475_v5 }
 0x14b   : > { %v5519_v27 = vmul.u32.u64.low %v5488_v17, %v1662_v19  ;;  %v5520_v28 = vmul.u32.u64.high %v5488_v17, %v1662_v19, %v5519_v27  ;;  %v5522_v30 = vshrl.u32 %v1523_v61, 5  ;;  %v1654_v31 = vsel %vm1648_vm9, %v1651_v57, %v1653_v7 }
 0x14c   : > { %v5526_v32 = vmul.u32.u64.low %v5488_v17, %v1658_v12  ;;  %v5527_v1 = vmul.u32.u64.high %v5488_v17, %v1658_v12, %v5526_v32  ;;  %v1525_v36 = vand.u32 31, %v1523_v61  ;;  %v1463_v38 = vadd.s32 %v5457_v41, %v5454_v40 }
 0x14d   : > { %vm3964_vm12 = vcmp.lt.s32.totalorder %v3963_v56, 0  ;;  %v5532_v43 = vshll.u32 %v1519_v20, 8  ;;  %v5536_v45 = vand.u32 8388607, %v7207_v23  ;;  %v1670_v46 = vmul.u32 %v5488_v17, %v1654_v31 }
 0x14e   : > { %v1478_v22 = vsel %vm3964_vm12, 0, %v3963_v56  ;;  %v1526_v42 = vsub.s32 32, %v1525_v36  ;;  %vm1543_vm13 = vcmp.lt.s32.totalorder %v5522_v30, 1  ;;  %v3973_v50 = vadd.s32 4294967169, %v1723_v24 }
 0x14f   : > { %v1483_v14 = vsub.s32 4294967266, %v1478_v22  ;;  %vm1672_vm14 = vc.u32 %v5520_v28, %v5526_v32  ;;  %v1673_v40 = vadd.s32 1, %v5527_v1  ;;  %v1528_v41 = vshll.u32 %v7221_v52, %v1525_v36 }
 0x150   : > { %v1529_v20 = vshrl.u32 %v7226_v54, %v1526_v42  ;;  %v1479_v53 = vsub.s32 32, %v1478_v22  ;;  %v1531_v51 = vshll.u32 %v7226_v54, %v1525_v36  ;;  %v1532_v21 = vshrl.u32 %v7233_v59, %v1526_v42 }
 0x151   : > { %v1484_v55 = vadd.s32 127, %v1483_v14  ;;  %v1674_v17 = vsel %vm1672_vm14, %v1673_v40, %v5527_v1  ;;  %v1534_v57 = vshll.u32 %v7233_v59, %v1525_v36  ;;  %v1535_v60 = vshrl.u32 %v7217_v62, %v1526_v42 }
 0x152   : > { %v1530_v48 = vor.u32 %v1529_v20, %v1528_v41  ;;  %v1675_v0 = vadd.s32 %v1674_v17, %v1670_v46  ;;  %v1533_v63 = vor.u32 %v1532_v21, %v1531_v51  ;;  %v1537_v2 = vshll.u32 %v7217_v62, %v1525_v36 }
 0x153   : > { %v1485_v61 = vshll.u32 %v1484_v55, 23  ;;  %v1536_v4 = vor.u32 %v1535_v60, %v1534_v57  ;;  %v1538_v5 = vshrl.u32 %v7215_v3, %v1526_v42  ;;  %v1540_v7 = vshll.u32 %v7215_v3, %v1525_v36 }
 0x154   : > { %v1541_v9 = vshrl.u32 %v7211_v6, %v1526_v42  ;;  %v1481_v11 = vshrl.u32 %v1463_v38, %v1479_v53  ;;  %v1676_v12 = vadd.s32 536870912, %v1675_v0  ;;  %vm1544_vm15 = vcmp.lt.s32.totalorder %v5522_v30, 2 }
 0x155   : > { %vm1545_vm0 = vcmp.lt.s32.totalorder %v5522_v30, 3  ;;  %v1480_v19 = vshll.u32 %v5498_v34, %v1478_v22  ;;  %v1539_v24 = vor.u32 %v1538_v5, %v1537_v2  ;;  %vm1546_vm1 = vcmp.lt.s32.totalorder %v5522_v30, 4 }
 0x156   : > { %v1542_v56 = vor.u32 %v1541_v9, %v1540_v7  ;;  %v1486_v27 = vor.u32 4788187, %v1485_v61  ;;  %v5558_v31 = vshrl.u32 %v1676_v12, 30  ;;  %v1551_v1 = vsel %vm1543_vm13, %v1530_v48, %v1533_v63 }
 0x157   : > { %v1555_v36 = vsel %vm1543_vm13, %v1533_v63, %v1536_v4  ;;  %v1527_v38 = vshrl.u32 %v7221_v52, %v1526_v42  ;;  %v1548_v14 = vsel %vm1546_vm1, %v1536_v4, 2102212464  ;;  %v1552_v46 = vsel %vm1546_vm1, %v1539_v24, 920167782 }
 0x158   : > { %v1556_v40 = vsel %vm1546_vm1, %v1542_v56, 1326507024  ;;  %v1482_v41 = vor.u32 %v1481_v11, %v1480_v19  ;;  %v1678_v34 = vshll.u32 %v5558_v31, 30  ;;  %v1553_v22 = vsel %vm1545_vm0, %v1536_v4, %v1552_v46  ;;  %v1349_v4 = vpop.permute.xlu0 %1348 }
 0x159   : > { %v1557_v20 = vsel %vm1545_vm0, %v1539_v24, %v1556_v40  ;;  %v1547_v53 = vsel %vm1543_vm13, %v1527_v38, %v1530_v48  ;;  %v1554_v55 = vsel %vm1544_vm15, %v1551_v1, %v1553_v22  ;;  %v1729_v51 = vadd.s32 1, %v3973_v50 }
 0x15a   : > { %v1558_v42 = vsel %vm1544_vm15, %v1555_v36, %v1557_v20  ;;  %v5576_v21 = vsub.s32 %v1675_v0, %v1678_v34  ;;  %v1549_v17 = vsel %vm1545_vm0, %v1533_v63, %v1548_v14  ;;  %v1487_v61 = vand.u32 2147483647, %v1486_v27  ;;  %v5610_v34 = vpop.permute.xlu1 %1159 }
 0x15b   : > { %v5581_v57 = vmul.u32.u64.low %v5532_v43, %v1558_v42  ;;  %v5582_v60 = vmul.u32.u64.high %v5532_v43, %v1558_v42, %v5581_v57  ;;  %v5585_v2 = vmul.u32.u64.low %v5532_v43, %v1554_v55  ;;  %v5586_v48 = vmul.u32.u64.high %v5532_v43, %v1554_v55, %v5585_v2 }
 0x15c   : > { %vm1730_vm2 = vcmp.gt.s32.totalorder %v1729_v51, 0  ;;  %v1681_v5 = vsub.s32 0, %v5576_v21  ;;  %v1489_v0 = vcvt.s32.f32 %v1482_v41  ;;  %v1550_v7 = vsel %vm1544_vm15, %v1547_v53, %v1549_v17 }
 0x15d   : > { %v1731_v50 = vsel %vm1730_vm2, %v1729_v51, 0  ;;  %vm1568_vm3 = vc.u32 %v5582_v60, %v5585_v2  ;;  %v5596_v11 = vadd.f32 %v1349_v4, %v5467_v49  ;;  %v1569_v19 = vadd.s32 1, %v5586_v48 }
 0x15e   : > { %v1733_v63 = vand.u32 31, %v1731_v50  ;;  %v3970_v9 = vmin.u32 %v1681_v5, %v5576_v21  ;;  %v5598_v12 = vmul.f32 %v1489_v0, %v1487_v61  ;;  %v1727_v24 = vor.u32 8388608, %v5536_v45 }
 0x15f   : > { %7315 = vst [vmem:[#allocation24_spill] sm:$0xff] %v5596_v11  ;;  %v1566_v30 = vmul.u32 %v5532_v43, %v1550_v7  ;;  %v5603_v1 = vshrl.u32 %v1731_v50, 5  ;;  %v1570_v38 = vsel %vm1568_vm3, %v1569_v19, %v5586_v48  ;;  %v1671_v50 = vadd.s32 %v5526_v32, %v5520_v28  ;;  %v1165_v28 = vpop.permute.xlu1 %1164 }
 0x160   : > { %v1734_v56 = vsub.s32 32, %v1733_v63  ;;  %v1683_v27 = vclz %v3970_v9  ;;  %v1736_v36 = vshll.u32 %v7221_v52, %v1733_v63  ;;  %v1739_v49 = vshll.u32 %v7226_v54, %v1733_v63 }
 0x161   : > { %v1571_v41 = vadd.s32 %v1570_v38, %v1566_v30  ;;  %v1742_v22 = vshll.u32 %v7233_v59, %v1733_v63  ;;  %v1745_v20 = vshll.u32 %v7217_v62, %v1733_v63  ;;  %v1748_v53 = vshll.u32 %v7215_v3, %v1733_v63 }
 0x162   : > { %v1737_v14 = vshrl.u32 %v7226_v54, %v1734_v56  ;;  %v1740_v46 = vshrl.u32 %v7233_v59, %v1734_v56  ;;  %v3971_v40 = vadd.s32 4294967294, %v1683_v27  ;;  %v1743_v45 = vshrl.u32 %v7217_v62, %v1734_v56 }
 0x163   : > { %v1746_v43 = vshrl.u32 %v7215_v3, %v1734_v56  ;;  %v1749_v55 = vshrl.u32 %v7211_v6, %v1734_v56  ;;  %v1572_v42 = vadd.s32 536870912, %v1571_v41  ;;  %v1491_v5 = vxor.u32 2147483648, %v5598_v12 }
 0x164   : > { %vm3972_vm4 = vcmp.lt.s32.totalorder %v3971_v40, 0  ;;  %v1738_v51 = vor.u32 %v1737_v14, %v1736_v36  ;;  %v1741_v17 = vor.u32 %v1740_v46, %v1739_v49  ;;  %v1744_v61 = vor.u32 %v1743_v45, %v1742_v22 }
 0x165   : > { %v1686_v57 = vsel %vm3972_vm4, 0, %v3971_v40  ;;  %v1747_v48 = vor.u32 %v1746_v43, %v1745_v20  ;;  %v1750_v4 = vor.u32 %v1749_v55, %v1748_v53  ;;  %v5621_v7 = vshrl.u32 %v1572_v42, 30 }
 0x166   : > { %v1691_v0 = vsub.s32 4294967266, %v1686_v57  ;;  %v1735_v63 = vshrl.u32 %v7221_v52, %v1734_v56  ;;  %vm1751_vm6 = vcmp.lt.s32.totalorder %v5603_v1, 1  ;;  %v1767_v9 = vshll.u32 %v1727_v24, 8 }
 0x167   : > { %v1930_v19 = vand.u32 2139095040, %v5596_v11  ;;  %v1574_v30 = vshll.u32 %v5621_v7, 30  ;;  %vm1752_vm7 = vcmp.lt.s32.totalorder %v5603_v1, 2  ;;  %vm1754_vm8 = vcmp.lt.s32.totalorder %v5603_v1, 4 }
 0x168   : > { %v1692_v27 = vadd.s32 127, %v1691_v0  ;;  %v1756_v32 = vsel %vm1754_vm8, %v1744_v61, 2102212464  ;;  %v1759_v36 = vsel %vm1751_vm6, %v1738_v51, %v1741_v17  ;;  %v1760_v38 = vsel %vm1754_vm8, %v1747_v48, 920167782 }
 0x169   : > { %v1764_v14 = vsel %vm1754_vm8, %v1750_v4, 1326507024  ;;  %v1687_v56 = vsub.s32 32, %v1686_v57  ;;  %v5632_v49 = vsub.s32 %v1571_v41, %v1574_v30  ;;  %vm1753_vm9 = vcmp.lt.s32.totalorder %v5603_v1, 3 }
 0x16a   : > { %v1763_v24 = vsel %vm1751_vm6, %v1741_v17, %v1744_v61  ;;  %v1755_v46 = vsel %vm1751_vm6, %v1735_v63, %v1738_v51  ;;  %v1761_v40 = vsel %vm1753_vm9, %v1744_v61, %v1760_v38  ;;  %v1765_v45 = vsel %vm1753_vm9, %v1747_v48, %v1764_v14  ;;  %v1257_v63 = vpop.permute.xlu1 %1256 }
 0x16b   : > { %v1931_v43 = vshrl.u32 %v1930_v19, 23  ;;  %v1693_v22 = vshll.u32 %v1692_v27, 23  ;;  %v1577_v20 = vsub.s32 0, %v5632_v49  ;;  %v1757_v53 = vsel %vm1753_vm9, %v1741_v17, %v1756_v32 }
 0x16c   : > { %v1762_v55 = vsel %vm1752_vm7, %v1759_v36, %v1761_v40  ;;  %v1766_v41 = vsel %vm1752_vm7, %v1763_v24, %v1765_v45  ;;  %v1689_v30 = vshrl.u32 %v1671_v50, %v1687_v56  ;;  %v5654_v17 = vmul.f32 %v5398_v16, %v5410_v26 }
 0x16d   : > { %v5644_v42 = vmul.u32.u64.low %v1767_v9, %v1762_v55  ;;  %v5645_v4 = vmul.u32.u64.high %v1767_v9, %v1762_v55, %v5644_v42  ;;  %v3981_v0 = vadd.s32 4294967169, %v1931_v43  ;;  %v3966_v51 = vmin.u32 %v1577_v20, %v5632_v49 }
 0x16e   : > { %v5649_v61 = vmul.u32.u64.low %v1767_v9, %v1766_v41  ;;  %v5650_v48 = vmul.u32.u64.high %v1767_v9, %v1766_v41, %v5649_v61  ;;  %v1758_v19 = vsel %vm1752_vm7, %v1755_v46, %v1757_v53  ;;  %v7206_v27 = vand.u32 2147483647, %v5596_v11 }
 0x16f   : > { %v1937_v32 = vadd.s32 1, %v3981_v0  ;;  %v1492_v50 = vsel %vm1409_vm5, %v1491_v5, %v5598_v12  ;;  %v1688_v36 = vshll.u32 %v5576_v21, %v1686_v57  ;;  %v1694_v38 = vor.u32 4788187, %v1693_v22 }
 0x170   : > { %v1579_v14 = vclz %v3966_v51  ;;  %vm5665_vm10 = vcmp.le.f32.partialorder %v1407_v29, 0.7853982  ;;  %v5671_v26 = vmul.f32 %v5398_v16, %v5416_v33  ;;  %v1777_v1 = vadd.s32 1, %v5645_v4 }
 0x171   : > { %vm1938_vm11 = vcmp.gt.s32.totalorder %v1937_v32, 0  ;;  %v1690_v24 = vor.u32 %v1689_v30, %v1688_v36  ;;  %v1774_v12 = vmul.u32 %v1767_v9, %v1758_v19  ;;  %vm1776_vm12 = vc.u32 %v5650_v48, %v5644_v42  ;;  %v1345_v9 = vpop.permute.xlu1 %1344 }
 0x172   : > { %v3967_v46 = vadd.s32 4294967294, %v1579_v14  ;;  %v5679_v29 = vsel %vm5665_vm10, %v5408_v25, %v1492_v50  ;;  %v1778_v21 = vsel %vm1776_vm12, %v1777_v1, %v5645_v4  ;;  %v1934_v33 = vand.u32 8388607, %v7206_v27 }
 0x173   : > { %v1939_v57 = vsel %vm1938_vm11, %v1937_v32, 0  ;;  %v1695_v5 = vand.u32 2147483647, %v1694_v38  ;;  %v1779_v40 = vadd.s32 %v1778_v21, %v1774_v12  ;;  %v1302_v45 = vmul.f32 %v5398_v16, %v1257_v63  ;;  %v1357_v21 = vpop.permute.xlu0 %1356 }
 0x174   : > { %vm3968_vm13 = vcmp.lt.s32.totalorder %v3967_v46, 0  ;;  %v5687_v43 = vmul.f32 %v5398_v16, %v5423_v39  ;;  %v1218_v20 = vmul.f32 %v5401_v18, %v1165_v28  ;;  %v1941_v53 = vand.u32 31, %v1939_v57 }
 0x175   : > { %v1582_v22 = vsel %vm3968_vm13, 0, %v3967_v46  ;;  %4591 = vcosq.f32 %v5679_v29  ;;  %v1697_v55 = vcvt.s32.f32 %v1690_v24  ;;  %v1567_v41 = vadd.s32 %v5585_v2, %v5582_v60  ;;  %v5718_v58 = vpop.permute.xlu1 %1169 }
 0x176   : > { %v1587_v4 = vsub.s32 4294967266, %v1582_v22  ;;  %v1780_v0 = vadd.s32 536870912, %v1779_v40  ;;  %v1935_v30 = vor.u32 8388608, %v1934_v33  ;;  %v1942_v51 = vsub.s32 32, %v1941_v53 }
 0x177   : > { %v5694_v61 = vadd.f32 %v1345_v9, %v5420_v35  ;;  %v5696_v63 = vmul.f32 %v1697_v55, %v1695_v5  ;;  %v1583_v39 = vsub.s32 32, %v1582_v22  ;;  %v1318_v32 = vadd.f32 %v1302_v45, %v1218_v20 }
 0x178   : > { %v1588_v19 = vadd.s32 127, %v1587_v4  ;;  %v5698_v28 = vshrl.u32 %v1780_v0, 30  ;;  %v1944_v50 = vshll.u32 %v7221_v52, %v1941_v53  ;;  %v1945_v36 = vshrl.u32 %v7226_v54, %v1942_v51 }
 0x179   : > { %v1948_v60 = vshrl.u32 %v7233_v59, %v1942_v51  ;;  %v1947_v38 = vshll.u32 %v7226_v54, %v1941_v53  ;;  %v1950_v14 = vshll.u32 %v7233_v59, %v1941_v53  ;;  %v1951_v35 = vshrl.u32 %v7217_v62, %v1942_v51 }
 0x17a   : > { %7318 = vst [vmem:[#allocation25_spill] sm:$0xff] %v5698_v28  ;;  %v1589_v2 = vshll.u32 %v1588_v19, 23  ;;  %v1782_v1 = vshll.u32 %v5698_v28, 30  ;;  %v1940_v24 = vshrl.u32 %v1939_v57, 5  ;;  %v1953_v46 = vshll.u32 %v7217_v62, %v1941_v53 }
 0x17b   : > { %v1954_v12 = vshrl.u32 %v7215_v3, %v1942_v51  ;;  %v1946_v33 = vor.u32 %v1945_v36, %v1944_v50  ;;  %v1949_v5 = vor.u32 %v1948_v60, %v1947_v38  ;;  %v1952_v45 = vor.u32 %v1951_v35, %v1950_v14 }
 0x17c   : > { %v5709_v9 = vshll.u32 %v1935_v30, 8  ;;  %v5711_v20 = vsub.s32 %v1779_v40, %v1782_v1  ;;  %v1956_v4 = vshll.u32 %v7215_v3, %v1941_v53  ;;  %v1957_v0 = vshrl.u32 %v7211_v6, %v1942_v51 }
 0x17d   : > { %v1955_v55 = vor.u32 %v1954_v12, %v1953_v46  ;;  %v1584_v19 = vshll.u32 %v5632_v49, %v1582_v22  ;;  %v1585_v57 = vshrl.u32 %v1567_v41, %v1583_v39  ;;  %v1590_v27 = vor.u32 4788187, %v1589_v2 }
 0x17e   : > { %v5716_v23 = vadd.f32 %v1357_v21, %v1318_v32  ;;  %v1785_v50 = vsub.s32 0, %v5711_v20  ;;  %v1958_v36 = vor.u32 %v1957_v0, %v1956_v4  ;;  %vm1959_vm14 = vcmp.lt.s32.totalorder %v1940_v24, 1  ;;  %v1175_v0 = vpop.permute.xlu1 %1174 }
 0x17f   : > { %vm1962_vm15 = vcmp.lt.s32.totalorder %v1940_v24, 4  ;;  %v5721_v40 = vpop.eup %4591  ;;  %vm1960_vm0 = vcmp.lt.s32.totalorder %v1940_v24, 2  ;;  %vm1961_vm1 = vcmp.lt.s32.totalorder %v1940_v24, 3  ;;  %v1967_v53 = vsel %vm1959_vm14, %v1946_v33, %v1949_v5 }
 0x180   : > { %7319 = vst [vmem:[#allocation26_spill] sm:$0xff] %v5716_v23  ;;  %v1968_v30 = vsel %vm1962_vm15, %v1955_v55, 920167782  ;;  %v3974_v49 = vmin.u32 %v1785_v50, %v5711_v20  ;;  %v1964_v22 = vsel %vm1962_vm15, %v1952_v45, 2102212464  ;;  %v1971_v39 = vsel %vm1959_vm14, %v1949_v5, %v1952_v45 }
 0x181   : > { %v1969_v41 = vsel %vm1961_vm1, %v1952_v45, %v1968_v30  ;;  %vm7275_vm2 = vcmp.lt.s32.totalorder %v5445_v15, 0  ;;  %v1586_v32 = vor.u32 %v1585_v57, %v1584_v19  ;;  %v1943_v60 = vshrl.u32 %v7221_v52, %v1942_v51 }
 0x182   : > { %v1970_v2 = vsel %vm1960_vm0, %v1967_v53, %v1969_v41  ;;  %v1972_v38 = vsel %vm1962_vm15, %v1958_v36, 1326507024  ;;  %v1787_v14 = vclz %v3974_v49  ;;  %v1591_v12 = vand.u32 2147483647, %v1590_v27 }
 0x183   : > { %v1973_v35 = vsel %vm1961_vm1, %v1955_v55, %v1972_v38  ;;  %v5732_v1 = vmul.u32.u64.low %v5709_v9, %v1970_v2  ;;  %v5733_v46 = vmul.u32.u64.high %v5709_v9, %v1970_v2, %v5732_v1  ;;  %v1963_v21 = vsel %vm1959_vm14, %v1943_v60, %v1946_v33  ;;  %v1265_v38 = vpop.permute.xlu1 %1264 }
 0x184   : > { %v1965_v45 = vsel %vm1961_vm1, %v1949_v5, %v1964_v22  ;;  %v1974_v4 = vsel %vm1960_vm0, %v1971_v39, %v1973_v35  ;;  %v3975_v19 = vadd.s32 4294967294, %v1787_v14  ;;  %v7210_v50 = vand.u32 2147483647, %v5716_v23 }
 0x185   : > { %v5739_v51 = vmul.u32.u64.low %v5709_v9, %v1974_v4  ;;  %v5740_v57 = vmul.u32.u64.high %v5709_v9, %v1974_v4, %v5739_v51  ;;  %4593 = vsinq.f32 %v5679_v29  ;;  %vm5746_vm3 = vcmp.le.f32.partialorder %v1615_v37, 0.7853982 }
 0x186   : > { %v7320_v27 = vmov 0  ;;  %v1593_v33 = vcvt.s32.f32 %v1586_v32  ;;  %v5752_v5 = vmul.f32 %v5401_v18, %v5610_v34  ;;  %v2138_v55 = vand.u32 2139095040, %v5716_v23 }
 0x187   : > { %v7321_v27 = vsel %vm5746_vm3, 4294967295, %v7320_v27  ;;  %v1699_v36 = vxor.u32 2147483648, %v5696_v63  ;;  %vm7276_vm4 = vcmp.lt.s32.totalorder %v5462_v44, 0  ;;  %vm3976_vm6 = vcmp.lt.s32.totalorder %v3975_v19, 0 }
 0x188   : > { %7322 = vst [vmem:[#allocation27_spill] sm:$0xff] %v7321_v27  ;;  %v1966_v29 = vsel %vm1960_vm0, %v1963_v21, %v1965_v45  ;;  %v1985_v53 = vadd.s32 1, %v5733_v46  ;;  %v1594_v37 = vmul.f32 %v1593_v33, %v1591_v12  ;;  %v1790_v30 = vsel %vm3976_vm6, 0, %v3975_v19 }
 0x189   : > { %v2139_v49 = vshrl.u32 %v2138_v55, 23  ;;  %v1826_v22 = vand.u32 2139095040, %v5694_v61  ;;  %v1791_v41 = vsub.s32 32, %v1790_v30  ;;  %v1795_v39 = vsub.s32 4294967266, %v1790_v30 }
 0x18a   : > { %v2142_v34 = vand.u32 8388607, %v7210_v50  ;;  %v7209_v32 = vand.u32 2147483647, %v5694_v61  ;;  %v1982_v60 = vmul.u32 %v5709_v9, %v1966_v29  ;;  %vm1984_vm7 = vc.u32 %v5740_v57, %v5732_v1 }
 0x18b   : > { %v3989_v24 = vadd.s32 4294967169, %v2139_v49  ;;  %v1827_v2 = vshrl.u32 %v1826_v22, 23  ;;  %v1700_v14 = vsel %vm7275_vm2, %v1699_v36, %v5696_v63  ;;  %v1775_v35 = vadd.s32 %v5644_v42, %v5650_v48 }
 0x18c   : > { %v1796_v12 = vadd.s32 127, %v1795_v39  ;;  %v1986_v21 = vsel %vm1984_vm7, %v1985_v53, %v5733_v46  ;;  %v1595_v45 = vxor.u32 2147483648, %v1594_v37  ;;  %v2143_v33 = vor.u32 8388608, %v2142_v34 }
 0x18d   : > { %v1987_v4 = vadd.s32 %v1986_v21, %v1982_v60  ;;  %v2145_v19 = vadd.s32 1, %v3989_v24  ;;  %v3977_v51 = vadd.s32 4294967169, %v1827_v2  ;;  %v1793_v9 = vshrl.u32 %v1775_v35, %v1791_v41 }
 0x18e   : > { %v5773_v55 = vand.u32 8388607, %v7209_v32  ;;  %v1304_v29 = vmul.f32 %v5398_v16, %v1265_v38  ;;  %v1797_v49 = vshll.u32 %v1796_v12, 23  ;;  %v1220_v42 = vmul.f32 %v5401_v18, %v1175_v0 }
 0x18f   : > { %v1988_v63 = vadd.s32 536870912, %v1987_v4  ;;  %vm2146_vm8 = vcmp.gt.s32.totalorder %v2145_v19, 0  ;;  %v5780_v48 = vsel %vm5746_vm3, %v5445_v15, %v1700_v14  ;;  %v1792_v46 = vshll.u32 %v5711_v20, %v1790_v30  ;;  %v5783_v22 = vpop.eup %4593 }
 0x190   : > { %v2147_v36 = vsel %vm2146_vm8, %v2145_v19, 0  ;;  %v1833_v53 = vadd.s32 1, %v3977_v51  ;;  %v5787_v41 = vsel %vm7276_vm4, %v1595_v45, %v1594_v37  ;;  %v5790_v16 = vadd.s32 %v5732_v1, %v5740_v57 }
 0x191   : > { %v5792_v39 = vshrl.u32 %v1988_v63, 30  ;;  %v2149_v18 = vand.u32 31, %v2147_v36  ;;  %v1794_v0 = vor.u32 %v1793_v9, %v1792_v46  ;;  %v5794_v34 = vshll.u32 %v2143_v33, 8 }
 0x192   : > { %v1831_v60 = vor.u32 8388608, %v5773_v55  ;;  %v1320_v20 = vadd.f32 %v1304_v29, %v1220_v42  ;;  %v1798_v30 = vor.u32 4788187, %v1797_v49  ;;  %v2148_v2 = vshrl.u32 %v2147_v36, 5 }
 0x193   : > { %7323 = vst [vmem:[#allocation28_spill] sm:$0xff] %v5792_v39  ;;  %v1990_v24 = vshll.u32 %v5792_v39, 30  ;;  %v2150_v38 = vsub.s32 32, %v2149_v18  ;;  %v2152_v37 = vshll.u32 %v7221_v52, %v2149_v18  ;;  %v2155_v14 = vshll.u32 %v7226_v54, %v2149_v18 }
 0x194   : > { %v2158_v1 = vshll.u32 %v7233_v59, %v2149_v18  ;;  %vm1834_vm9 = vcmp.gt.s32.totalorder %v1833_v53, 0  ;;  %v2161_v21 = vshll.u32 %v7217_v62, %v2149_v18  ;;  %v2164_v51 = vshll.u32 %v7215_v3, %v2149_v18 }
 0x195   : > { %v5801_v57 = vsub.s32 %v1987_v4, %v1990_v24  ;;  %v2153_v35 = vshrl.u32 %v7226_v54, %v2150_v38  ;;  %v2156_v12 = vshrl.u32 %v7233_v59, %v2150_v38  ;;  %v2159_v45 = vshrl.u32 %v7217_v62, %v2150_v38 }
 0x196   : > { %v2162_v19 = vshrl.u32 %v7215_v3, %v2150_v38  ;;  %v2165_v9 = vshrl.u32 %v7211_v6, %v2150_v38  ;;  %v1801_v33 = vcvt.s32.f32 %v1794_v0  ;;  %v1799_v49 = vand.u32 2147483647, %v1798_v30 }
 0x197   : > { %v1993_v55 = vsub.s32 0, %v5801_v57  ;;  %v2154_v29 = vor.u32 %v2153_v35, %v2152_v37  ;;  %v2157_v4 = vor.u32 %v2156_v12, %v2155_v14  ;;  %v2160_v63 = vor.u32 %v2159_v45, %v2158_v1 }
 0x198   : > { %v2163_v42 = vor.u32 %v2162_v19, %v2161_v21  ;;  %v2166_v46 = vor.u32 %v2165_v9, %v2164_v51  ;;  %v2151_v24 = vshrl.u32 %v7221_v52, %v2150_v38  ;;  %vm2167_vm11 = vcmp.lt.s32.totalorder %v2148_v2, 1  ;;  %v1365_v19 = vpop.permute.xlu0 %1364 }
 0x199   : > { %v3982_v36 = vmin.u32 %v1993_v55, %v5801_v57  ;;  %v1835_v32 = vsel %vm1834_vm9, %v1833_v53, 0  ;;  %vm2168_vm12 = vcmp.lt.s32.totalorder %v2148_v2, 2  ;;  %vm2169_vm13 = vcmp.lt.s32.totalorder %v2148_v2, 3 }
 0x19a   : > { %vm2170_vm14 = vcmp.lt.s32.totalorder %v2148_v2, 4  ;;  %v2175_v18 = vsel %vm2167_vm11, %v2154_v29, %v2157_v4  ;;  %v2171_v50 = vsel %vm2167_vm11, %v2151_v24, %v2154_v29  ;;  %v2179_v1 = vsel %vm2167_vm11, %v2157_v4, %v2160_v63 }
 0x19b   : > { %v1995_v0 = vclz %v3982_v36  ;;  %v2172_v6 = vsel %vm2170_vm14, %v2160_v63, 2102212464  ;;  %v2176_v37 = vsel %vm2170_vm14, %v2163_v42, 920167782  ;;  %v2180_v35 = vsel %vm2170_vm14, %v2166_v46, 1326507024 }
 0x19c   : > { %v2173_v14 = vsel %vm2169_vm13, %v2157_v4, %v2172_v6  ;;  %v2177_v30 = vsel %vm2169_vm13, %v2160_v63, %v2176_v37  ;;  %v5814_v12 = vmul.f32 %v1801_v33, %v1799_v49  ;;  %v2181_v45 = vsel %vm2169_vm13, %v2163_v42, %v2180_v35 }
 0x19d   : > { %v3983_v21 = vadd.s32 4294967294, %v1995_v0  ;;  %v2178_v38 = vsel %vm2168_vm12, %v2175_v18, %v2177_v30  ;;  %v2182_v53 = vsel %vm2168_vm12, %v2179_v1, %v2181_v45  ;;  %v5825_v6 = vadd.f32 %v5654_v17, %v5752_v5 }
 0x19e   : > { %v5819_v51 = vmul.u32.u64.low %v5794_v34, %v2178_v38  ;;  %v5820_v9 = vmul.u32.u64.high %v5794_v34, %v2178_v38, %v5819_v51  ;;  %v2174_v33 = vsel %vm2168_vm12, %v2171_v50, %v2173_v14  ;;  %v1837_v49 = vand.u32 31, %v1835_v32 }
 0x19f   : > { %vm3984_vm15 = vcmp.lt.s32.totalorder %v3983_v21, 0  ;;  %v5829_v55 = vmul.u32.u64.low %v5794_v34, %v2182_v53  ;;  %v5830_v29 = vmul.u32.u64.high %v5794_v34, %v2182_v53, %v5829_v55  ;;  %v5832_v63 = vshll.u32 %v1831_v60, 8 }
 0x1a0   : > { %v1998_v4 = vsel %vm3984_vm15, 0, %v3983_v21  ;;  %v5834_v42 = vadd.f32 %v1365_v19, %v1320_v20  ;;  %v1803_v46 = vxor.u32 2147483648, %v5814_v12  ;;  %v5837_v18 = vshrl.u32 %v1835_v32, 5 }
 0x1a1   : > { %v1999_v36 = vsub.s32 32, %v1998_v4  ;;  %v2003_v24 = vsub.s32 4294967266, %v1998_v4  ;;  %v2000_v17 = vshll.u32 %v5801_v57, %v1998_v4  ;;  %v2190_v50 = vmul.u32 %v5794_v34, %v2174_v33  ;;  %v1353_v33 = vpop.permute.xlu1 %1352 }
 0x1a2   : > { %7324 = vst [vmem:[#allocation29_spill] sm:$0xff] %v5834_v42  ;;  %v2193_v5 = vadd.s32 1, %v5820_v9  ;;  %v1838_v2 = vsub.s32 32, %v1837_v49  ;;  %vm2192_vm0 = vc.u32 %v5830_v29, %v5819_v51  ;;  %v1840_v60 = vshll.u32 %v7221_v52, %v1837_v49 }
 0x1a3   : > { %v2001_v0 = vshrl.u32 %v5790_v16, %v1999_v36  ;;  %v2004_v37 = vadd.s32 127, %v2003_v24  ;;  %v1843_v14 = vshll.u32 %v7226_v54, %v1837_v49  ;;  %vm1855_vm1 = vcmp.lt.s32.totalorder %v5837_v18, 1 }
 0x1a4   : > { %v2194_v20 = vsel %vm2192_vm0, %v2193_v5, %v5820_v9  ;;  %v1841_v32 = vshrl.u32 %v7226_v54, %v1838_v2  ;;  %v1844_v57 = vshrl.u32 %v7233_v59, %v1838_v2  ;;  %v1846_v21 = vshll.u32 %v7233_v59, %v1837_v49 }
 0x1a5   : > { %v2002_v34 = vor.u32 %v2001_v0, %v2000_v17  ;;  %v2005_v30 = vshll.u32 %v2004_v37, 23  ;;  %v2195_v1 = vadd.s32 %v2194_v20, %v2190_v50  ;;  %v1847_v38 = vshrl.u32 %v7217_v62, %v1838_v2 }
 0x1a6   : > { %v1842_v16 = vor.u32 %v1841_v32, %v1840_v60  ;;  %v1845_v35 = vor.u32 %v1844_v57, %v1843_v14  ;;  %v1849_v53 = vshll.u32 %v7217_v62, %v1837_v49  ;;  %v1850_v9 = vshrl.u32 %v7215_v3, %v1838_v2 }
 0x1a7   : > { %v2006_v45 = vor.u32 4788187, %v2005_v30  ;;  %v2196_v19 = vadd.s32 536870912, %v2195_v1  ;;  %v7325_v55 = vand.u32 2147483647, %v5462_v44  ;;  %v1839_v36 = vshrl.u32 %v7221_v52, %v1838_v2 }
 0x1a8   : > { %v1848_v24 = vor.u32 %v1847_v38, %v1846_v21  ;;  %v1852_v17 = vshll.u32 %v7215_v3, %v1837_v49  ;;  %v7328_v50 = vmov 1326507024   ;;  %vm7259_vm7 = vcmp.lt.s32.totalorder %v5484_v10, 0 }
 0x1a9   : > { %vm5857_vm6 = vcmp.le.f32.partialorder %v7325_v55, 0.7853982  ;;  %v1853_v5 = vshrl.u32 %v7328_v50, %v1838_v2  ;;  %vm7257_vm8 = vcmp.lt.s32.totalorder %v5596_v11, 0  ;;  %v2007_v0 = vand.u32 2147483647, %v2006_v45 }
 0x1aa   : > { %v2009_v37 = vcvt.s32.f32 %v2002_v34  ;;  %v5866_v60 = vshrl.u32 %v2196_v19, 30  ;;  %v1851_v20 = vor.u32 %v1850_v9, %v1849_v53  ;;  %vm1857_vm9 = vcmp.lt.s32.totalorder %v5837_v18, 3 }
 0x1ab   : > { %v1854_v32 = vor.u32 %v1853_v5, %v1852_v17  ;;  %vm1858_vm11 = vcmp.lt.s32.totalorder %v5837_v18, 4  ;;  %v1863_v14 = vsel %vm1855_vm1, %v1842_v16, %v1845_v35  ;;  %v7330_v21 = vand.u32 2147483647, %v5484_v10 }
 0x1ac   : > { %7329 = vst [vmem:[#allocation30_spill] sm:$0xff] %v5866_v60  ;;  %v2010_v49 = vmul.f32 %v2009_v37, %v2007_v0  ;;  %v2198_v2 = vshll.u32 %v5866_v60, 30  ;;  %v1860_v57 = vsel %vm1858_vm11, %v1848_v24, 2102212464  ;;  %v1864_v30 = vsel %vm1858_vm11, %v1851_v20, 920167782 }
 0x1ad   : > { %vm5875_vm12 = vcmp.le.f32.partialorder %v7330_v21, 0.7853982  ;;  %v7331_v34 = vmov 0  ;;  %vm1856_vm13 = vcmp.lt.s32.totalorder %v5837_v18, 2  ;;  %v1865_v38 = vsel %vm1857_vm9, %v1848_v24, %v1864_v30 }
 0x1ae   : > { %v7332_v34 = vsel %vm5875_vm12, 4294967295, %v7331_v34  ;;  %v1867_v45 = vsel %vm1855_vm1, %v1845_v35, %v1848_v24  ;;  %v1868_v19 = vsel %vm1858_vm11, %v1854_v32, 1326507024  ;;  %v7334_v53 = vand.u32 2147483647, %v5596_v11  ;;  %v5898_v24 = vpop.permute.xlu1 %1179 }
 0x1af   : > { %7333 = vst [vmem:[#allocation31_spill] sm:$0xff] %v7332_v34  ;;  %v7335_v9 = vmov 0  ;;  %v5890_v55 = vsub.s32 %v2195_v1, %v2198_v2  ;;  %v1859_v17 = vsel %vm1855_vm1, %v1839_v36, %v1842_v16  ;;  %v1861_v5 = vsel %vm1857_vm9, %v1845_v35, %v1860_v57 }
 0x1b0   : > { %vm5886_vm14 = vcmp.le.f32.partialorder %v7334_v53, 0.7853982  ;;  %v1866_v0 = vsel %vm1856_vm13, %v1863_v14, %v1865_v38  ;;  %v2011_v37 = vxor.u32 2147483648, %v2010_v49  ;;  %v1869_v32 = vsel %vm1857_vm9, %v1851_v20, %v1868_v19  ;;  %v5919_v20 = vld [vmem:[%s5392_s21] ss:$0 sm:$0xff] }
 0x1b1   : > { %v7336_v9 = vsel %vm5886_vm14, 4294967295, %v7335_v9  ;;  %v5903_v30 = vmul.u32.u64.low %v5832_v63, %v1866_v0  ;;  %v5904_v21 = vmul.u32.u64.high %v5832_v63, %v1866_v0, %v5903_v30  ;;  %v2201_v1 = vsub.s32 0, %v5890_v55 }
 0x1b2   : > { %7337 = vst [vmem:[#allocation32_spill] sm:$0xff] %v7336_v9  ;;  %v1870_v16 = vsel %vm1856_vm13, %v1867_v45, %v1869_v32  ;;  %v7214_v35 = vand.u32 2147483647, %v5834_v42  ;;  %v5912_v36 = vadd.f32 %v1353_v33, %v5825_v6  ;;  %v5923_v57 = vmul.f32 %v5919_v20, %v5718_v58 }
 0x1b3   : > { %v5915_v14 = vmul.u32.u64.low %v5832_v63, %v1870_v16  ;;  %v5916_v2 = vmul.u32.u64.high %v5832_v63, %v1870_v16, %v5915_v14  ;;  %v2346_v38 = vand.u32 2139095040, %v5834_v42  ;;  %4595 = vcosq.f32 %v5780_v48 }
 0x1b4   : > { %v1599_v6 = vsel %vm5857_vm6, %v5462_v44, %v5787_v41  ;;  %v3990_v33 = vmin.u32 %v2201_v1, %v5890_v55  ;;  %v1862_v45 = vsel %vm1856_vm13, %v1859_v17, %v1861_v5  ;;  %v1804_v58 = vsel %vm7259_vm7, %v1803_v46, %v5814_v12  ;;  %v5946_v17 = vpop.permute.xlu1 %1184 }
 0x1b5   : > { %v2012_v19 = vsel %vm7257_vm8, %v2011_v37, %v2010_v49  ;;  %v1881_v53 = vadd.s32 1, %v5904_v21  ;;  %v2347_v0 = vshrl.u32 %v2346_v38, 23  ;;  %v2350_v41 = vand.u32 8388607, %v7214_v35  ;;  %v5978_v35 = vld [vmem:[%s5392_s21 + $0x1] ss:$0 sm:$0xff] }
 0x1b6   : > { %v2203_v32 = vclz %v3990_v33  ;;  %v7213_v1 = vand.u32 2147483647, %v5912_v36  ;;  %v2034_v18 = vand.u32 2139095040, %v5912_v36  ;;  %4597 = vsinq.f32 %v5780_v48 }
 0x1b7   : > { %v1878_v12 = vmul.u32 %v5832_v63, %v1862_v45  ;;  %vm1880_vm15 = vc.u32 %v5916_v2, %v5903_v30  ;;  %v3997_v46 = vadd.s32 4294967169, %v2347_v0  ;;  %4599 = vcosq.f32 %v1599_v6 }
 0x1b8   : > { %v1807_v49 = vsel %vm5875_vm12, %v5484_v10, %v1804_v58  ;;  %v3991_v5 = vadd.s32 4294967294, %v2203_v32  ;;  %v1882_v37 = vsel %vm1880_vm15, %v1881_v53, %v5904_v21  ;;  %4601 = vsinq.f32 %v1599_v6 }
 0x1b9   : > { %v5959_v16 = vsel %vm5886_vm14, %v5596_v11, %v2012_v19  ;;  %v1883_v48 = vadd.s32 %v1882_v37, %v1878_v12  ;;  %v2353_v63 = vadd.s32 1, %v3997_v46  ;;  %v2351_v14 = vor.u32 8388608, %v2350_v41  ;;  %v1273_v19 = vpop.permute.xlu1 %1272 }
 0x1ba   : > { %vm3992_vm0 = vcmp.lt.s32.totalorder %v3991_v5, 0  ;;  %v2035_v38 = vshrl.u32 %v2034_v18, 23  ;;  %v5963_v33 = vand.u32 8388607, %v7213_v1  ;;  %4603 = vcosq.f32 %v1807_v49 }
 0x1bb   : > { %v2206_v45 = vsel %vm3992_vm0, 0, %v3991_v5  ;;  %v1884_v58 = vadd.s32 536870912, %v1883_v48  ;;  %vm2354_vm1 = vcmp.gt.s32.totalorder %v2353_v63, 0  ;;  %4605 = vsinq.f32 %v1807_v49 }
 0x1bc   : > { %v2207_v21 = vsub.s32 32, %v2206_v45  ;;  %v2211_v6 = vsub.s32 4294967266, %v2206_v45  ;;  %v2355_v53 = vsel %vm2354_vm1, %v2353_v63, 0  ;;  %4607 = vcosq.f32 %v5959_v16 }
 0x1bd   : > { %v2191_v0 = vadd.s32 %v5819_v51, %v5830_v29  ;;  %v5968_v32 = vshrl.u32 %v1884_v58, 30  ;;  %v2357_v41 = vand.u32 31, %v2355_v53  ;;  %v5970_v18 = vpop.eup %4595  ;;  %v5972_v46 = vshll.u32 %v2351_v14, 8 }
 0x1be   : > { %7339 = vst [vmem:[#allocation34_spill] sm:$0xff] %v5970_v18  ;;  %v2212_v12 = vadd.s32 127, %v2211_v6  ;;  %v3985_v5 = vadd.s32 4294967169, %v2035_v38  ;;  %v2208_v37 = vshll.u32 %v5890_v55, %v2206_v45  ;;  %v5981_v51 = vmul.f32 %v5978_v35, %v1273_v19 }
 0x1bf   : > { %7338 = vst [vmem:[#allocation33_spill] sm:$0xff] %v5968_v32  ;;  %v1886_v63 = vshll.u32 %v5968_v32, 30  ;;  %v2358_v1 = vsub.s32 32, %v2357_v41  ;;  %v2209_v29 = vshrl.u32 %v2191_v0, %v2207_v21  ;;  %v2356_v3 = vshrl.u32 %v2355_v53, 5 }
 0x1c0   : > { %v2213_v58 = vshll.u32 %v2212_v12, 23  ;;  %v2360_v6 = vshll.u32 %v7221_v52, %v2357_v41  ;;  %v5984_v14 = vpop.eup %4597  ;;  %v2363_v55 = vshll.u32 %v7226_v54, %v2357_v41  ;;  %v2366_v19 = vshll.u32 %v7233_v59, %v2357_v41 }
 0x1c1   : > { %7340 = vst [vmem:[#allocation35_spill] sm:$0xff] %v5984_v14  ;;  %v5986_v38 = vsub.s32 %v1883_v48, %v1886_v63  ;;  %v2361_v49 = vshrl.u32 %v7226_v54, %v2358_v1  ;;  %v2364_v45 = vshrl.u32 %v7233_v59, %v2358_v1  ;;  %v5991_v62 = vpop.eup %4599  ;;  %v7342_v60 = vmov 2102212464  }
 0x1c2   : > { %7341 = vst [vmem:[#allocation36_spill] sm:$0xff] %v5991_v62  ;;  %v2367_v21 = vshrl.u32 %v7342_v60, %v2358_v1  ;;  %v2369_v53 = vshll.u32 %v7342_v60, %v2357_v41  ;;  %v7343_v0 = vmov 920167782   ;;  %v5997_v52 = vpop.eup %4601  ;;  %v2214_v48 = vor.u32 4788187, %v2213_v58 }
 0x1c3   : > { %v2370_v12 = vshrl.u32 %v7343_v0, %v2358_v1  ;;  %7344 = vst [vmem:[#allocation37_spill] sm:$0xff] %v5997_v52  ;;  %v1889_v63 = vsub.s32 0, %v5986_v38  ;;  %v2362_v9 = vor.u32 %v2361_v49, %v2360_v6  ;;  %v2365_v11 = vor.u32 %v2364_v45, %v2363_v55 }
 0x1c4   : > { %v2368_v54 = vor.u32 %v2367_v21, %v2366_v19  ;;  %v2372_v32 = vshll.u32 %v7343_v0, %v2357_v41  ;;  %v2373_v34 = vshrl.u32 %v7328_v50, %v2358_v1  ;;  %v6002_v59 = vpop.eup %4603  ;;  %v2210_v10 = vor.u32 %v2209_v29, %v2208_v37 }
 0x1c5   : > { %v2371_v39 = vor.u32 %v2370_v12, %v2369_v53  ;;  %7345 = vst [vmem:[#allocation38_spill] sm:$0xff] %v6002_v59  ;;  %v3978_v18 = vmin.u32 %v1889_v63, %v5986_v38  ;;  %v7346_v14 = vmov 683565275   ;;  %v2041_v62 = vadd.s32 1, %v3985_v5  ;;  %v6006_v52 = vpop.eup %4605 }
 0x1c6   : > { %v2359_v28 = vshrl.u32 %v7346_v14, %v2358_v1  ;;  %7347 = vst [vmem:[#allocation39_spill] sm:$0xff] %v6006_v52  ;;  %v2374_v58 = vor.u32 %v2373_v34, %v2372_v32  ;;  %vm2375_vm9 = vcmp.lt.s32.totalorder %v2356_v3, 1  ;;  %vm2377_vm11 = vcmp.lt.s32.totalorder %v2356_v3, 3  ;;  %v6008_v49 = vpop.eup %4607 }
 0x1c7   : > { %vm2378_vm13 = vcmp.lt.s32.totalorder %v2356_v3, 4  ;;  %7348 = vst [vmem:[#allocation40_spill] sm:$0xff] %v6008_v49  ;;  %v1891_v6 = vclz %v3978_v18  ;;  %v2383_v55 = vsel %vm2375_vm9, %v2362_v9, %v2365_v11  ;;  %v2215_v19 = vand.u32 2147483647, %v2214_v48 }
 0x1c8   : > { %v2380_v41 = vsel %vm2378_vm13, %v2368_v54, 2102212464  ;;  %v2384_v45 = vsel %vm2378_vm13, %v2371_v39, 920167782  ;;  %vm2376_vm15 = vcmp.lt.s32.totalorder %v2356_v3, 2  ;;  %v2387_v29 = vsel %vm2375_vm9, %v2365_v11, %v2368_v54 }
 0x1c9   : > { %v2385_v37 = vsel %vm2377_vm11, %v2368_v54, %v2384_v45  ;;  %v3979_v21 = vadd.s32 4294967294, %v1891_v6  ;;  %v2379_v1 = vsel %vm2375_vm9, %v2359_v28, %v2362_v9  ;;  %v2388_v53 = vsel %vm2378_vm13, %v2374_v58, 1326507024 }
 0x1ca   : > { %v2386_v5 = vsel %vm2376_vm15, %v2383_v55, %v2385_v37  ;;  %v2381_v34 = vsel %vm2377_vm11, %v2365_v11, %v2380_v41  ;;  %v2389_v32 = vsel %vm2377_vm11, %v2371_v39, %v2388_v53  ;;  %v2217_v63 = vcvt.s32.f32 %v2210_v10 }
 0x1cb   : > { %v6015_v12 = vmul.u32.u64.low %v5972_v46, %v2386_v5  ;;  %v6016_v18 = vmul.u32.u64.high %v5972_v46, %v2386_v5, %v6015_v12  ;;  %v1879_v48 = vadd.s32 %v5903_v30, %v5916_v2  ;;  %vm3980_vm0 = vcmp.lt.s32.totalorder %v3979_v21, 0 }
 0x1cc   : > { %v2390_v54 = vsel %vm2376_vm15, %v2387_v29, %v2389_v32  ;;  %v1894_v28 = vsel %vm3980_vm0, 0, %v3979_v21  ;;  %v1222_v11 = vmul.f32 %v5919_v20, %v5946_v17  ;;  %v2218_v39 = vmul.f32 %v2217_v63, %v2215_v19 }
 0x1cd   : > { %v6023_v9 = vmul.u32.u64.low %v5972_v46, %v2390_v54  ;;  %v6024_v58 = vmul.u32.u64.high %v5972_v46, %v2390_v54, %v6023_v9  ;;  %v1895_v6 = vsub.s32 32, %v1894_v28  ;;  %v1899_v41 = vsub.s32 4294967266, %v1894_v28 }
 0x1ce   : > { %v2382_v55 = vsel %vm2376_vm15, %v2379_v1, %v2381_v34  ;;  %vm7247_vm1 = vcmp.lt.s32.totalorder %v5716_v23, 0  ;;  %v2401_v10 = vadd.s32 1, %v6016_v18  ;;  %vm2042_vm9 = vcmp.gt.s32.totalorder %v2041_v62, 0 }
 0x1cf   : > { %v7349_v30 = vor.u32 8388608, %v5963_v33  ;;  %v1322_v45 = vadd.f32 %v5981_v51, %v1222_v11  ;;  %v1896_v37 = vshll.u32 %v5986_v38, %v1894_v28  ;;  %v1897_v29 = vshrl.u32 %v1879_v48, %v1895_v6 }
 0x1d0   : > { %v1900_v17 = vadd.s32 127, %v1899_v41  ;;  %v2043_v19 = vsel %vm2042_vm9, %v2041_v62, 0  ;;  %v2398_v21 = vmul.u32 %v5972_v46, %v2382_v55  ;;  %vm2400_vm11 = vc.u32 %v6024_v58, %v6015_v12  ;;  %v1373_v41 = vpop.permute.xlu0 %1372 }
 0x1d1   : > { %v6033_v2 = vshll.u32 %v7349_v30, 8  ;;  %v2045_v3 = vand.u32 31, %v2043_v19  ;;  %v1319_v1 = vadd.f32 %v5671_v26, %v5923_v57  ;;  %v2219_v5 = vxor.u32 2147483648, %v2218_v39 }
 0x1d2   : > { %v1898_v33 = vor.u32 %v1897_v29, %v1896_v37  ;;  %v1901_v53 = vshll.u32 %v1900_v17, 23  ;;  %v2402_v34 = vsel %vm2400_vm11, %v2401_v10, %v6016_v18  ;;  %v2044_v32 = vshrl.u32 %v2043_v19, 5 }
 0x1d3   : > { %v2403_v51 = vadd.s32 %v2402_v34, %v2398_v21  ;;  %v2046_v38 = vsub.s32 32, %v2045_v3  ;;  %v2048_v63 = vshll.u32 %v7346_v14, %v2045_v3  ;;  %v7350_v46 = vmov 2475754826  }
 0x1d4   : > { %v1902_v62 = vor.u32 4788187, %v1901_v53  ;;  %v1905_v48 = vcvt.s32.f32 %v1898_v33  ;;  %v2051_v54 = vshll.u32 %v7350_v46, %v2045_v3  ;;  %v7351_v28 = vmov 2131351028   ;;  %v1361_v53 = vpop.permute.xlu1 %1360 }
 0x1d5   : > { %v2054_v9 = vshll.u32 %v7351_v28, %v2045_v3  ;;  %v2404_v11 = vadd.s32 536870912, %v2403_v51  ;;  %v2049_v6 = vshrl.u32 %v7350_v46, %v2046_v38  ;;  %v2052_v26 = vshrl.u32 %v7351_v28, %v2046_v38 }
 0x1d6   : > { %v2057_v57 = vshll.u32 %v7342_v60, %v2045_v3  ;;  %v7352_v18 = vand.u32 2147483647, %v5716_v23  ;;  %v7353_v55 = vmov 0  ;;  %v1903_v10 = vand.u32 2147483647, %v1902_v62 }
 0x1d7   : > { %v2055_v30 = vshrl.u32 %v7342_v60, %v2046_v38  ;;  %v2058_v37 = vshrl.u32 %v7343_v0, %v2046_v38  ;;  %v2060_v29 = vshll.u32 %v7343_v0, %v2045_v3  ;;  %v6058_v17 = vshrl.u32 %v2404_v11, 30 }
 0x1d8   : > { %vm6051_vm13 = vcmp.le.f32.partialorder %v7352_v18, 0.7853982  ;;  %v2050_v19 = vor.u32 %v2049_v6, %v2048_v63  ;;  %v2053_v21 = vor.u32 %v2052_v26, %v2051_v54  ;;  %v2061_v33 = vshrl.u32 %v7328_v50, %v2046_v38 }
 0x1d9   : > { %v7354_v55 = vsel %vm6051_vm13, 4294967295, %v7353_v55  ;;  %7356 = vst [vmem:[#allocation42_spill] sm:$0xff] %v6058_v17  ;;  %v2220_v34 = vsel %vm7247_vm1, %v2219_v5, %v2218_v39  ;;  %v2056_v18 = vor.u32 %v2055_v30, %v2054_v9  ;;  %v2059_v49 = vor.u32 %v2058_v37, %v2057_v57  ;;  %v6082_v57 = vpop.permute.xlu1 %1189 }
 0x1da   : > { %7355 = vst [vmem:[#allocation41_spill] sm:$0xff] %v7354_v55  ;;  %v6063_v59 = vadd.f32 %v1373_v41, %v1322_v45  ;;  %v1906_v62 = vmul.f32 %v1905_v48, %v1903_v10  ;;  %v2406_v52 = vshll.u32 %v6058_v17, 30  ;;  %v2062_v27 = vor.u32 %v2061_v33, %v2060_v29 }
 0x1db   : > { %vm2063_vm15 = vcmp.lt.s32.totalorder %v2044_v32, 1  ;;  %v2047_v3 = vshrl.u32 %v7346_v14, %v2046_v38  ;;  %vm2066_vm0 = vcmp.lt.s32.totalorder %v2044_v32, 4  ;;  %v6068_v54 = vadd.f32 %v1361_v53, %v1319_v1 }
 0x1dc   : > { %v2071_v63 = vsel %vm2063_vm15, %v2050_v19, %v2053_v21  ;;  %v6070_v11 = vsub.s32 %v2403_v51, %v2406_v52  ;;  %vm2065_vm9 = vcmp.lt.s32.totalorder %v2044_v32, 3  ;;  %v2068_v39 = vsel %vm2066_vm0, %v2056_v18, 2102212464 }
 0x1dd   : > { %v2072_v5 = vsel %vm2066_vm0, %v2059_v49, 920167782  ;;  %v7357_v45 = vand.u32 2147483647, %v5694_v61  ;;  %vm2064_vm1 = vcmp.lt.s32.totalorder %v2044_v32, 2  ;;  %v2075_v38 = vsel %vm2063_vm15, %v2053_v21, %v2056_v18  ;;  %v1195_v32 = vpop.permute.xlu1 %1194 }
 0x1de   : > { %v2073_v9 = vsel %vm2065_vm9, %v2056_v18, %v2072_v5  ;;  %v2076_v6 = vsel %vm2066_vm0, %v2062_v27, 1326507024  ;;  %v1907_v26 = vxor.u32 2147483648, %v1906_v62  ;;  %v2409_v1 = vsub.s32 0, %v6070_v11 }
 0x1df   : > { %vm6074_vm11 = vcmp.le.f32.partialorder %v7357_v45, 0.7853982  ;;  %v2067_v52 = vsel %vm2063_vm15, %v2047_v3, %v2050_v19  ;;  %v2074_v51 = vsel %vm2064_vm1, %v2071_v63, %v2073_v9  ;;  %v2069_v41 = vsel %vm2065_vm9, %v2053_v21, %v2068_v39 }
 0x1e0   : > { %v2077_v10 = vsel %vm2065_vm9, %v2059_v49, %v2076_v6  ;;  %v6085_v30 = vmul.u32.u64.low %v6033_v2, %v2074_v51  ;;  %v6086_v37 = vmul.u32.u64.high %v6033_v2, %v2074_v51, %v6085_v30  ;;  %v2223_v29 = vsel %vm6051_vm13, %v5716_v23, %v2220_v34 }
 0x1e1   : > { %v3998_v27 = vmin.u32 %v2409_v1, %v6070_v11  ;;  %v2078_v33 = vsel %vm2064_vm1, %v2075_v38, %v2077_v10  ;;  %v7249_v19 = vand.u32 2147483647, %v6063_v59  ;;  %4609 = vsinq.f32 %v5959_v16 }
 0x1e2   : > { %vm7258_vm15 = vcmp.lt.s32.totalorder %v5694_v61, 0  ;;  %v6097_v49 = vmul.u32.u64.low %v6033_v2, %v2078_v33  ;;  %v6098_v21 = vmul.u32.u64.high %v6033_v2, %v2078_v33, %v6097_v49  ;;  %v2070_v18 = vsel %vm2064_vm1, %v2067_v52, %v2069_v41 }
 0x1e3   : > { %v2411_v53 = vclz %v3998_v27  ;;  %v2554_v3 = vand.u32 2139095040, %v6063_v59  ;;  %v7248_v34 = vand.u32 2147483647, %v6068_v54  ;;  %4611 = vcosq.f32 %v2223_v29 }
 0x1e4   : > { %v1908_v63 = vsel %vm7258_vm15, %v1907_v26, %v1906_v62  ;;  %v2089_v39 = vadd.s32 1, %v6086_v37  ;;  %v2242_v16 = vand.u32 2139095040, %v6068_v54  ;;  %4613 = vsinq.f32 %v2223_v29 }
 0x1e5   : > { %v3999_v5 = vadd.s32 4294967294, %v2411_v53  ;;  %v2555_v45 = vshrl.u32 %v2554_v3, 23  ;;  %v2558_v9 = vand.u32 8388607, %v7249_v19  ;;  %v2086_v38 = vmul.u32 %v6033_v2, %v2070_v18 }
 0x1e6   : > { %vm2088_vm1 = vc.u32 %v6098_v21, %v6085_v30  ;;  %v2243_v6 = vshrl.u32 %v2242_v16, 23  ;;  %v2246_v1 = vand.u32 8388607, %v7248_v34  ;;  %v6116_v62 = vsel %vm6074_vm11, %v5694_v61, %v1908_v63  ;;  %v1281_v16 = vpop.permute.xlu1 %1280 }
 0x1e7   : > { %vm4000_vm0 = vcmp.lt.s32.totalorder %v3999_v5, 0  ;;  %v2090_v26 = vsel %vm2088_vm1, %v2089_v39, %v6086_v37  ;;  %v4005_v52 = vadd.s32 4294967169, %v2555_v45  ;;  %v2399_v51 = vadd.s32 %v6015_v12, %v6024_v58 }
 0x1e8   : > { %v2414_v41 = vsel %vm4000_vm0, 0, %v3999_v5  ;;  %v2091_v2 = vadd.s32 %v2090_v26, %v2086_v38  ;;  %v3993_v10 = vadd.s32 4294967169, %v2243_v6  ;;  %v2559_v33 = vor.u32 8388608, %v2558_v9 }
 0x1e9   : > { %v2415_v29 = vsub.s32 32, %v2414_v41  ;;  %v2419_v27 = vsub.s32 4294967266, %v2414_v41  ;;  %v2561_v49 = vadd.s32 1, %v4005_v52  ;;  %4615 = vcosq.f32 %v6116_v62 }
 0x1ea   : > { %v2092_v53 = vadd.s32 536870912, %v2091_v2  ;;  %v1221_v18 = vmul.f32 %v5919_v20, %v5898_v24  ;;  %v2247_v3 = vor.u32 8388608, %v2246_v1  ;;  %v2249_v39 = vadd.s32 1, %v3993_v10 }
 0x1eb   : > { %v2417_v63 = vshrl.u32 %v2399_v51, %v2415_v29  ;;  %v2420_v37 = vadd.s32 127, %v2419_v27  ;;  %vm2562_vm9 = vcmp.gt.s32.totalorder %v2561_v49, 0  ;;  %v6124_v12 = vpop.eup %4609  ;;  %v6127_v58 = vadd.s32 %v6085_v30, %v6098_v21 }
 0x1ec   : > { %v6129_v5 = vshrl.u32 %v2092_v53, 30  ;;  %v2563_v45 = vsel %vm2562_vm9, %v2561_v49, 0  ;;  %v1224_v9 = vmul.f32 %v5919_v20, %v1195_v32  ;;  %v2416_v38 = vshll.u32 %v6070_v11, %v2414_v41 }
 0x1ed   : > { %v2421_v6 = vshll.u32 %v2420_v37, 23  ;;  %v2565_v24 = vand.u32 31, %v2563_v45  ;;  %v6133_v1 = vshll.u32 %v2559_v33, 8  ;;  %v6135_v26 = vpop.eup %4611  ;;  %v6138_v51 = vshll.u32 %v2247_v3, 8 }
 0x1ee   : > { %7360 = vst [vmem:[#allocation43_spill] sm:$0xff] %v6129_v5  ;;  %7361 = vst [vmem:[#allocation44_spill] sm:$0xff] %v6135_v26  ;;  %v2094_v52 = vshll.u32 %v6129_v5, 30  ;;  %v1308_v30 = vmul.f32 %v5978_v35, %v1281_v16  ;;  %v6142_v21 = vadd.f32 %v5687_v43, %v1221_v18  ;;  %v6144_v10 = vpop.eup %4613  ;;  %v2418_v32 = vor.u32 %v2417_v63, %v2416_v38 }
 0x1ef   : > { %7362 = vst [vmem:[#allocation45_spill] sm:$0xff] %v6144_v10  ;;  %v2422_v29 = vor.u32 4788187, %v2421_v6  ;;  %v2566_v11 = vsub.s32 32, %v2565_v24  ;;  %vm2250_vm1 = vcmp.gt.s32.totalorder %v2249_v39, 0  ;;  %v2564_v27 = vshrl.u32 %v2563_v45, 5 }
 0x1f0   : > { %v6146_v41 = vsub.s32 %v2091_v2, %v2094_v52  ;;  %v2568_v33 = vshll.u32 %v7346_v14, %v2565_v24  ;;  %v2571_v49 = vshll.u32 %v7350_v46, %v2565_v24  ;;  %v2574_v43 = vshll.u32 %v7351_v28, %v2565_v24 }
 0x1f1   : > { %v2569_v53 = vshrl.u32 %v7350_v46, %v2566_v11  ;;  %v2572_v3 = vshrl.u32 %v7351_v28, %v2566_v11  ;;  %v2577_v18 = vshll.u32 %v7342_v60, %v2565_v24  ;;  %v2423_v37 = vand.u32 2147483647, %v2422_v29 }
 0x1f2   : > { %v2097_v63 = vsub.s32 0, %v6146_v41  ;;  %v2575_v16 = vshrl.u32 %v7342_v60, %v2566_v11  ;;  %v2578_v2 = vshrl.u32 %v7343_v0, %v2566_v11  ;;  %v2580_v6 = vshll.u32 %v7343_v0, %v2565_v24 }
 0x1f3   : > { %v2570_v45 = vor.u32 %v2569_v53, %v2568_v33  ;;  %v2573_v38 = vor.u32 %v2572_v3, %v2571_v49  ;;  %v2581_v52 = vshrl.u32 %v7328_v50, %v2566_v11  ;;  %v6159_v34 = vpop.eup %4615  ;;  %v2425_v19 = vcvt.s32.f32 %v2418_v32 }
 0x1f4   : > { %v3986_v17 = vmin.u32 %v2097_v63, %v6146_v41  ;;  %v2576_v26 = vor.u32 %v2575_v16, %v2574_v43  ;;  %v2579_v55 = vor.u32 %v2578_v2, %v2577_v18  ;;  %vm7271_vm0 = vcmp.lt.s32.totalorder %v5834_v42, 0  ;;  %v1381_v63 = vpop.permute.xlu0 %1380 }
 0x1f5   : > { %v2582_v29 = vor.u32 %v2581_v52, %v2580_v6  ;;  %vm2583_vm9 = vcmp.lt.s32.totalorder %v2564_v27, 1  ;;  %v2251_v10 = vsel %vm2250_vm1, %v2249_v39, 0  ;;  %v1324_v23 = vadd.f32 %v1308_v30, %v1224_v9 }
 0x1f6   : > { %v2426_v33 = vmul.f32 %v2425_v19, %v2423_v37  ;;  %v2099_v49 = vclz %v3986_v17  ;;  %vm2586_vm8 = vcmp.lt.s32.totalorder %v2564_v27, 4  ;;  %v2591_v24 = vsel %vm2583_vm9, %v2570_v45, %v2573_v38 }
 0x1f7   : > { %v2567_v53 = vshrl.u32 %v7346_v14, %v2566_v11  ;;  %vm2585_vm15 = vcmp.lt.s32.totalorder %v2564_v27, 3  ;;  %v2588_v32 = vsel %vm2586_vm8, %v2576_v26, 2102212464  ;;  %v2592_v3 = vsel %vm2586_vm8, %v2579_v55, 920167782  ;;  %v1369_v11 = vpop.permute.xlu1 %1368 }
 0x1f8   : > { %v3987_v43 = vadd.s32 4294967294, %v2099_v49  ;;  %vm2584_vm7 = vcmp.lt.s32.totalorder %v2564_v27, 2  ;;  %v2593_v18 = vsel %vm2585_vm15, %v2576_v26, %v2592_v3  ;;  %v2595_v16 = vsel %vm2583_vm9, %v2573_v38, %v2576_v26 }
 0x1f9   : > { %v2587_v2 = vsel %vm2583_vm9, %v2567_v53, %v2570_v45  ;;  %v2589_v39 = vsel %vm2585_vm15, %v2573_v38, %v2588_v32  ;;  %v2594_v19 = vsel %vm2584_vm7, %v2591_v24, %v2593_v18  ;;  %v2596_v17 = vsel %vm2586_vm8, %v2582_v29, 1326507024 }
 0x1fa   : > { %v2427_v9 = vxor.u32 2147483648, %v2426_v33  ;;  %vm3988_vm1 = vcmp.lt.s32.totalorder %v3987_v43, 0  ;;  %v2597_v30 = vsel %vm2585_vm15, %v2579_v55, %v2596_v17  ;;  %v6169_v37 = vadd.f32 %v1381_v63, %v1324_v23 }
 0x1fb   : > { %v2102_v6 = vsel %vm3988_vm1, 0, %v3987_v43  ;;  %v2598_v52 = vsel %vm2584_vm7, %v2595_v16, %v2597_v30  ;;  %v6173_v49 = vmul.u32.u64.low %v6133_v1, %v2594_v19  ;;  %v6174_v3 = vmul.u32.u64.high %v6133_v1, %v2594_v19, %v6173_v49 }
 0x1fc   : > { %7363 = vst [vmem:[#allocation46_spill] sm:$0xff] %v6169_v37  ;;  %v2103_v26 = vsub.s32 32, %v2102_v6  ;;  %v2107_v45 = vsub.s32 4294967266, %v2102_v6  ;;  %v2590_v38 = vsel %vm2584_vm7, %v2587_v2, %v2589_v39  ;;  %v6178_v24 = vshrl.u32 %v2251_v10, 5 }
 0x1fd   : > { %v6181_v29 = vmul.u32.u64.low %v6133_v1, %v2598_v52  ;;  %v6182_v55 = vmul.u32.u64.high %v6133_v1, %v2598_v52, %v6181_v29  ;;  %v2253_v23 = vand.u32 31, %v2251_v10  ;;  %v6185_v53 = vadd.f32 %v1369_v11, %v6142_v21 }
 0x1fe   : > { %v2428_v32 = vsel %vm7271_vm0, %v2427_v9, %v2426_v33  ;;  %v2104_v63 = vshll.u32 %v6146_v41, %v2102_v6  ;;  %v2105_v43 = vshrl.u32 %v6127_v58, %v2103_v26  ;;  %v2108_v18 = vadd.s32 127, %v2107_v45 }
 0x1ff   : > { %v2606_v27 = vmul.u32 %v6133_v1, %v2590_v38  ;;  %v2609_v16 = vadd.s32 1, %v6174_v3  ;;  %v2254_v2 = vsub.s32 32, %v2253_v23  ;;  %vm2271_vm7 = vcmp.lt.s32.totalorder %v6178_v24, 1 }
 0x200   : > { %v2106_v39 = vor.u32 %v2105_v43, %v2104_v63  ;;  %v2109_v10 = vshll.u32 %v2108_v18, 23  ;;  %v2256_v21 = vshll.u32 %v7346_v14, %v2253_v23  ;;  %v2259_v19 = vshll.u32 %v7350_v46, %v2253_v23 }
 0x201   : > { %vm2608_vm8 = vc.u32 %v6182_v55, %v6173_v49  ;;  %v2257_v41 = vshrl.u32 %v7350_v46, %v2254_v2  ;;  %v2262_v58 = vshll.u32 %v7351_v28, %v2253_v23  ;;  %v2265_v1 = vshll.u32 %v7342_v60, %v2253_v23 }
 0x202   : > { %v7364_v33 = vand.u32 2147483647, %v5834_v42  ;;  %v7365_v17 = vmov 0  ;;  %v2110_v9 = vor.u32 4788187, %v2109_v10  ;;  %v2113_v30 = vcvt.s32.f32 %v2106_v39 }
 0x203   : > { %v2610_v11 = vsel %vm2608_vm8, %v2609_v16, %v6174_v3  ;;  %v2260_v6 = vshrl.u32 %v7351_v28, %v2254_v2  ;;  %v2258_v26 = vor.u32 %v2257_v41, %v2256_v21  ;;  %v2263_v45 = vshrl.u32 %v7342_v60, %v2254_v2 }
 0x204   : > { %vm6203_vm15 = vcmp.le.f32.partialorder %v7364_v33, 0.7853982  ;;  %v2611_v52 = vadd.s32 %v2610_v11, %v2606_v27  ;;  %v2266_v38 = vshrl.u32 %v7343_v0, %v2254_v2  ;;  %v2111_v29 = vand.u32 2147483647, %v2110_v9 }
 0x205   : > { %v7366_v17 = vsel %vm6203_vm15, 4294967295, %v7365_v17  ;;  %v2261_v63 = vor.u32 %v2260_v6, %v2259_v19  ;;  %v2268_v43 = vshll.u32 %v7343_v0, %v2253_v23  ;;  %v2269_v18 = vshrl.u32 %v7328_v50, %v2254_v2 }
 0x206   : > { %7367 = vst [vmem:[#allocation47_spill] sm:$0xff] %v7366_v17  ;;  %v2612_v33 = vadd.s32 536870912, %v2611_v52  ;;  %v2255_v10 = vshrl.u32 %v7346_v14, %v2254_v2  ;;  %v2264_v39 = vor.u32 %v2263_v45, %v2262_v58  ;;  %v2267_v5 = vor.u32 %v2266_v38, %v2265_v1 }
 0x207   : > { %v2114_v3 = vmul.f32 %v2113_v30, %v2111_v29  ;;  %v2270_v16 = vor.u32 %v2269_v18, %v2268_v43  ;;  %vm2273_vm9 = vcmp.lt.s32.totalorder %v6178_v24, 3  ;;  %vm2274_vm1 = vcmp.lt.s32.totalorder %v6178_v24, 4 }
 0x208   : > { %v6216_v27 = vshrl.u32 %v2612_v33, 30  ;;  %v2276_v21 = vsel %vm2274_vm1, %v2264_v39, 2102212464  ;;  %v2279_v19 = vsel %vm2271_vm7, %v2258_v26, %v2261_v63  ;;  %v2280_v23 = vsel %vm2274_vm1, %v2267_v5, 920167782 }
 0x209   : > { %vm2272_vm8 = vcmp.lt.s32.totalorder %v6178_v24, 2  ;;  %v2275_v2 = vsel %vm2271_vm7, %v2255_v10, %v2258_v26  ;;  %v2281_v41 = vsel %vm2273_vm9, %v2264_v39, %v2280_v23  ;;  %v2283_v58 = vsel %vm2271_vm7, %v2261_v63, %v2264_v39 }
 0x20a   : > { %7368 = vst [vmem:[#allocation48_spill] sm:$0xff] %v6216_v27  ;;  %v2115_v1 = vxor.u32 2147483648, %v2114_v3  ;;  %v2614_v9 = vshll.u32 %v6216_v27, 30  ;;  %v2282_v30 = vsel %vm2272_vm8, %v2279_v19, %v2281_v41  ;;  %v2284_v11 = vsel %vm2274_vm1, %v2270_v16, 1326507024 }
 0x20b   : > { %v2277_v6 = vsel %vm2273_vm9, %v2261_v63, %v2276_v21  ;;  %v2285_v45 = vsel %vm2273_vm9, %v2267_v5, %v2284_v11  ;;  %v6229_v38 = vmul.u32.u64.low %v6138_v51, %v2282_v30  ;;  %v6230_v29 = vmul.u32.u64.high %v6138_v51, %v2282_v30, %v6229_v38 }
 0x20c   : > { %v2431_v26 = vsel %vm6203_vm15, %v5834_v42, %v2428_v32  ;;  %v6235_v43 = vsub.s32 %v2611_v52, %v2614_v9  ;;  %v2286_v18 = vsel %vm2272_vm8, %v2283_v58, %v2285_v45  ;;  %v7263_v33 = vand.u32 2147483647, %v6169_v37 }
 0x20d   : > { %4617 = vsinq.f32 %v6116_v62  ;;  %vm7272_vm7 = vcmp.lt.s32.totalorder %v5912_v36, 0  ;;  %v6243_v5 = vmul.u32.u64.low %v6138_v51, %v2286_v18  ;;  %v6244_v63 = vmul.u32.u64.high %v6138_v51, %v2286_v18, %v6243_v5 }
 0x20e   : > { %v2116_v10 = vsel %vm7272_vm7, %v2115_v1, %v2114_v3  ;;  %v2617_v32 = vsub.s32 0, %v6235_v43  ;;  %v2278_v52 = vsel %vm2272_vm8, %v2275_v2, %v2277_v6  ;;  %v2762_v39 = vand.u32 2139095040, %v6169_v37 }
 0x20f   : > { %4619 = vcosq.f32 %v2431_v26  ;;  %v7369_v16 = vand.u32 2147483647, %v5912_v36  ;;  %v2297_v21 = vadd.s32 1, %v6230_v29  ;;  %v2766_v3 = vand.u32 8388607, %v7263_v33 }
 0x210   : > { %v4006_v19 = vmin.u32 %v2617_v32, %v6235_v43  ;;  %v2763_v23 = vshrl.u32 %v2762_v39, 23  ;;  %v2450_v24 = vand.u32 2139095040, %v6185_v53  ;;  %v2294_v41 = vmul.u32 %v6138_v51, %v2278_v52 }
 0x211   : > { %vm6254_vm9 = vcmp.le.f32.partialorder %v7369_v16, 0.7853982  ;;  %vm2296_vm1 = vc.u32 %v6244_v63, %v6229_v38  ;;  %v7262_v58 = vand.u32 2147483647, %v6185_v53  ;;  %v6272_v6 = vmul.f32 %v5978_v35, %v5428_v47 }
 0x212   : > { %v2119_v2 = vsel %vm6254_vm9, %v5912_v36, %v2116_v10  ;;  %v2619_v1 = vclz %v4006_v19  ;;  %v2298_v9 = vsel %vm2296_vm1, %v2297_v21, %v6230_v29  ;;  %v4013_v30 = vadd.s32 4294967169, %v2763_v23 }
 0x213   : > { %v2451_v11 = vshrl.u32 %v2450_v24, 23  ;;  %v6276_v45 = vmul.f32 %v5978_v35, %v5443_v8  ;;  %4621 = vsinq.f32 %v2431_v26  ;;  %v2299_v18 = vadd.s32 %v2298_v9, %v2294_v41 }
 0x214   : > { %v4007_v51 = vadd.s32 4294967294, %v2619_v1  ;;  %v2767_v5 = vor.u32 8388608, %v2766_v3  ;;  %v2769_v10 = vadd.s32 1, %v4013_v30  ;;  %4623 = vcosq.f32 %v2119_v2 }
 0x215   : > { %v4001_v32 = vadd.s32 4294967169, %v2451_v11  ;;  %v2300_v52 = vadd.s32 536870912, %v2299_v18  ;;  %v6280_v29 = vmul.f32 %v5919_v20, %v6082_v57  ;;  %v6284_v47 = vand.u32 8388607, %v7262_v58 }
 0x216   : > { %4625 = vsinq.f32 %v2119_v2  ;;  %v2607_v8 = vadd.s32 %v6173_v49, %v6182_v55  ;;  %vm4008_vm8 = vcmp.lt.s32.totalorder %v4007_v51, 0  ;;  %vm2770_vm1 = vcmp.gt.s32.totalorder %v2769_v10, 0 }
 0x217   : > { %v6288_v35 = vpop.eup %4617  ;;  %v2622_v26 = vsel %vm4008_vm8, 0, %v4007_v51  ;;  %v6290_v39 = vshrl.u32 %v2300_v52, 30  ;;  %v2771_v16 = vsel %vm2770_vm1, %v2769_v10, 0  ;;  %v6292_v21 = vadd.s32 1, %v4001_v32 }
 0x218   : > { %v2623_v57 = vsub.s32 32, %v2622_v26  ;;  %v2627_v19 = vsub.s32 4294967266, %v2622_v26  ;;  %v6295_v23 = vadd.s32 %v6229_v38, %v6244_v63  ;;  %v6297_v3 = vshll.u32 %v2767_v5, 8 }
 0x219   : > { %7372 = vst [vmem:[#allocation49_spill] sm:$0xff] %v6290_v39  ;;  %v6299_v24 = vpop.eup %4619  ;;  %v2302_v49 = vshll.u32 %v6290_v39, 30  ;;  %v2773_v55 = vand.u32 31, %v2771_v16  ;;  %v1493_v41 = vsub.s32 4, %v5486_v13  ;;  %v2624_v1 = vshll.u32 %v6235_v43, %v2622_v26 }
 0x21a   : > { %7373 = vst [vmem:[#allocation50_spill] sm:$0xff] %v6299_v24  ;;  %v2625_v9 = vshrl.u32 %v2607_v8, %v2623_v57  ;;  %v2628_v30 = vadd.s32 127, %v2627_v19  ;;  %v2772_v11 = vshrl.u32 %v2771_v16, 5  ;;  %vm7375_vm7 = vcmp.gt.s32.totalorder %v6292_v21, 0 }
 0x21b   : > { %v6305_v51 = vsub.s32 %v2299_v18, %v2302_v49  ;;  %v2774_v38 = vsub.s32 32, %v2773_v55  ;;  %v2776_v63 = vshll.u32 %v7346_v14, %v2773_v55  ;;  %v2779_v32 = vshll.u32 %v7350_v46, %v2773_v55 }
 0x21c   : > { %v2626_v5 = vor.u32 %v2625_v9, %v2624_v1  ;;  %v2629_v10 = vshll.u32 %v2628_v30, 23  ;;  %v2782_v52 = vshll.u32 %v7351_v28, %v2773_v55  ;;  %v2785_v26 = vshll.u32 %v7342_v60, %v2773_v55 }
 0x21d   : > { %v6311_v58 = vpop.eup %4621  ;;  %v2305_v43 = vsub.s32 0, %v6305_v51  ;;  %v2777_v8 = vshrl.u32 %v7350_v46, %v2774_v38  ;;  %v2780_v18 = vshrl.u32 %v7351_v28, %v2774_v38  ;;  %v2783_v19 = vshrl.u32 %v7342_v60, %v2774_v38 }
 0x21e   : > { %7374 = vst [vmem:[#allocation51_spill] sm:$0xff] %v6311_v58  ;;  %v2630_v16 = vor.u32 4788187, %v2629_v10  ;;  %v2633_v57 = vcvt.s32.f32 %v2626_v5  ;;  %v2786_v49 = vshrl.u32 %v7343_v0, %v2774_v38  ;;  %v6319_v1 = vpop.eup %4623  ;;  %v2788_v2 = vshll.u32 %v7343_v0, %v2773_v55 }
 0x21f   : > { %v3994_v9 = vmin.u32 %v2305_v43, %v6305_v51  ;;  %v2778_v30 = vor.u32 %v2777_v8, %v2776_v63  ;;  %v2781_v33 = vor.u32 %v2780_v18, %v2779_v32  ;;  %v2784_v58 = vor.u32 %v2783_v19, %v2782_v52 }
 0x220   : > { %v6323_v27 = vpop.eup %4625  ;;  %v2631_v24 = vand.u32 2147483647, %v2630_v16  ;;  %v2787_v17 = vor.u32 %v2786_v49, %v2785_v26  ;;  %v2789_v10 = vshrl.u32 %v7328_v50, %v2774_v38  ;;  %v2775_v42 = vshrl.u32 %v7346_v14, %v2774_v38  ;;  %v1200_v38 = vpop.permute.xlu1 %1199 }
 0x221   : > { %v2307_v5 = vclz %v3994_v9  ;;  %vm2791_vm1 = vcmp.lt.s32.totalorder %v2772_v11, 1  ;;  %vm2794_vm0 = vcmp.lt.s32.totalorder %v2772_v11, 4  ;;  %vm2793_vm2 = vcmp.lt.s32.totalorder %v2772_v11, 3 }
 0x222   : > { %v2634_v39 = vmul.f32 %v2633_v57, %v2631_v24  ;;  %v2790_v43 = vor.u32 %v2789_v10, %v2788_v2  ;;  %v2796_v63 = vsel %vm2794_vm0, %v2784_v58, 2102212464  ;;  %v2795_v55 = vsel %vm2791_vm1, %v2775_v42, %v2778_v30 }
 0x223   : > { %v3995_v32 = vadd.s32 4294967294, %v2307_v5  ;;  %v2800_v8 = vsel %vm2794_vm0, %v2787_v17, 920167782  ;;  %v2803_v18 = vsel %vm2791_vm1, %v2781_v33, %v2784_v58  ;;  %v2797_v16 = vsel %vm2793_vm2, %v2781_v33, %v2796_v63 }
 0x224   : > { %v2799_v52 = vsel %vm2791_vm1, %v2778_v30, %v2781_v33  ;;  %v2801_v26 = vsel %vm2793_vm2, %v2784_v58, %v2800_v8  ;;  %v2804_v19 = vsel %vm2794_vm0, %v2790_v43, 1326507024  ;;  %vm2792_vm8 = vcmp.lt.s32.totalorder %v2772_v11, 2 }
 0x225   : > { %vm3996_vm4 = vcmp.lt.s32.totalorder %v3995_v32, 0  ;;  %v2805_v49 = vsel %vm2793_vm2, %v2787_v17, %v2804_v19  ;;  %v6331_v9 = vsel %vm1409_vm5, %v1493_v41, %v5486_v13  ;;  %v2635_v24 = vxor.u32 2147483648, %v2634_v39 }
 0x226   : > { %v2310_v2 = vsel %vm3996_vm4, 0, %v3995_v32  ;;  %v2806_v57 = vsel %vm2792_vm8, %v2803_v18, %v2805_v49  ;;  %v2459_v42 = vsel %vm7375_vm7, %v6292_v21, 0  ;;  %v2798_v58 = vsel %vm2792_vm8, %v2795_v55, %v2797_v16 }
 0x227   : > { %v2311_v10 = vsub.s32 32, %v2310_v2  ;;  %v2315_v33 = vsub.s32 4294967266, %v2310_v2  ;;  %v2802_v30 = vsel %vm2792_vm8, %v2799_v52, %v2801_v26  ;;  %v7376_v5 = vor.u32 8388608, %v6284_v47 }
 0x228   : > { %v6337_v11 = vmul.u32.u64.low %v6297_v3, %v2806_v57  ;;  %v6338_v17 = vmul.u32.u64.high %v6297_v3, %v2806_v57, %v6337_v11  ;;  %v6345_v13 = vmul.f32 %v5919_v20, %v1200_v38  ;;  %v2312_v41 = vshll.u32 %v6305_v51, %v2310_v2 }
 0x229   : > { %v6342_v43 = vshll.u32 %v7376_v5, 8  ;;  %v2313_v63 = vshrl.u32 %v6295_v23, %v2311_v10  ;;  %v2316_v21 = vadd.s32 127, %v2315_v33  ;;  %v2461_v32 = vand.u32 31, %v2459_v42 }
 0x22a   : > { %v6350_v55 = vmul.u32.u64.low %v6297_v3, %v2802_v30  ;;  %v6351_v8 = vmul.u32.u64.high %v6297_v3, %v2802_v30, %v6350_v55  ;;  %v2814_v18 = vmul.u32 %v6297_v3, %v2798_v58  ;;  %v1496_v47 = vsel %vm5665_vm10, 0, %v6331_v9 }
 0x22b   : > { %vm7377_vm5 = vcmp.lt.s32.totalorder %v6063_v59, 0  ;;  %v2314_v16 = vor.u32 %v2313_v63, %v2312_v41  ;;  %v2317_v51 = vshll.u32 %v2316_v21, 23  ;;  %v2462_v52 = vsub.s32 32, %v2461_v32 }
 0x22c   : > { %v2636_v20 = vsel %vm7377_vm5, %v2635_v24, %v2634_v39  ;;  %vm2816_vm2 = vc.u32 %v6338_v17, %v6350_v55  ;;  %v2460_v23 = vshrl.u32 %v2459_v42, 5  ;;  %v2464_v26 = vshll.u32 %v7346_v14, %v2461_v32  ;;  %v3895_v39 = vld [vmem:[%s7183_s3] ss:$0 sm:$0xff] }
 0x22d   : > { %v2467_v19 = vshll.u32 %v7350_v46, %v2461_v32  ;;  %v2318_v49 = vor.u32 4788187, %v2317_v51  ;;  %v2321_v3 = vcvt.s32.f32 %v2314_v16  ;;  %v2465_v38 = vshrl.u32 %v7350_v46, %v2462_v52 }
 0x22e   : > { %v2470_v56 = vshll.u32 %v7351_v28, %v2461_v32  ;;  %v7378_v9 = vand.u32 2147483647, %v6063_v59  ;;  %v2817_v24 = vadd.s32 1, %v6351_v8  ;;  %v2468_v2 = vshrl.u32 %v7351_v28, %v2462_v52 }
 0x22f   : > { %v2471_v57 = vshrl.u32 %v7342_v60, %v2462_v52  ;;  %v2473_v42 = vshll.u32 %v7342_v60, %v2461_v32  ;;  %v2319_v10 = vand.u32 2147483647, %v2318_v49  ;;  %v2466_v33 = vor.u32 %v2465_v38, %v2464_v26 }
 0x230   : > { %vm6368_vm10 = vcmp.le.f32.partialorder %v7378_v9, 0.7853982  ;;  %v2474_v58 = vshrl.u32 %v7343_v0, %v2462_v52  ;;  %v2476_v30 = vshll.u32 %v7343_v0, %v2461_v32  ;;  %vm7277_vm4 = vcmp.lt.s32.totalorder %v6068_v54, 0 }
 0x231   : > { %v2818_v11 = vsel %vm2816_vm2, %v2817_v24, %v6351_v8  ;;  %v2469_v5 = vor.u32 %v2468_v2, %v2467_v19  ;;  %v2472_v41 = vor.u32 %v2471_v57, %v2470_v56  ;;  %v2477_v63 = vshrl.u32 %v7328_v50, %v2462_v52  ;;  %v1205_v24 = vpop.permute.xlu1 %1204 }
 0x232   : > { %v2322_v21 = vmul.f32 %v2321_v3, %v2319_v10  ;;  %v2819_v16 = vadd.s32 %v2818_v11, %v2814_v18  ;;  %v2475_v51 = vor.u32 %v2474_v58, %v2473_v42  ;;  %vm2479_vm0 = vcmp.lt.s32.totalorder %v2460_v23, 1 }
 0x233   : > { %v2463_v26 = vshrl.u32 %v7346_v14, %v2462_v52  ;;  %v2478_v49 = vor.u32 %v2477_v63, %v2476_v30  ;;  %vm2482_vm7 = vcmp.lt.s32.totalorder %v2460_v23, 4  ;;  %v2487_v32 = vsel %vm2479_vm0, %v2466_v33, %v2469_v5 }
 0x234   : > { %v7381_v38 = vand.u32 2147483647, %v6068_v54  ;;  %v2820_v8 = vadd.s32 536870912, %v2819_v16  ;;  %vm2481_vm1 = vcmp.lt.s32.totalorder %v2460_v23, 3  ;;  %v2484_v19 = vsel %vm2482_vm7, %v2472_v41, 2102212464 }
 0x235   : > { %v2488_v56 = vsel %vm2482_vm7, %v2475_v51, 920167782  ;;  %vm2480_vm5 = vcmp.lt.s32.totalorder %v2460_v23, 2  ;;  %v2491_v3 = vsel %vm2479_vm0, %v2469_v5, %v2472_v41  ;;  %v2492_v52 = vsel %vm2482_vm7, %v2478_v49, 1326507024 }
 0x236   : > { %vm6388_vm8 = vcmp.le.f32.partialorder %v7381_v38, 0.7853982  ;;  %v2489_v18 = vsel %vm2481_vm1, %v2472_v41, %v2488_v56  ;;  %v2323_v2 = vxor.u32 2147483648, %v2322_v21  ;;  %v6393_v57 = vshrl.u32 %v2820_v8, 30  ;;  %v4663_v8 = vld [vmem:[%s5392_s21] ss:$0 sm:$0xff] }
 0x237   : > { %v2483_v42 = vsel %vm2479_vm0, %v2463_v26, %v2466_v33  ;;  %v2490_v10 = vsel %vm2480_vm5, %v2487_v32, %v2489_v18  ;;  %v2485_v58 = vsel %vm2481_vm1, %v2469_v5, %v2484_v19  ;;  %v2493_v30 = vsel %vm2481_vm1, %v2475_v51, %v2492_v52 }
 0x238   : > { %7384 = vst [vmem:[#allocation52_spill] sm:$0xff] %v6393_v57  ;;  %v6398_v11 = vmul.u32.u64.low %v6342_v43, %v2490_v10  ;;  %v6399_v63 = vmul.u32.u64.high %v6342_v43, %v2490_v10, %v6398_v11  ;;  %v6405_v41 = vsel %vm6368_vm10, %v6063_v59, %v2636_v20  ;;  %v2822_v49 = vshll.u32 %v6393_v57, 30 }
 0x239   : > { %v2494_v38 = vsel %vm2480_vm5, %v2491_v3, %v2493_v30  ;;  %v6410_v33 = vmul.f32 %v4663_v8, %v1205_v24  ;;  %v1500_v26 = vadd.s32 3, %v1496_v47  ;;  %v1504_v32 = vxor.u32 2147483648, %v5783_v22 }
 0x23a   : > { %v6413_v5 = vmul.u32.u64.low %v6342_v43, %v2494_v38  ;;  %v6414_v51 = vmul.u32.u64.high %v6342_v43, %v2494_v38, %v6413_v5  ;;  %v2324_v19 = vsel %vm7277_vm4, %v2323_v2, %v2322_v21  ;;  %v6419_v56 = vsub.s32 %v2819_v16, %v2822_v49  ;;  %v1289_v21 = vpop.permute.xlu1 %1288  ;;  %v6435_v2 = vpop.f32.mrb[0].mxu0 }
 0x23b   : > { %v2486_v20 = vsel %vm2480_vm5, %v2483_v42, %v2485_v58  ;;  %v1597_v18 = vsub.s32 4, %v5621_v7  ;;  %4627 = vcosq.f32 %v6405_v41  ;;  %v6426_v3 = vadd.s32 %v6350_v55, %v6338_v17  ;;  %v6446_v42 = vpop.f32.mrb[1].mxu0 }
 0x23c   : > { %v2505_v52 = vadd.s32 1, %v6399_v63  ;;  %v1501_v47 = vand.u32 3, %v1500_v26  ;;  %v2825_v24 = vsub.s32 0, %v6419_v56  ;;  %v1507_v10 = vxor.u32 2147483648, %v5721_v40  ;;  %v6454_v38 = vpop.f32.mrb[2].mxu0 }
 0x23d   : > { %vm7385_vm2 = vcmp.lt.s32.totalorder %v5462_v44, 0  ;;  %v1701_v16 = vsub.s32 4, %v5558_v31  ;;  %v6440_v17 = vsel %vm6388_vm8, %v6068_v54, %v2324_v19  ;;  %v2502_v55 = vmul.u32 %v6342_v43, %v2486_v20  ;;  %7387 = vst [vmem:[#allocation54_spill] sm:$0xff] %v6454_v38  ;;  %v6463_v19 = vpop.f32.mrb[3].mxu0 }
 0x23e   : > { %v1598_v23 = vsel %vm7385_vm2, %v1597_v18, %v5621_v7  ;;  %vm2504_vm0 = vc.u32 %v6414_v51, %v6398_v11  ;;  %vm1499_vm7 = vweird.f32 %v5408_v25  ;;  %vm1503_vm1 = vcmp.eq.s32.totalorder %v1501_v47, 0  ;;  %v6448_v7 = vpop.f32.mrb[0].mxu1  ;;  %7390 = vst [vmem:[#allocation56_spill] sm:$0xff] %v6463_v19 }
 0x23f   : > { %7386 = vst [vmem:[#allocation53_spill] sm:$0xff] %v6448_v7  ;;  %v4014_v58 = vmin.u32 %v2825_v24, %v6419_v56  ;;  %v2506_v30 = vsel %vm2504_vm0, %v2505_v52, %v6399_v63  ;;  %v1505_v49 = vsel %vm1503_vm1, %v5721_v40, %v1504_v32  ;;  %vm1603_vm5 = vweird.f32 %v5462_v44  ;;  %v6456_v43 = vpop.f32.mrb[1].mxu1  ;;  %v6470_v24 = vpop.f32.mrb[4].mxu0  ;;  %v4664_v7 = vld [vmem:[%s5392_s21 + $0x1] ss:$0 sm:$0xff]  ;;  %v7403_v44 = vld [vmem:[#allocation23_spill] sm:$0xff] }
 0x240   : > { %7388 = vst [vmem:[#allocation55_spill] sm:$0xff] %v6456_v43  ;;  %v2507_v8 = vadd.s32 %v2506_v30, %v2502_v55  ;;  %vm1506_vm2 = vcmp.eq.s32.totalorder %v1501_v47, 2  ;;  %v1600_v5 = vsel %vm5857_vm6, 0, %v1598_v23  ;;  %vm7389_vm4 = vcmp.lt.s32.totalorder %v5445_v15, 0  ;;  %v6465_v63 = vpop.f32.mrb[2].mxu1  ;;  %7393 = vst [vmem:[#allocation27_spill] sm:$0xff] %v6470_v24 }
 0x241   : > { %v1702_v26 = vsel %vm7389_vm4, %v1701_v16, %v5558_v31  ;;  %7391 = vst [vmem:[#allocation57_spill] sm:$0xff] %v6465_v63  ;;  %v2827_v40 = vclz %v4014_v58  ;;  %v1508_v32 = vsel %vm1506_vm2, %v1507_v10, %v5783_v22  ;;  %v1604_v20 = vadd.s32 3, %v1600_v5  ;;  %v7394_v23 = vld [vmem:[#allocation37_spill] sm:$0xff]  ;;  %v7395_v30 = vld [vmem:[#allocation36_spill] sm:$0xff] }
 0x242   : > { %v1704_v52 = vsel %vm5746_vm3, 0, %v1702_v26  ;;  %v2508_v4 = vadd.s32 536870912, %v2507_v8  ;;  %v1608_v55 = vxor.u32 2147483648, %v7394_v23  ;;  %v1611_v57 = vxor.u32 2147483648, %v7395_v30  ;;  %v7396_v5 = vld [vmem:[#allocation25_spill] sm:$0xff] }
 0x243   : > { %v1708_v43 = vadd.s32 3, %v1704_v52  ;;  %v4015_v31 = vadd.s32 4294967294, %v2827_v40  ;;  %vm1502_vm6 = vcmp.lt.s32.totalorder %v1501_v47, 2  ;;  %v1605_v16 = vand.u32 3, %v1604_v20  ;;  %v6487_v20 = vpop.f32.mrb[5].mxu0 }
 0x244   : > { %v6475_v63 = vmul.f32 %v4664_v7, %v1289_v21  ;;  %v6477_v58 = vshrl.u32 %v2508_v4, 30  ;;  %v1509_v22 = vsel %vm1502_vm6, %v1505_v49, %v1508_v32  ;;  %v1805_v26 = vsub.s32 4, %v7396_v5  ;;  %v6485_v7 = vpop.f32.mrb[3].mxu1  ;;  %7398 = vst [vmem:[#allocation36_spill] sm:$0xff] %v6487_v20  ;;  %v6491_v4 = vpop.f32.mrb[6].mxu0 }
 0x245   : > { %v1709_v10 = vand.u32 3, %v1708_v43  ;;  %vm4016_vm3 = vcmp.lt.s32.totalorder %v4015_v31, 0  ;;  %vm1606_vm4 = vcmp.lt.s32.totalorder %v1605_v16, 2  ;;  %vm1607_vm0 = vcmp.eq.s32.totalorder %v1605_v16, 0  ;;  %v6480_v18 = vpop.eup %4627  ;;  %7397 = vst [vmem:[#allocation37_spill] sm:$0xff] %v6485_v7  ;;  %7399 = vst [vmem:[#allocation25_spill] sm:$0xff] %v6491_v4  ;;  %v1377_v7 = vpop.permute.xlu1 %1376 }
 0x246   : > { %vm1610_vm1 = vcmp.eq.s32.totalorder %v1605_v16, 2  ;;  %v2830_v24 = vsel %vm4016_vm3, 0, %v4015_v31  ;;  %v2510_v40 = vshll.u32 %v6477_v58, 30  ;;  %v1609_v47 = vsel %vm1607_vm0, %v7395_v30, %v1608_v55  ;;  %v7400_v55 = vld [vmem:[#allocation35_spill] sm:$0xff]  ;;  %v6499_v19 = vpop.f32.mrb[7].mxu0 }
 0x247   : > { %v1612_v21 = vsel %vm1610_vm1, %v1611_v57, %v7394_v23  ;;  %v2831_v49 = vsub.s32 32, %v2830_v24  ;;  %v2835_v43 = vsub.s32 4294967266, %v2830_v24  ;;  %v1510_v32 = vsel %vm1499_vm7, nan, %v1509_v22  ;;  %v7401_v57 = vld [vmem:[#allocation34_spill] sm:$0xff]  ;;  %7402 = vst [vmem:[#allocation35_spill] sm:$0xff] %v6499_v19 }
 0x248   : > { %v1613_v52 = vsel %vm1606_vm4, %v1609_v47, %v1612_v21  ;;  %v6493_v16 = vsub.s32 %v2507_v8, %v2510_v40  ;;  %v1712_v30 = vxor.u32 2147483648, %v7400_v55  ;;  %v1715_v23 = vxor.u32 2147483648, %v7401_v57 }
 0x249   : > { %v1614_v31 = vsel %vm1603_vm5, nan, %v1613_v52  ;;  %v2832_v20 = vshll.u32 %v6419_v56, %v2830_v24  ;;  %v2833_v25 = vshrl.u32 %v6426_v3, %v2831_v49  ;;  %v2836_v22 = vadd.s32 127, %v2835_v43 }
 0x24a   : > { %v3087_v47 = vpack.c.bf16 %v1614_v31, %v1510_v32  ;;  %v2513_v21 = vsub.s32 0, %v6493_v16  ;;  %vm1707_vm7 = vweird.f32 %v5445_v15  ;;  %vm1711_vm2 = vcmp.eq.s32.totalorder %v1709_v10, 0  ;;  %v7406_v31 = vld [vmem:[#allocation39_spill] sm:$0xff] }
 0x24b   : > { %vm7404_vm5 = vcmp.lt.s32.totalorder %v7403_v44, 0  ;;  %v2834_v40 = vor.u32 %v2833_v25, %v2832_v20  ;;  %v2837_v52 = vshll.u32 %v2836_v22, 23  ;;  %vm1714_vm6 = vcmp.eq.s32.totalorder %v1709_v10, 2 }
 0x24c   : > { %v1806_v8 = vsel %vm7404_vm5, %v1805_v26, %v7396_v5  ;;  %4190 = vmatprep.subr.bf16.mxu0 %v3087_v47  ;;  %v4002_v3 = vmin.u32 %v2513_v21, %v6493_v16  ;;  %v1713_v24 = vsel %vm1711_vm2, %v7401_v57, %v1712_v30  ;;  %v1716_v49 = vsel %vm1714_vm6, %v1715_v23, %v7400_v55  ;;  %v7407_v26 = vld [vmem:[#allocation38_spill] sm:$0xff] }
 0x24d   : > { %v1808_v56 = vsel %vm5875_vm12, 0, %v1806_v8  ;;  %4191 = vmatpush3.bf16.msra.mxu0 %v3087_v47  ;;  %vm7290_vm3 = vcmp.lt.s32.totalorder %v6169_v37, 0  ;;  %v2838_v32 = vor.u32 4788187, %v2837_v52  ;;  %v1816_v5 = vxor.u32 2147483648, %v7406_v31  ;;  %v1385_v47 = vpop.permute.xlu1 %1384 }
 0x24e   : > { %v1812_v43 = vadd.s32 3, %v1808_v56  ;;  %v1819_v20 = vxor.u32 2147483648, %v7407_v26  ;;  %v1323_v25 = vadd.f32 %v6272_v6, %v6280_v29  ;;  %v2515_v19 = vclz %v4002_v3 }
 0x24f   : > { %vm1710_vm12 = vcmp.lt.s32.totalorder %v1709_v10, 2  ;;  %vm1811_vm4 = vweird.f32 %v7403_v44  ;;  %v2839_v30 = vand.u32 2147483647, %v2838_v32  ;;  %v2841_v57 = vcvt.s32.f32 %v2834_v40 }
 0x250   : > { %v1813_v22 = vand.u32 3, %v1812_v43  ;;  %v1717_v55 = vsel %vm1710_vm12, %v1713_v24, %v1716_v49  ;;  %v6519_v23 = vadd.f32 %v1377_v7, %v1323_v25  ;;  %v4003_v21 = vadd.s32 4294967294, %v2515_v19  ;;  %v4575_v7 = vld [vmem:[#allocation9] sm:$0xff]  }
 0x251   : > { %v2842_v8 = vmul.f32 %v2841_v57, %v2839_v30  ;;  %v1718_v10 = vsel %vm1707_vm7, nan, %v1717_v55  ;;  %v1325_v43 = vadd.f32 %v6276_v45, %v6345_v13  ;;  %v2503_v32 = vadd.s32 %v6398_v11, %v6414_v51  ;;  %v1389_v15 = vpop.permute.xlu1 %1388  ;;  %4206 = vmatprep.mubr.bf16.mxu0 %v4575_v7 }
 0x252   : > { %vm1814_vm0 = vcmp.lt.s32.totalorder %v1813_v22, 2  ;;  %vm1815_vm1 = vcmp.eq.s32.totalorder %v1813_v22, 0  ;;  %vm1818_vm2 = vcmp.eq.s32.totalorder %v1813_v22, 2  ;;  %v7282_v29 = vand.u32 2147483647, %v6519_v23 }
 0x253   : > { %v1817_v52 = vsel %vm1815_vm1, %v7407_v26, %v1816_v5  ;;  %v1820_v6 = vsel %vm1818_vm2, %v1819_v20, %v7406_v31  ;;  %vm4004_vm5 = vcmp.lt.s32.totalorder %v4003_v21, 0  ;;  %v2658_v40 = vand.u32 2139095040, %v6519_v23 }
 0x254   : > { %v1821_v56 = vsel %vm1814_vm0, %v1817_v52, %v1820_v6  ;;  %v2843_v3 = vxor.u32 2147483648, %v2842_v8  ;;  %v2518_v24 = vsel %vm4004_vm5, 0, %v4003_v21  ;;  %v2662_v25 = vand.u32 8388607, %v7282_v29 }
 0x255   : > { %v1822_v49 = vsel %vm1811_vm4, nan, %v1821_v56  ;;  %v2519_v31 = vsub.s32 32, %v2518_v24  ;;  %v2523_v5 = vsub.s32 4294967266, %v2518_v24  ;;  %v2659_v20 = vshrl.u32 %v2658_v40, 23 }
 0x256   : > { %v3088_v26 = vpack.c.bf16 %v1822_v49, %v1718_v10  ;;  %v6535_v19 = vadd.f32 %v1385_v47, %v1325_v43  ;;  %v1326_v44 = vadd.f32 %v6475_v63, %v6410_v33  ;;  %v2844_v45 = vsel %vm7290_vm3, %v2843_v3, %v2842_v8  ;;  %v7412_v10 = vld [vmem:[#allocation33_spill] sm:$0xff] }
 0x257   : > { %v2520_v13 = vshll.u32 %v6493_v16, %v2518_v24  ;;  %v2521_v11 = vshrl.u32 %v2503_v32, %v2519_v31  ;;  %v2524_v51 = vadd.s32 127, %v2523_v5  ;;  %4629 = vsinq.f32 %v6405_v41 }
 0x258   : > { %4192 = vmatprep.subr.bf16.mxu0 %v3088_v26  ;;  %v4009_v22 = vadd.s32 4294967169, %v2659_v20  ;;  %v7281_v30 = vand.u32 2147483647, %v6535_v19  ;;  %v6544_v57 = vadd.f32 %v1389_v15, %v1326_v44  ;;  %4631 = vcosq.f32 %v6440_v17 }
 0x259   : > { %4193 = vmatpush3.bf16.msra.mxu0 %v3088_v26  ;;  %v7408_v33 = vand.u32 2147483647, %v6169_v37  ;;  %v7409_v63 = vmov 0  ;;  %v2522_v16 = vor.u32 %v2521_v11, %v2520_v13  ;;  %v2525_v47 = vshll.u32 %v2524_v51, 23 }
 0x25a   : > { %vm7291_vm6 = vcmp.lt.s32.totalorder %v6185_v53, 0  ;;  %v2663_v55 = vor.u32 8388608, %v2662_v25  ;;  %v2665_v21 = vadd.s32 1, %v4009_v22  ;;  %v2866_v8 = vand.u32 2139095040, %v6535_v19 }
 0x25b   : > { %vm6549_vm7 = vcmp.le.f32.partialorder %v7408_v33, 0.7853982  ;;  %4633 = vsinq.f32 %v6440_v17  ;;  %v2526_v52 = vor.u32 4788187, %v2525_v47  ;;  %v6561_v6 = vand.u32 8388607, %v7281_v30 }
 0x25c   : > { %v7410_v63 = vsel %vm6549_vm7, 4294967295, %v7409_v63  ;;  %v2847_v41 = vsel %vm6549_vm7, %v6169_v37, %v2844_v45  ;;  %v1909_v56 = vsub.s32 4, %v7412_v10  ;;  %v7413_v40 = vand.u32 2147483647, %v6185_v53 }
 0x25d   : > { %7411 = vst [vmem:[#allocation34_spill] sm:$0xff] %v7410_v63  ;;  %vm2666_vm4 = vcmp.gt.s32.totalorder %v2665_v21, 0  ;;  %v2867_v3 = vshrl.u32 %v2866_v8, 23  ;;  %v7280_v24 = vand.u32 2147483647, %v6544_v57  ;;  %v2970_v49 = vand.u32 2139095040, %v6544_v57 }
 0x25e   : > { %vm6566_vm12 = vcmp.le.f32.partialorder %v7413_v40, 0.7853982  ;;  %4635 = vcosq.f32 %v2847_v41  ;;  %v2527_v17 = vand.u32 2147483647, %v2526_v52  ;;  %v2529_v43 = vcvt.s32.f32 %v2522_v16  ;;  %v3100_v63 = vld [vmem:[%s7189_s9 + $0x28] sm:$0xff] }
 0x25f   : > { %v2667_v32 = vsel %vm2666_vm4, %v2665_v21, 0  ;;  %4637 = vsinq.f32 %v2847_v41  ;;  %v6572_v5 = vshll.u32 %v2663_v55, 8  ;;  %v2871_v26 = vor.u32 8388608, %v6561_v6 }
 0x260   : > { %v2669_v31 = vand.u32 31, %v2667_v32  ;;  %v2530_v15 = vmul.f32 %v2529_v43, %v2527_v17  ;;  %v2668_v20 = vshrl.u32 %v2667_v32, 5  ;;  %v4017_v25 = vadd.s32 4294967169, %v2867_v3 }
 0x261   : > { %v2971_v44 = vshrl.u32 %v2970_v49, 23  ;;  %v6578_v11 = vand.u32 8388607, %v7280_v24  ;;  %vm7416_vm0 = vcmp.lt.s32.totalorder %v5694_v61, 0  ;;  %v6588_v41 = vpop.eup %4629 }
 0x262   : > { %v2670_v45 = vsub.s32 32, %v2669_v31  ;;  %v2672_v13 = vshll.u32 %v7346_v14, %v2669_v31  ;;  %v6583_v51 = vsel %vm7416_vm0, %v1909_v56, %v7412_v10  ;;  %v2531_v22 = vxor.u32 2147483648, %v2530_v15  ;;  %v6594_v6 = vpop.eup %4631 }
 0x263   : > { %v2675_v33 = vshll.u32 %v7350_v46, %v2669_v31  ;;  %v2678_v16 = vshll.u32 %v7351_v28, %v2669_v31  ;;  %v2681_v47 = vshll.u32 %v7342_v60, %v2669_v31  ;;  %v2684_v52 = vshll.u32 %v7343_v0, %v2669_v31 }
 0x264   : > { %v2673_v55 = vshrl.u32 %v7350_v46, %v2670_v45  ;;  %v2676_v21 = vshrl.u32 %v7351_v28, %v2670_v45  ;;  %v2679_v8 = vshrl.u32 %v7342_v60, %v2670_v45  ;;  %v2532_v10 = vsel %vm7291_vm6, %v2531_v22, %v2530_v15 }
 0x265   : > { %v2682_v56 = vshrl.u32 %v7343_v0, %v2670_v45  ;;  %v2685_v40 = vshrl.u32 %v7328_v50, %v2670_v45  ;;  %vm2687_vm1 = vcmp.lt.s32.totalorder %v2668_v20, 1  ;;  %v2671_v3 = vshrl.u32 %v7346_v14, %v2670_v45  ;;  %v6601_v32 = vpop.eup %4633 }
 0x266   : > { %v2674_v49 = vor.u32 %v2673_v55, %v2672_v13  ;;  %v2677_v17 = vor.u32 %v2676_v21, %v2675_v33  ;;  %v2680_v43 = vor.u32 %v2679_v8, %v2678_v16  ;;  %v2535_v31 = vsel %vm6566_vm12, %v6185_v53, %v2532_v10 }
 0x267   : > { %v2683_v24 = vor.u32 %v2682_v56, %v2681_v47  ;;  %v2686_v30 = vor.u32 %v2685_v40, %v2684_v52  ;;  %vm2688_vm2 = vcmp.lt.s32.totalorder %v2668_v20, 2  ;;  %vm2689_vm5 = vcmp.lt.s32.totalorder %v2668_v20, 3 }
 0x268   : > { %vm2690_vm4 = vcmp.lt.s32.totalorder %v2668_v20, 4  ;;  %v2691_v15 = vsel %vm2687_vm1, %v2671_v3, %v2674_v49  ;;  %v2695_v22 = vsel %vm2687_vm1, %v2674_v49, %v2677_v17  ;;  %v6608_v29 = vpop.eup %4635  ;;  %v2699_v33 = vsel %vm2687_vm1, %v2677_v17, %v2680_v43 }
 0x269   : > { %7417 = vst [vmem:[#allocation23_spill] sm:$0xff] %v6608_v29  ;;  %v2692_v45 = vsel %vm2690_vm4, %v2680_v43, 2102212464  ;;  %v2696_v13 = vsel %vm2690_vm4, %v2683_v24, 920167782  ;;  %v6611_v55 = vpop.eup %4637  ;;  %v2873_v52 = vadd.s32 1, %v4017_v25  ;;  %4639 = vcosq.f32 %v2535_v31 }
 0x26a   : > { %v2700_v16 = vsel %vm2690_vm4, %v2686_v30, 1326507024  ;;  %7418 = vst [vmem:[#allocation31_spill] sm:$0xff] %v6611_v55  ;;  %v2693_v21 = vsel %vm2689_vm5, %v2677_v17, %v2692_v45  ;;  %v2697_v8 = vsel %vm2689_vm5, %v2680_v43, %v2696_v13  ;;  %v4021_v3 = vadd.s32 4294967169, %v2971_v44 }
 0x26b   : > { %v2701_v47 = vsel %vm2689_vm5, %v2683_v24, %v2700_v16  ;;  %v2694_v10 = vsel %vm2688_vm2, %v2691_v15, %v2693_v21  ;;  %v2698_v56 = vsel %vm2688_vm2, %v2695_v22, %v2697_v8  ;;  %vm2874_vm0 = vcmp.gt.s32.totalorder %v2873_v52, 0 }
 0x26c   : > { %v2702_v40 = vsel %vm2688_vm2, %v2699_v33, %v2701_v47  ;;  %v6621_v29 = vmul.u32.u64.low %v6572_v5, %v2698_v56  ;;  %v6622_v30 = vmul.u32.u64.high %v6572_v5, %v2698_v56, %v6621_v29  ;;  %v2975_v24 = vor.u32 8388608, %v6578_v11  ;;  %v3098_v56 = vld [vmem:[%s7189_s9 + $0x18] sm:$0xff] }
 0x26d   : > { %v6617_v49 = vmul.u32.u64.low %v6572_v5, %v2702_v40  ;;  %v6618_v4 = vmul.u32.u64.high %v6572_v5, %v2702_v40, %v6617_v49  ;;  %v2977_v25 = vadd.s32 1, %v4021_v3  ;;  %4641 = vsinq.f32 %v2535_v31 }
 0x26e   : > { %v2875_v17 = vsel %vm2874_vm0, %v2873_v52, 0  ;;  %v6626_v43 = vshll.u32 %v2871_v26, 8  ;;  %v2710_v20 = vmul.u32 %v6572_v5, %v2694_v10  ;;  %v2713_v22 = vadd.s32 1, %v6622_v30  ;;  %v3096_v26 = vld [vmem:[%s7189_s9 + $0x8] sm:$0xff]  ;;  %v3095_v5 = vld [vmem:[%s7189_s9] sm:$0xff]  ;;  %v3097_v10 = vld [vmem:[%s7189_s9 + $0x10] sm:$0xff] }
 0x26f   : > { %v2877_v44 = vand.u32 31, %v2875_v17  ;;  %vm2978_vm1 = vcmp.gt.s32.totalorder %v2977_v25, 0  ;;  %vm2712_vm2 = vc.u32 %v6618_v4, %v6621_v29  ;;  %v6635_v45 = vshrl.u32 %v2875_v17, 5  ;;  %3118 = vperm.xlu1 %4509, %v3096_v26   ;;  %3113 = vperm.xlu0 %4508, %v3095_v5  }
 0x270   : > { %v2979_v33 = vsel %vm2978_vm1, %v2977_v25, 0  ;;  %v6645_v16 = vshll.u32 %v2975_v24, 8  ;;  %v2714_v21 = vsel %vm2712_vm2, %v2713_v22, %v6622_v30  ;;  %v2648_v7 = vxor.u32 2147483648, %v6588_v41 }
 0x271   : > { %v2878_v31 = vsub.s32 32, %v2877_v44  ;;  %v2880_v13 = vshll.u32 %v7346_v14, %v2877_v44  ;;  %v2883_v8 = vshll.u32 %v7350_v46, %v2877_v44  ;;  %v2886_v47 = vshll.u32 %v7351_v28, %v2877_v44 }
 0x272   : > { %v2889_v52 = vshll.u32 %v7342_v60, %v2877_v44  ;;  %v2715_v40 = vadd.s32 %v2714_v21, %v2710_v20  ;;  %v2892_v30 = vshll.u32 %v7343_v0, %v2877_v44  ;;  %vm2895_vm5 = vcmp.lt.s32.totalorder %v6635_v45, 1  ;;  %v3099_v44 = vld [vmem:[%s7189_s9 + $0x20] sm:$0xff] }
 0x273   : > { %v2881_v3 = vshrl.u32 %v7350_v46, %v2878_v31  ;;  %v2884_v49 = vshrl.u32 %v7351_v28, %v2878_v31  ;;  %v2887_v24 = vshrl.u32 %v7342_v60, %v2878_v31  ;;  %v2890_v25 = vshrl.u32 %v7343_v0, %v2878_v31  ;;  %3123 = vperm.xlu1 %4509, %v3097_v10   ;;  %v6672_v37 = vpop.eup %4639 }
 0x274   : > { %v2893_v17 = vshrl.u32 %v7328_v50, %v2878_v31  ;;  %v2716_v22 = vadd.s32 536870912, %v2715_v40  ;;  %v2879_v26 = vshrl.u32 %v7346_v14, %v2878_v31  ;;  %3128 = vperm.xlu0 %4508, %v3098_v56   ;;  %vm2896_vm4 = vcmp.lt.s32.totalorder %v6635_v45, 2 }
 0x275   : > { %v2882_v5 = vor.u32 %v2881_v3, %v2880_v13  ;;  %v2885_v11 = vor.u32 %v2884_v49, %v2883_v8  ;;  %v2888_v20 = vor.u32 %v2887_v24, %v2886_v47  ;;  %v2891_v21 = vor.u32 %v2890_v25, %v2889_v52 }
 0x276   : > { %v2894_v15 = vor.u32 %v2893_v17, %v2892_v30  ;;  %v6674_v31 = vshrl.u32 %v2716_v22, 30  ;;  %vm2897_vm0 = vcmp.lt.s32.totalorder %v6635_v45, 3  ;;  %vm2898_vm1 = vcmp.lt.s32.totalorder %v6635_v45, 4  ;;  %v3104_v45 = vld [vmem:[%s7189_s9 + $0x48] sm:$0xff] }
 0x277   : > { %v2903_v13 = vsel %vm2895_vm5, %v2882_v5, %v2885_v11  ;;  %v6680_v8 = vpop.eup %4641  ;;  %v2900_v47 = vsel %vm2898_vm1, %v2888_v20, 2102212464  ;;  %v2904_v52 = vsel %vm2898_vm1, %v2891_v21, 920167782  ;;  %v2907_v10 = vsel %vm2895_vm5, %v2885_v11, %v2888_v20  ;;  %3133 = vperm.xlu1 %4509, %v3099_v44  }
 0x278   : > { %7419 = vst [vmem:[#allocation39_spill] sm:$0xff] %v6674_v31  ;;  %v2908_v56 = vsel %vm2898_vm1, %v2894_v15, 1326507024  ;;  %v2718_v3 = vshll.u32 %v6674_v31, 30  ;;  %v2899_v49 = vsel %vm2895_vm5, %v2879_v26, %v2882_v5  ;;  %v2905_v30 = vsel %vm2897_vm0, %v2888_v20, %v2904_v52  ;;  %3138 = vperm.xlu0 %4508, %v3100_v63   ;;  %v3101_v15 = vld [vmem:[%s7189_s9 + $0x30] sm:$0xff]  ;;  %v3102_v26 = vld [vmem:[%s7189_s9 + $0x38] sm:$0xff] }
 0x279   : > { %v2909_v24 = vsel %vm2897_vm0, %v2891_v21, %v2908_v56  ;;  %v2901_v25 = vsel %vm2897_vm0, %v2885_v11, %v2900_v47  ;;  %v2906_v17 = vsel %vm2896_vm4, %v2903_v13, %v2905_v30  ;;  %v2981_v55 = vand.u32 31, %v2979_v33  ;;  %v3103_v30 = vld [vmem:[%s7189_s9 + $0x40] sm:$0xff] }
 0x27a   : > { %v2910_v22 = vsel %vm2896_vm4, %v2907_v10, %v2909_v24  ;;  %v6699_v5 = vadd.s32 %v6621_v29, %v6618_v4  ;;  %v6701_v63 = vsub.s32 %v2715_v40, %v2718_v3  ;;  %v6712_v13 = vshrl.u32 %v2979_v33, 5 }
 0x27b   : > { %v6704_v11 = vmul.u32.u64.low %v6626_v43, %v2910_v22  ;;  %v6705_v20 = vmul.u32.u64.high %v6626_v43, %v2910_v22, %v6704_v11  ;;  %v6708_v21 = vmul.u32.u64.low %v6626_v43, %v2906_v17  ;;  %v6709_v44 = vmul.u32.u64.high %v6626_v43, %v2906_v17, %v6708_v21  ;;  %3143 = vperm.xlu1 %4509, %v3101_v15  }
 0x27c   : > { %v2982_v47 = vsub.s32 32, %v2981_v55  ;;  %v2721_v52 = vsub.s32 0, %v6701_v63  ;;  %v2902_v4 = vsel %vm2896_vm4, %v2899_v49, %v2901_v25  ;;  %v2984_v29 = vshll.u32 %v7346_v14, %v2981_v55  ;;  %3148 = vperm.xlu0 %4508, %v3102_v26  }
 0x27d   : > { %v2987_v40 = vshll.u32 %v7350_v46, %v2981_v55  ;;  %v2990_v3 = vshll.u32 %v7351_v28, %v2981_v55  ;;  %vm2920_vm2 = vc.u32 %v6705_v20, %v6708_v21  ;;  %v2918_v26 = vmul.u32 %v6626_v43, %v2902_v4  ;;  %v3106_v43 = vld [vmem:[%s7189_s9 + $0x58] sm:$0xff] }
 0x27e   : > { %v2985_v10 = vshrl.u32 %v7350_v46, %v2982_v47  ;;  %v2988_v56 = vshrl.u32 %v7351_v28, %v2982_v47  ;;  %v2991_v33 = vshrl.u32 %v7342_v60, %v2982_v47  ;;  %v4010_v49 = vmin.u32 %v2721_v52, %v6701_v63 }
 0x27f   : > { %v2993_v46 = vshll.u32 %v7342_v60, %v2981_v55  ;;  %v2994_v24 = vshrl.u32 %v7343_v0, %v2982_v47  ;;  %v2921_v28 = vadd.s32 1, %v6709_v44  ;;  %v2997_v31 = vshrl.u32 %v7328_v50, %v2982_v47  ;;  %3153 = vperm.xlu1 %4509, %v3103_v30   ;;  %v3108_v30 = vld [vmem:[%s7189_s9 + $0x68] sm:$0xff] }
 0x280   : > { %v2986_v25 = vor.u32 %v2985_v10, %v2984_v29  ;;  %v2989_v17 = vor.u32 %v2988_v56, %v2987_v40  ;;  %v2992_v22 = vor.u32 %v2991_v33, %v2990_v3  ;;  %v2723_v15 = vclz %v4010_v49  ;;  %3158 = vperm.xlu0 %4508, %v3104_v45   ;;  %v3105_v29 = vld [vmem:[%s7189_s9 + $0x50] sm:$0xff]  ;;  %v3107_v33 = vld [vmem:[%s7189_s9 + $0x60] sm:$0xff] }
 0x281   : > { %v2995_v11 = vor.u32 %v2994_v24, %v2993_v46  ;;  %v2922_v52 = vsel %vm2920_vm2, %v2921_v28, %v6709_v44  ;;  %v2983_v38 = vshrl.u32 %v7346_v14, %v2982_v47  ;;  %v2996_v60 = vshll.u32 %v7343_v0, %v2981_v55 }
 0x282   : > { %vm2999_vm5 = vcmp.lt.s32.totalorder %v6712_v13, 1  ;;  %v4011_v4 = vadd.s32 4294967294, %v2723_v15  ;;  %v2923_v50 = vadd.s32 %v2922_v52, %v2918_v26  ;;  %vm3001_vm4 = vcmp.lt.s32.totalorder %v6712_v13, 3 }
 0x283   : > { %vm3002_vm0 = vcmp.lt.s32.totalorder %v6712_v13, 4  ;;  %v2998_v44 = vor.u32 %v2997_v31, %v2996_v60  ;;  %v3007_v0 = vsel %vm2999_vm5, %v2986_v25, %v2989_v17  ;;  %vm3000_vm2 = vcmp.lt.s32.totalorder %v6712_v13, 2  ;;  %3163 = vperm.xlu1 %4509, %v3105_v29   ;;  %v7422_v13 = vld [vmem:[#allocation24_spill] sm:$0xff] }
 0x284   : > { %v3004_v14 = vsel %vm3002_vm0, %v2992_v22, 2102212464  ;;  %v3008_v55 = vsel %vm3002_vm0, %v2995_v11, 920167782  ;;  %vm4012_vm1 = vcmp.lt.s32.totalorder %v4011_v4, 0  ;;  %v2924_v47 = vadd.s32 536870912, %v2923_v50  ;;  %3168 = vperm.xlu0 %4508, %v3106_v43  }
 0x285   : > { %v3009_v40 = vsel %vm3001_vm4, %v2992_v22, %v3008_v55  ;;  %v2726_v10 = vsel %vm4012_vm1, 0, %v4011_v4  ;;  %v3003_v31 = vsel %vm2999_vm5, %v2983_v38, %v2986_v25  ;;  %v3005_v56 = vsel %vm3001_vm4, %v2989_v17, %v3004_v14  ;;  %v7421_v4 = vld [vmem:[#allocation28_spill] sm:$0xff] }
 0x286   : > { %v3010_v3 = vsel %vm3000_vm2, %v3007_v0, %v3009_v40  ;;  %v2727_v45 = vsub.s32 32, %v2726_v10  ;;  %v2731_v49 = vsub.s32 4294967266, %v2726_v10  ;;  %v6770_v46 = vshrl.u32 %v2924_v47, 30 }
 0x287   : > { %v3011_v38 = vsel %vm2999_vm5, %v2989_v17, %v2992_v22  ;;  %v2728_v24 = vshll.u32 %v6701_v63, %v2726_v10  ;;  %v3012_v28 = vsel %vm3002_vm0, %v2998_v44, 1326507024  ;;  %3173 = vperm.xlu1 %4509, %v3107_v33   ;;  %v7420_v17 = vsel %vm6074_vm11, 0, %v6583_v51  ;;  %v3109_v44 = vld [vmem:[%s7189_s9 + $0x70] sm:$0xff] }
 0x288   : > { %v6778_v25 = vmul.u32.u64.low %v6645_v16, %v3010_v3  ;;  %v6779_v15 = vmul.u32.u64.high %v6645_v16, %v3010_v3, %v6778_v25  ;;  %v2729_v26 = vshrl.u32 %v6699_v5, %v2727_v45  ;;  %v2732_v52 = vadd.s32 127, %v2731_v49  ;;  %3178 = vperm.xlu0 %4508, %v3108_v30   ;;  %v3381_v45 = vld [vmem:[%s7191_s11 + $0x28] sm:$0xff] }
 0x289   : > { %v2926_v60 = vshll.u32 %v6770_v46, 30  ;;  %v3013_v29 = vsel %vm3001_vm4, %v2995_v11, %v3012_v28  ;;  %v1916_v22 = vadd.s32 3, %v7420_v17  ;;  %v1923_v43 = vxor.u32 2147483648, %v6159_v34  ;;  %v3110_v11 = vld [vmem:[%s7189_s9 + $0x78] sm:$0xff]  ;;  %v3377_v28 = vld [vmem:[%s7191_s11 + $0x8] sm:$0xff] }
 0x28a   : > { %v3014_v63 = vsel %vm3000_vm2, %v3011_v38, %v3013_v29  ;;  %v2013_v5 = vsub.s32 4, %v7421_v4  ;;  %v2730_v14 = vor.u32 %v2729_v26, %v2728_v24  ;;  %v2733_v0 = vshll.u32 %v2732_v52, 23  ;;  %v3376_v24 = vld [vmem:[%s7191_s11] sm:$0xff] }
 0x28b   : > { %v6799_v55 = vsub.s32 %v2923_v50, %v2926_v60  ;;  %v3006_v48 = vsel %vm3000_vm2, %v3003_v31, %v3005_v56  ;;  %vm2657_vm11 = vcmp.lt.s32.totalorder %v6519_v23, 0  ;;  %v6806_v51 = vadd.s32 %v6708_v21, %v6705_v20  ;;  %3183 = vperm.xlu1 %4509, %v3109_v44  }
 0x28c   : > { %v6809_v47 = vmul.u32.u64.low %v6645_v16, %v3014_v63  ;;  %v6810_v40 = vmul.u32.u64.high %v6645_v16, %v3014_v63, %v6809_v47  ;;  %v1917_v10 = vand.u32 3, %v1916_v22  ;;  %v2734_v3 = vor.u32 4788187, %v2733_v0  ;;  %3188 = vperm.xlu0 %4508, %v3110_v11  }
 0x28d   : > { %v2929_v33 = vsub.s32 0, %v6799_v55  ;;  %v3025_v50 = vadd.s32 1, %v6779_v15  ;;  %vm1915_vm5 = vweird.f32 %v5694_v61  ;;  %vm7423_vm4 = vcmp.lt.s32.totalorder %v7422_v13, 0  ;;  %v7430_v47 = vld [vmem:[#allocation43_spill] sm:$0xff] }
 0x28e   : > { %v2014_v31 = vsel %vm7423_vm4, %v2013_v5, %v7421_v4  ;;  %v7424_v20 = vand.u32 2147483647, %v6519_v23  ;;  %v2737_v56 = vcvt.s32.f32 %v2730_v14  ;;  %v3022_v30 = vmul.u32 %v6645_v16, %v3006_v48  ;;  %v7429_v14 = vld [vmem:[#allocation40_spill] sm:$0xff] }
 0x28f   : > { %v2016_v49 = vsel %vm5886_vm14, 0, %v2014_v31  ;;  %v2024_v38 = vxor.u32 2147483648, %v6124_v12  ;;  %v2735_v26 = vand.u32 2147483647, %v2734_v3  ;;  %v4018_v52 = vmin.u32 %v2929_v33, %v6799_v55  ;;  %3394 = vperm.xlu1 %4509, %v3376_v24  }
 0x290   : > { %vm6820_vm0 = vcmp.le.f32.partialorder %v7424_v20, 0.7853982  ;;  %vm1919_vm1 = vcmp.eq.s32.totalorder %v1917_v10, 0  ;;  %vm1922_vm2 = vcmp.eq.s32.totalorder %v1917_v10, 2  ;;  %vm2019_vm4 = vweird.f32 %v7422_v13  ;;  %3399 = vperm.xlu0 %4508, %v3377_v28  }
 0x291   : > { %vm3024_vm3 = vc.u32 %v6810_v40, %v6778_v25  ;;  %v7428_v16 = vxor.u32 2147483648, %v6288_v35  ;;  %v1924_v29 = vsel %vm1922_vm2, %v1923_v43, %v6288_v35  ;;  %v2020_v63 = vadd.s32 3, %v2016_v49  ;;  %v3379_v35 = vld [vmem:[%s7191_s11 + $0x18] sm:$0xff] }
 0x292   : > { %v2738_v17 = vmul.f32 %v2737_v56, %v2735_v26  ;;  %v2931_v22 = vclz %v4018_v52  ;;  %v3026_v4 = vsel %vm3024_vm3, %v3025_v50, %v6779_v15  ;;  %vm1918_vm14 = vcmp.lt.s32.totalorder %v1917_v10, 2 }
 0x293   : > { %v1921_v60 = vsel %vm1919_vm1, %v6159_v34, %v7428_v16  ;;  %v6843_v5 = vadd.s32 %v6778_v25, %v6810_v40  ;;  %v3027_v44 = vadd.s32 %v3026_v4, %v3022_v30  ;;  %v2021_v11 = vand.u32 3, %v2020_v63  ;;  %v3378_v34 = vld [vmem:[%s7191_s11 + $0x10] sm:$0xff]  ;;  %v3380_v30 = vld [vmem:[%s7191_s11 + $0x20] sm:$0xff] }
 0x294   : > { %v2027_v0 = vxor.u32 2147483648, %v7429_v14  ;;  %v2739_v43 = vxor.u32 2147483648, %v2738_v17  ;;  %v4019_v15 = vadd.s32 4294967294, %v2931_v22  ;;  %v1925_v48 = vsel %vm1918_vm14, %v1921_v60, %v1924_v29  ;;  %3404 = vperm.xlu1 %4509, %v3378_v34   ;;  %3409 = vperm.xlu0 %4508, %v3379_v35   ;;  %v3382_v4 = vld [vmem:[%s7191_s11 + $0x30] sm:$0xff]  ;;  %v7433_v34 = vld [vmem:[#allocation26_spill] sm:$0xff] }
 0x295   : > { %v2117_v10 = vsub.s32 4, %v7430_v47  ;;  %v3028_v3 = vadd.s32 536870912, %v3027_v44  ;;  %vm2022_vm3 = vcmp.lt.s32.totalorder %v2021_v11, 2  ;;  %vm2023_vm1 = vcmp.eq.s32.totalorder %v2021_v11, 0 }
 0x296   : > { %vm2026_vm2 = vcmp.eq.s32.totalorder %v2021_v11, 2  ;;  %v2740_v25 = vsel %vm2657_vm11, %v2739_v43, %v2738_v17  ;;  %vm4020_vm6 = vcmp.lt.s32.totalorder %v4019_v15, 0  ;;  %v2025_v40 = vsel %vm2023_vm1, %v7429_v14, %v2024_v38  ;;  %v7432_v17 = vld [vmem:[#allocation30_spill] sm:$0xff]  ;;  %v7435_v43 = vld [vmem:[#allocation45_spill] sm:$0xff] }
 0x297   : > { %v2028_v33 = vsel %vm2026_vm2, %v2027_v0, %v6124_v12  ;;  %v2934_v50 = vsel %vm4020_vm6, 0, %v4019_v15  ;;  %v6857_v31 = vshrl.u32 %v3028_v3, 30  ;;  %v1926_v20 = vsel %vm1915_vm5, nan, %v1925_v48 }
 0x298   : > { %v2029_v56 = vsel %vm2022_vm3, %v2025_v40, %v2028_v33  ;;  %v2743_v12 = vsel %vm6820_vm0, %v6519_v23, %v2740_v25  ;;  %v2935_v49 = vsub.s32 32, %v2934_v50  ;;  %v2939_v38 = vsub.s32 4294967266, %v2934_v50  ;;  %3414 = vperm.xlu1 %4509, %v3380_v30   ;;  %3419 = vperm.xlu0 %4508, %v3381_v45   ;;  %v7440_v33 = vld [vmem:[#allocation49_spill] sm:$0xff]  ;;  %v3385_v30 = vld [vmem:[%s7191_s11 + $0x48] sm:$0xff] }
 0x299   : > { %v2128_v24 = vxor.u32 2147483648, %v6323_v27  ;;  %v2936_v61 = vshll.u32 %v6799_v55, %v2934_v50  ;;  %v3030_v28 = vshll.u32 %v6857_v31, 30  ;;  %v2030_v26 = vsel %vm2019_vm4, nan, %v2029_v56  ;;  %v3384_v56 = vld [vmem:[%s7191_s11 + $0x40] sm:$0xff] }
 0x29a   : > { %vm7431_vm6 = vcmp.lt.s32.totalorder %v5912_v36, 0  ;;  %v2937_v16 = vshrl.u32 %v6806_v51, %v2935_v49  ;;  %v2940_v60 = vadd.s32 127, %v2939_v38  ;;  %v3089_v29 = vpack.c.bf16 %v2030_v26, %v1926_v20  ;;  %v3383_v51 = vld [vmem:[%s7191_s11 + $0x38] sm:$0xff]  ;;  %v3388_v25 = vld [vmem:[%s7191_s11 + $0x60] sm:$0xff] }
 0x29b   : > { %v2118_v52 = vsel %vm7431_vm6, %v2117_v10, %v7430_v47  ;;  %vm2123_vm5 = vweird.f32 %v5912_v36  ;;  %4643 = vcosq.f32 %v2743_v12  ;;  %v6882_v55 = vsub.s32 %v3027_v44, %v3030_v28  ;;  %v7441_v26 = vld [vmem:[#allocation44_spill] sm:$0xff] }
 0x29c   : > { %v2120_v63 = vsel %vm6254_vm9, 0, %v2118_v52  ;;  %v2221_v22 = vsub.s32 4, %v7432_v17  ;;  %4645 = vsinq.f32 %v2743_v12  ;;  %v2938_v62 = vor.u32 %v2937_v16, %v2936_v61  ;;  %4194 = vmatprep.subr.bf16.mxu0 %v3089_v29  ;;  %3424 = vperm.xlu1 %4509, %v3382_v4  }
 0x29d   : > { %v2124_v13 = vadd.s32 3, %v2120_v63  ;;  %v2941_v11 = vshll.u32 %v2940_v60, 23  ;;  %v2131_v14 = vxor.u32 2147483648, %v6319_v1  ;;  %vm2865_vm9 = vcmp.lt.s32.totalorder %v6535_v19, 0  ;;  %4195 = vmatpush3.bf16.msra.mxu0 %v3089_v29  ;;  %3429 = vperm.xlu0 %4508, %v3383_v51  }
 0x29e   : > { %v3033_v44 = vsub.s32 0, %v6882_v55  ;;  %vm7434_vm4 = vcmp.lt.s32.totalorder %v7433_v34, 0  ;;  %v2232_v15 = vxor.u32 2147483648, %v7435_v43  ;;  %v7436_v48 = vand.u32 2147483647, %v6535_v19 }
 0x29f   : > { %v2125_v0 = vand.u32 3, %v2124_v13  ;;  %v2222_v35 = vsel %vm7434_vm4, %v2221_v22, %v7432_v17  ;;  %v2942_v10 = vor.u32 4788187, %v2941_v11  ;;  %v2945_v3 = vcvt.s32.f32 %v2938_v62  ;;  %v3386_v17 = vld [vmem:[%s7191_s11 + $0x50] sm:$0xff]  ;;  %v3387_v22 = vld [vmem:[%s7191_s11 + $0x58] sm:$0xff] }
 0x2a0   : > { %vm6900_vm14 = vcmp.le.f32.partialorder %v7436_v48, 0.7853982  ;;  %v2224_v40 = vsel %vm6051_vm13, 0, %v2222_v35  ;;  %v2325_v50 = vsub.s32 4, %v7440_v33  ;;  %v4022_v20 = vmin.u32 %v3033_v44, %v6882_v55  ;;  %3434 = vperm.xlu1 %4509, %v3384_v56   ;;  %v7443_v35 = vld [vmem:[#allocation42_spill] sm:$0xff] }
 0x2a1   : > { %vm2126_vm3 = vcmp.lt.s32.totalorder %v2125_v0, 2  ;;  %vm2127_vm1 = vcmp.eq.s32.totalorder %v2125_v0, 0  ;;  %vm2130_vm2 = vcmp.eq.s32.totalorder %v2125_v0, 2  ;;  %v2943_v45 = vand.u32 2147483647, %v2942_v10  ;;  %3439 = vperm.xlu0 %4508, %v3385_v30  }
 0x2a2   : > { %v2129_v12 = vsel %vm2127_vm1, %v6319_v1, %v2128_v24  ;;  %v2132_v49 = vsel %vm2130_vm2, %v2131_v14, %v6323_v27  ;;  %v2228_v38 = vadd.s32 3, %v2224_v40  ;;  %v3035_v61 = vclz %v4022_v20  ;;  %v3389_v40 = vld [vmem:[%s7191_s11 + $0x68] sm:$0xff] }
 0x2a3   : > { %v2133_v28 = vsel %vm2126_vm3, %v2129_v12, %v2132_v49  ;;  %v2235_v52 = vxor.u32 2147483648, %v7441_v26  ;;  %vm7442_vm13 = vcmp.lt.s32.totalorder %v6068_v54, 0  ;;  %v2946_v60 = vmul.f32 %v2945_v3, %v2943_v45  ;;  %v7444_v12 = vld [vmem:[#allocation29_spill] sm:$0xff] }
 0x2a4   : > { %v2326_v16 = vsel %vm7442_vm13, %v2325_v50, %v7440_v33  ;;  %vm2227_vm6 = vweird.f32 %v7433_v34  ;;  %v2229_v29 = vand.u32 3, %v2228_v38  ;;  %v4023_v1 = vadd.s32 4294967294, %v3035_v61  ;;  %3444 = vperm.xlu1 %4509, %v3386_v17   ;;  %v7456_v61 = vld [vmem:[#allocation56_spill] sm:$0xff] }
 0x2a5   : > { %v2328_v63 = vsel %vm6388_vm8, 0, %v2326_v16  ;;  %v2134_v27 = vsel %vm2123_vm5, nan, %v2133_v28  ;;  %v2336_v13 = vxor.u32 2147483648, %v6601_v32  ;;  %v2947_v4 = vxor.u32 2147483648, %v2946_v60  ;;  %v6932_v9 = vpop.eup %4643  ;;  %3449 = vperm.xlu0 %4508, %v3387_v22   ;;  %v4567_v28 = vld [vmem:[#allocation7] sm:$0xff]  }
 0x2a6   : > { %v2332_v24 = vadd.s32 3, %v2328_v63  ;;  %vm2230_vm4 = vcmp.lt.s32.totalorder %v2229_v29, 2  ;;  %vm2231_vm8 = vcmp.eq.s32.totalorder %v2229_v29, 0  ;;  %vm2234_vm3 = vcmp.eq.s32.totalorder %v2229_v29, 2  ;;  %v6936_v11 = vpop.eup %4645  ;;  %v7450_v63 = vld [vmem:[#allocation51_spill] sm:$0xff] }
 0x2a7   : > { %vm4024_vm1 = vcmp.lt.s32.totalorder %v4023_v1, 0  ;;  %v2233_v36 = vsel %vm2231_vm8, %v7441_v26, %v2232_v15  ;;  %v2236_v51 = vsel %vm2234_vm3, %v2235_v52, %v7435_v43  ;;  %v2948_v14 = vsel %vm2865_vm9, %v2947_v4, %v2946_v60 }
 0x2a8   : > { %v2333_v62 = vand.u32 3, %v2332_v24  ;;  %v3038_v44 = vsel %vm4024_vm1, 0, %v4023_v1  ;;  %v2237_v0 = vsel %vm2230_vm4, %v2233_v36, %v2236_v51  ;;  %v2429_v48 = vsub.s32 4, %v7443_v35  ;;  %3454 = vperm.xlu1 %4509, %v3388_v25  }
 0x2a9   : > { %v2951_v10 = vsel %vm6900_vm14, %v6535_v19, %v2948_v14  ;;  %v3039_v3 = vsub.s32 32, %v3038_v44  ;;  %v3043_v15 = vsub.s32 4294967266, %v3038_v44  ;;  %v2339_v43 = vxor.u32 2147483648, %v6594_v6  ;;  %3459 = vperm.xlu0 %4508, %v3389_v40   ;;  %v7452_v14 = vld [vmem:[#allocation48_spill] sm:$0xff] }
 0x2aa   : > { %4647 = vcosq.f32 %v2951_v10  ;;  %v3040_v33 = vshll.u32 %v6882_v55, %v3038_v44  ;;  %v2238_v50 = vsel %vm2227_vm6, nan, %v2237_v0  ;;  %vm2335_vm5 = vcmp.eq.s32.totalorder %v2333_v62, 0  ;;  %v4568_v0 = vld [vmem:[#allocation7 + $0x8] sm:$0xff]  }
 0x2ab   : > { %v3041_v20 = vshrl.u32 %v6843_v5, %v3039_v3  ;;  %v3044_v56 = vadd.s32 127, %v3043_v15  ;;  %v3090_v30 = vpack.c.bf16 %v2238_v50, %v2134_v27  ;;  %vm2334_vm2 = vcmp.lt.s32.totalorder %v2333_v62, 2  ;;  %v7451_v27 = vld [vmem:[#allocation50_spill] sm:$0xff] }
 0x2ac   : > { %v2337_v45 = vsel %vm2335_vm5, %v6594_v6, %v2336_v13  ;;  %vm2338_vm13 = vcmp.eq.s32.totalorder %v2333_v62, 2  ;;  %vm7445_vm4 = vcmp.lt.s32.totalorder %v7444_v12, 0  ;;  %v3390_v6 = vld [vmem:[%s7191_s11 + $0x70] sm:$0xff]  ;;  %4649 = vsinq.f32 %v2951_v10 }
 0x2ad   : > { %v2430_v49 = vsel %vm7445_vm4, %v2429_v48, %v7443_v35  ;;  %v3042_v38 = vor.u32 %v3041_v20, %v3040_v33  ;;  %v3045_v55 = vshll.u32 %v3044_v56, 23  ;;  %4196 = vmatprep.subr.bf16.mxu0 %v3090_v30  ;;  %v2340_v34 = vsel %vm2338_vm13, %v2339_v43, %v6601_v32  ;;  %v3391_v32 = vld [vmem:[%s7191_s11 + $0x78] sm:$0xff]  ;;  %3464 = vperm.xlu1 %4509, %v3390_v6   ;;  %v4569_v56 = vld [vmem:[#allocation7 + $0x10] sm:$0xff]   ;;  %v7458_v6 = vld [vmem:[#allocation55_spill] sm:$0xff] }
 0x2ae   : > { %v2432_v5 = vsel %vm6203_vm15, 0, %v2430_v49  ;;  %vm2969_vm6 = vcmp.lt.s32.totalorder %v6544_v57, 0  ;;  %4197 = vmatpush3.bf16.msra.mxu0 %v3090_v30  ;;  %vm2331_vm8 = vweird.f32 %v6068_v54  ;;  %v2341_v26 = vsel %vm2334_vm2, %v2337_v45, %v2340_v34  ;;  %3469 = vperm.xlu0 %4508, %v3391_v32   ;;  %v7455_v34 = vld [vmem:[#allocation54_spill] sm:$0xff] }
 0x2af   : > { %v2436_v52 = vadd.s32 3, %v2432_v5  ;;  %v7447_v16 = vand.u32 2147483647, %v6544_v57  ;;  %v3046_v29 = vor.u32 4788187, %v3045_v55  ;;  %v2440_v1 = vxor.u32 2147483648, %v7450_v63 }
 0x2b0   : > { %v2443_v24 = vxor.u32 2147483648, %v7451_v27  ;;  %v3049_v13 = vcvt.s32.f32 %v3042_v38  ;;  %vm2435_vm3 = vweird.f32 %v7444_v12  ;;  %v4870_v22 = vmov 0.0  }
 0x2b1   : > { %vm6973_vm15 = vcmp.le.f32.partialorder %v7447_v16, 0.7853982  ;;  %v2437_v17 = vand.u32 3, %v2436_v52  ;;  %4170 = vmatprep.subr.bf16.mxu1 %v4870_v22  ;;  %v2533_v4 = vsub.s32 4, %v6477_v58  ;;  %v3047_v36 = vand.u32 2147483647, %v3046_v29 }
 0x2b2   : > { %v2342_v51 = vsel %vm2331_vm8, nan, %v2341_v26  ;;  %4171 = vmatpush3.bf16.msra.mxu1 %v4567_v28  ;;  %v2544_v62 = vxor.u32 2147483648, %v6680_v8  ;;  %v2637_v44 = vsub.s32 4, %v7452_v14  ;;  %vm7453_vm13 = vcmp.lt.s32.totalorder %v6185_v53, 0  ;;  %v7457_v28 = vld [vmem:[#allocation53_spill] sm:$0xff] }
 0x2b3   : > { %vm2438_vm1 = vcmp.lt.s32.totalorder %v2437_v17, 2  ;;  %vm2439_vm5 = vcmp.eq.s32.totalorder %v2437_v17, 0  ;;  %vm2442_vm2 = vcmp.eq.s32.totalorder %v2437_v17, 2  ;;  %v2534_v35 = vsel %vm7453_vm13, %v2533_v4, %v6477_v58  ;;  %4172 = vmatprep.subr.bf16.mxu1 %v4870_v22 }
 0x2b4   : > { %v3050_v48 = vmul.f32 %v3049_v13, %v3047_v36  ;;  %v2441_v54 = vsel %vm2439_vm5, %v7451_v27, %v2440_v1  ;;  %v2444_v10 = vsel %vm2442_vm2, %v2443_v24, %v7450_v63  ;;  %v2536_v3 = vsel %vm6566_vm12, 0, %v2534_v35  ;;  %v6994_v15 = vpop.eup %4647  ;;  %v4570_v1 = vld [vmem:[#allocation7 + $0x18] sm:$0xff]   ;;  %v4571_v36 = vld [vmem:[#allocation7 + $0x20] sm:$0xff]  }
 0x2b5   : > { %v2445_v43 = vsel %vm2438_vm1, %v2441_v54, %v2444_v10  ;;  %v2540_v25 = vadd.s32 3, %v2536_v3  ;;  %v2547_v40 = vxor.u32 2147483648, %v6672_v37  ;;  %vm7454_vm4 = vcmp.lt.s32.totalorder %v6063_v59, 0  ;;  %v7461_v54 = vld [vmem:[#allocation31_spill] sm:$0xff]  ;;  %v7462_v3 = vld [vmem:[#allocation46_spill] sm:$0xff] }
 0x2b6   : > { %v2638_v58 = vsel %vm7454_vm4, %v2637_v44, %v7452_v14  ;;  %v3051_v33 = vxor.u32 2147483648, %v3050_v48  ;;  %v2446_v50 = vsel %vm2435_vm3, nan, %v2445_v43  ;;  %4173 = vmatpush3.bf16.msra.mxu1 %v4568_v0  ;;  %v4063_v38 = vadd.f32 %v6446_v42, %v6435_v2  ;;  %v7018_v52 = vpop.eup %4649  ;;  %v7459_v42 = vld [vmem:[#allocation39_spill] sm:$0xff]  ;;  %v7464_v43 = vld [vmem:[#allocation57_spill] sm:$0xff] }
 0x2b7   : > { %v2640_v20 = vsel %vm6368_vm10, 0, %v2638_v58  ;;  %v3091_v30 = vpack.c.bf16 %v2446_v50, %v2342_v51  ;;  %v2541_v45 = vand.u32 3, %v2540_v25  ;;  %4174 = vmatprep.subr.bf16.mxu1 %v4870_v22  ;;  %v2651_v12 = vxor.u32 2147483648, %v6480_v18  ;;  %v7465_v25 = vld [vmem:[#allocation37_spill] sm:$0xff]  ;;  %v7466_v58 = vld [vmem:[#allocation27_spill] sm:$0xff] }
 0x2b8   : > { %v2644_v49 = vadd.s32 3, %v2640_v20  ;;  %v3052_v55 = vsel %vm2969_vm6, %v3051_v33, %v3050_v48  ;;  %v4066_v5 = vadd.f32 %v7456_v61, %v7455_v34  ;;  %v4085_v26 = vadd.f32 %v7458_v6, %v7457_v28  ;;  %v7467_v33 = vld [vmem:[#allocation36_spill] sm:$0xff] }
 0x2b9   : > { %v3055_v2 = vsel %vm6973_vm15, %v6544_v57, %v3052_v55  ;;  %4198 = vmatprep.subr.bf16.mxu0 %v3091_v30  ;;  %vm2543_vm10 = vcmp.eq.s32.totalorder %v2541_v45, 0  ;;  %vm2546_vm12 = vcmp.eq.s32.totalorder %v2541_v45, 2  ;;  %v2741_v32 = vsub.s32 4, %v7459_v42 }
 0x2ba   : > { %4199 = vmatpush3.bf16.msra.mxu0 %v3091_v30  ;;  %vm2542_vm8 = vcmp.lt.s32.totalorder %v2541_v45, 2  ;;  %v2545_v16 = vsel %vm2543_vm10, %v6672_v37, %v2544_v62  ;;  %v2548_v29 = vsel %vm2546_vm12, %v2547_v40, %v6680_v8  ;;  %v2645_v63 = vand.u32 3, %v2644_v49  ;;  %4175 = vmatpush3.bf16.msra.mxu1 %v4569_v56  ;;  %v7469_v56 = vld [vmem:[#allocation23_spill] sm:$0xff]  ;;  %v4572_v45 = vld [vmem:[#allocation7 + $0x28] sm:$0xff]   ;;  %v7470_v49 = vld [vmem:[#allocation25_spill] sm:$0xff] }
 0x2bb   : > { %4651 = vcosq.f32 %v3055_v2  ;;  %vm2539_vm3 = vweird.f32 %v6185_v53  ;;  %v2549_v27 = vsel %vm2542_vm8, %v2545_v16, %v2548_v29  ;;  %4176 = vmatprep.subr.bf16.mxu1 %v4870_v22  ;;  %v906_v24 = vadd.f32 %v4063_v38, %v3895_v39  ;;  %v7471_v38 = vld [vmem:[#allocation35_spill] sm:$0xff]  ;;  %v4573_v29 = vld [vmem:[#allocation7 + $0x30] sm:$0xff]  }
 0x2bc   : > { %v2550_v13 = vsel %vm2539_vm3, nan, %v2549_v27  ;;  %vm2646_vm1 = vcmp.lt.s32.totalorder %v2645_v63, 2  ;;  %vm2647_vm5 = vcmp.eq.s32.totalorder %v2645_v63, 0  ;;  %vm2650_vm2 = vcmp.eq.s32.totalorder %v2645_v63, 2 }
 0x2bd   : > { %v2649_v17 = vsel %vm2647_vm5, %v6480_v18, %v2648_v7  ;;  %v2652_v37 = vsel %vm2650_vm2, %v2651_v12, %v6588_v41  ;;  %v947_v4 = vadd.f32 %v4085_v26, %v906_v24  ;;  %v2742_v8 = vsel %vm2657_vm11, %v2741_v32, %v7459_v42  ;;  %v7460_v41 = vld [vmem:[#allocation52_spill] sm:$0xff] }
 0x2be   : > { %4653 = vsinq.f32 %v3055_v2  ;;  %vm2643_vm13 = vweird.f32 %v6063_v59  ;;  %v2653_v53 = vsel %vm2646_vm1, %v2649_v17, %v2652_v37  ;;  %4177 = vmatpush3.bf16.msra.mxu1 %v4570_v1  ;;  %v2744_v51 = vsel %vm6820_vm0, 0, %v2742_v8 }
 0x2bf   : > { %v2654_v62 = vsel %vm2643_vm13, nan, %v2653_v53  ;;  %4178 = vmatprep.subr.bf16.mxu1 %v4870_v22  ;;  %v909_v18 = vadd.f32 %v4066_v5, %v3895_v39  ;;  %v2748_v14 = vadd.s32 3, %v2744_v51  ;;  %v2845_v44 = vsub.s32 4, %v7460_v41 }
 0x2c0   : > { %v3092_v0 = vpack.c.bf16 %v2654_v62, %v2550_v13  ;;  %v2752_v35 = vxor.u32 2147483648, %v6936_v11  ;;  %v2755_v48 = vxor.u32 2147483648, %v6932_v9  ;;  %v2856_v59 = vxor.u32 2147483648, %v7461_v54 }
 0x2c1   : > { %v2749_v10 = vand.u32 3, %v2748_v14  ;;  %vm7463_vm11 = vcmp.lt.s32.totalorder %v7462_v3, 0  ;;  %v4088_v40 = vadd.f32 %v7465_v25, %v7464_v43  ;;  %v4107_v50 = vadd.f32 %v7467_v33, %v7466_v58  ;;  %v4580_v43 = vld [vmem:[#allocation9 + $0x28] sm:$0xff]   ;;  %v4581_v25 = vld [vmem:[#allocation9 + $0x30] sm:$0xff]  }
 0x2c2   : > { %v2846_v21 = vsel %vm7463_vm11, %v2845_v44, %v7460_v41  ;;  %4200 = vmatprep.subr.bf16.mxu0 %v3092_v0  ;;  %4179 = vmatpush3.bf16.msra.mxu1 %v4571_v36  ;;  %v2859_v30 = vxor.u32 2147483648, %v7469_v56  ;;  %v4110_v55 = vadd.f32 %v7471_v38, %v7470_v49  ;;  %v2949_v12 = vsub.s32 4, %v6770_v46  ;;  %v3950_v33 = vld [vmem:[%s7185_s5] ss:$0 sm:$0xff] }
 0x2c3   : > { %v2848_v7 = vsel %vm6549_vm7, 0, %v2846_v21  ;;  %4201 = vmatpush3.bf16.msra.mxu0 %v3092_v0  ;;  %4180 = vmatprep.subr.bf16.mxu1 %v4870_v22  ;;  %vm2750_vm0 = vcmp.lt.s32.totalorder %v2749_v10, 2  ;;  %vm2751_vm4 = vcmp.eq.s32.totalorder %v2749_v10, 0  ;;  %vm2754_vm10 = vcmp.eq.s32.totalorder %v2749_v10, 2  ;;  %v4577_v10 = vld [vmem:[#allocation9 + $0x10] sm:$0xff]   ;;  %v4579_v21 = vld [vmem:[#allocation9 + $0x20] sm:$0xff]  }
 0x2c4   : > { %v2852_v39 = vadd.s32 3, %v2848_v7  ;;  %v2753_v34 = vsel %vm2751_vm4, %v6932_v9, %v2752_v35  ;;  %v2756_v61 = vsel %vm2754_vm10, %v2755_v48, %v6936_v11  ;;  %v950_v5 = vadd.f32 %v4088_v40, %v909_v18 }
 0x2c5   : > { %v988_v28 = vadd.f32 %v4107_v50, %v947_v4  ;;  %v4652_v6 = vpop.eup %4651  ;;  %v2757_v26 = vsel %vm2750_vm0, %v2753_v34, %v2756_v61  ;;  %v2950_v42 = vsel %vm2865_vm9, %v2949_v12, %v6770_v46  ;;  %vm2747_vm7 = vweird.f32 %v6519_v23  ;;  %v4574_v4 = vld [vmem:[#allocation7 + $0x38] sm:$0xff]  }
 0x2c6   : > { %v2853_v2 = vand.u32 3, %v2852_v39  ;;  %4181 = vmatpush3.bf16.msra.mxu1 %v4572_v45  ;;  %v991_v16 = vadd.f32 %v4110_v55, %v950_v5  ;;  %v2952_v9 = vsel %vm6900_vm14, 0, %v2950_v42  ;;  %v2758_v63 = vsel %vm2747_vm7, nan, %v2757_v26 }
 0x2c7   : > { %v994_v32 = vmax.f32 %v988_v28, 0.0  ;;  %4182 = vmatprep.subr.bf16.mxu1 %v4870_v22  ;;  %v2956_v11 = vadd.s32 3, %v2952_v9  ;;  %vm2851_vm9 = vweird.f32 %v7462_v3  ;;  %v3053_v13 = vsub.s32 4, %v6857_v31  ;;  %v4578_v3 = vld [vmem:[#allocation9 + $0x18] sm:$0xff]  }
 0x2c8   : > { %vm2855_vm12 = vcmp.eq.s32.totalorder %v2853_v2, 0  ;;  %vm2858_vm8 = vcmp.eq.s32.totalorder %v2853_v2, 2  ;;  %v4654_v1 = vpop.eup %4653  ;;  %vm2854_vm3 = vcmp.lt.s32.totalorder %v2853_v2, 2  ;;  %v995_v23 = vmax.f32 %v991_v16, 0.0 }
 0x2c9   : > { %v2857_v27 = vsel %vm2855_vm12, %v7469_v56, %v2856_v59  ;;  %v2860_v46 = vsel %vm2858_vm8, %v2859_v30, %v7461_v54  ;;  %v2957_v37 = vand.u32 3, %v2956_v11  ;;  %v2960_v53 = vxor.u32 2147483648, %v7018_v52 }
 0x2ca   : > { %v2861_v24 = vsel %vm2854_vm3, %v2857_v27, %v2860_v46  ;;  %v996_v17 = vpack.c.bf16 %v995_v23, %v994_v32  ;;  %4183 = vmatpush3.bf16.msra.mxu1 %v4573_v29  ;;  %v2963_v36 = vxor.u32 2147483648, %v6994_v15  ;;  %v3054_v51 = vsel %vm2969_vm6, %v3053_v13, %v6857_v31 }
 0x2cb   : > { %v2862_v47 = vsel %vm2851_vm9, nan, %v2861_v24  ;;  %4184 = vmatprep.subr.bf16.mxu1 %v4870_v22  ;;  %v3056_v62 = vsel %vm6973_vm15, 0, %v3054_v51  ;;  %vm4871_vm14 = vmmov 0   ;;  %vm2959_vm1 = vcmp.eq.s32.totalorder %v2957_v37, 0 }
 0x2cc   : > { %v3093_v8 = vpack.c.bf16 %v2862_v47, %v2758_v63  ;;  %4186 = vmatprep.mubr.msk.bf16.mxu1 %vm4871_vm14, %v4870_v22  ;;  %vm2962_vm5 = vcmp.eq.s32.totalorder %v2957_v37, 2  ;;  %v3060_v18 = vadd.s32 3, %v3056_v62  ;;  %v2961_v14 = vsel %vm2959_vm1, %v6994_v15, %v2960_v53 }
 0x2cd   : > { %v2964_v41 = vsel %vm2962_vm5, %v2963_v36, %v7018_v52  ;;  %v3064_v44 = vxor.u32 2147483648, %v4654_v1  ;;  %v3067_v0 = vxor.u32 2147483648, %v4652_v6  ;;  %vm2958_vm6 = vcmp.lt.s32.totalorder %v2957_v37, 2  ;;  %v4576_v52 = vld [vmem:[#allocation9 + $0x8] sm:$0xff]  }
 0x2ce   : > { %4202 = vmatprep.subr.bf16.mxu0 %v3093_v8  ;;  %4185 = vmatpush3.bf16.msra.mxu1 %v4574_v4  ;;  %v3061_v35 = vand.u32 3, %v3060_v18  ;;  %v2965_v31 = vsel %vm2958_vm6, %v2961_v14, %v2964_v41  ;;  %vm2955_vm11 = vweird.f32 %v6535_v19  ;;  %vm3059_vm0 = vweird.f32 %v6544_v57  ;;  %v4582_v19 = vld [vmem:[#allocation9 + $0x38] sm:$0xff]   ;;  %v4583_v57 = vld [vmem:[#allocation10] sm:$0xff]  }
 0x2cf   : > { %4203 = vmatpush3.bf16.msra.mxu0 %v3093_v8  ;;  %v2966_v54 = vsel %vm2955_vm11, nan, %v2965_v31 }
 0x2d0   : > { %vm3063_vm2 = vcmp.eq.s32.totalorder %v3061_v35, 0  ;;  %vm3066_vm15 = vcmp.eq.s32.totalorder %v3061_v35, 2  ;;  %vm3062_vm13 = vcmp.lt.s32.totalorder %v3061_v35, 2 }
 0x2d1   : > { %4187 = vmatmul.mubr.bf16.vlgmr.msra.gmra.mrb[4].mxu1 %v996_v17  ;;  %v3065_v60 = vsel %vm3063_vm2, %v4652_v6, %v3064_v44  ;;  %v3068_v22 = vsel %vm3066_vm15, %v3067_v0, %v4654_v1 }
 0x2d2   : > { %v3069_v48 = vsel %vm3062_vm13, %v3065_v60, %v3068_v22  ;;  %4238 = vmatprep.mubr.bf16.mxu1 %v4583_v57 }
 0x2d3   : > { %v3070_v15 = vsel %vm3059_vm0, nan, %v3069_v48 }
 0x2d4   : > { %v3094_v59 = vpack.c.bf16 %v3070_v15, %v2966_v54 }
 0x2d6   : > { %4204 = vmatprep.subr.bf16.mxu0 %v3094_v59 }
 0x2d7   : > { %4205 = vmatpush3.bf16.msra.mxu0 %v3094_v59 }
 0x2da   : > { %4207 = vmatmul.mubr.bf16.vlgmr.msra.gmra.mrb[8].mxu0 %v4576_v52 }
 0x2db   : > { %4210 = vmatprep.mubr.bf16.mxu0 %v4577_v10 }
 0x2e2   : > { %4211 = vmatmul.mubr.bf16.gmra.mrb[12].mxu0 %v4578_v3 }
 0x2e3   : > { %4214 = vmatprep.mubr.bf16.mxu0 %v4579_v21 }
 0x2ea   : > { %4215 = vmatmul.mubr.bf16.gmra.mrb[16].mxu0 %v4580_v43 }
 0x2eb   : > { %4218 = vmatprep.mubr.bf16.mxu0 %v4581_v25 }
 0x2ee   : > { %v3119_v40 = vpop.permute.xlu1 %3118  ;;  %v3114_v58 = vpop.permute.xlu0 %3113 }
 0x2f2   : > { %4219 = vmatmul.mubr.bf16.gmra.mrb[20].mxu0 %v4582_v19  ;;  %v3124_v50 = vpop.permute.xlu1 %3123 }
 0x2f3   : > { %v3129_v7 = vpop.permute.xlu0 %3128 }
 0x2f6   : > { %v3134_v12 = vpop.permute.xlu1 %3133 }
 0x2f7   : > { %v3139_v34 = vpop.permute.xlu0 %3138 }
 0x2fa   : > { %v3144_v61 = vpop.permute.xlu1 %3143 }
 0x2fb   : > { %v3149_v26 = vpop.permute.xlu0 %3148 }
 0x2fe   : > { %v3154_v11 = vpop.permute.xlu1 %3153 }
 0x2ff   : > { %v3159_v23 = vpop.permute.xlu0 %3158 }
 0x302   : > { %v3164_v36 = vpop.permute.xlu1 %3163 }
 0x303   : > { %v3169_v14 = vpop.permute.xlu0 %3168 }
 0x306   : > { %v3174_v48 = vpop.permute.xlu1 %3173 }
 0x307   : > { %v3179_v10 = vpop.permute.xlu0 %3178 }
 0x3a4   : > { %v1102_v20 = vpop.f32.mrb[4].mxu1 }
 0x3a5   : > { %v7084_v56 = vadd.f32 %v3950_v33, %v1102_v20  ;;  %v4188_v30 = vpop.f32.mrb[5].mxu1 }
 0x3a6   : > { %v1105_v45 = vpop.f32.mrb[6].mxu1 }
 0x3a7   : > { %v7086_v49 = vadd.f32 %v3950_v33, %v1105_v45  ;;  %v3617_v38 = vmul.f32 %v7084_v56, %v7084_v56  ;;  %v4189_v55 = vpop.f32.mrb[7].mxu1 }
 0x3a9   : > { %3619 = vadd.xlane.f32.xlu1 %v3617_v38  ;;  %v3618_v39 = vmul.f32 %v7086_v49, %v7086_v49 }
 0x3ab   : > { %3621 = vadd.xlane.f32.xlu0 %v3618_v39 }
 0x3ad   : > { %v4208_v5 = vpop.f32.mrb[8].mxu0 }
 0x3ae   : > { %v3282_v28 = vadd.f32 %v4208_v5, %v3124_v50  ;;  %v3273_v6 = vpop.f32.mrb[9].mxu0 }
 0x3af   : > { %v3274_v2 = vadd.f32 %v3273_v6, %v3114_v58  ;;  %v4209_v42 = vpop.f32.mrb[10].mxu0 }
 0x3b0   : > { %v3285_v32 = vadd.f32 %v4209_v42, %v3129_v7  ;;  %v3276_v16 = vpop.f32.mrb[11].mxu0  ;;  %v3338_v9 = vmax.f32 %v3282_v28, 0.0  ;;  %v3189_v7 = vpop.permute.xlu0 %3188  ;;  %v4586_v42 = vld [vmem:[#allocation10 + $0x18] sm:$0xff]  }
 0x3b1   : > { %v3277_v29 = vadd.f32 %v3276_v16, %v3119_v40  ;;  %v3336_v1 = vmax.f32 %v3274_v2, 0.0  ;;  %v3184_v40 = vpop.permute.xlu1 %3183  ;;  %v4585_v2 = vld [vmem:[#allocation10 + $0x10] sm:$0xff]   ;;  %v4588_v16 = vld [vmem:[#allocation10 + $0x28] sm:$0xff]  }
 0x3b2   : > { %v3339_v63 = vmax.f32 %v3285_v32, 0.0  ;;  %v4587_v32 = vld [vmem:[#allocation10 + $0x20] sm:$0xff]  }
 0x3b3   : > { %v3337_v27 = vmax.f32 %v3277_v29, 0.0  ;;  %v4589_v29 = vld [vmem:[#allocation10 + $0x30] sm:$0xff]  }
 0x3b4   : > { %v3369_v46 = vpack.c.bf16 %v3339_v63, %v3338_v9  ;;  %v4590_v9 = vld [vmem:[#allocation10 + $0x38] sm:$0xff]  }
 0x3b5   : > { %v3368_v24 = vpack.c.bf16 %v3337_v27, %v3336_v1  ;;  %v4212_v13 = vpop.f32.mrb[12].mxu0  ;;  %v3395_v63 = vpop.permute.xlu1 %3394 }
 0x3b6   : > { %v3298_v47 = vadd.f32 %v4212_v13, %v3144_v61  ;;  %v3289_v17 = vpop.f32.mrb[13].mxu0 }
 0x3b7   : > { %v3290_v37 = vadd.f32 %v3289_v17, %v3134_v12  ;;  %v4213_v4 = vpop.f32.mrb[14].mxu0  ;;  %4222 = vmatprep.subr.bf16.mxu1 %v3368_v24 }
 0x3b8   : > { %v3301_v8 = vadd.f32 %v4213_v4, %v3149_v26  ;;  %v3292_v53 = vpop.f32.mrb[15].mxu0  ;;  %4223 = vmatpush3.bf16.msra.mxu1 %v3368_v24  ;;  %v3342_v62 = vmax.f32 %v3298_v47, 0.0  ;;  %v4584_v26 = vld [vmem:[#allocation10 + $0x8] sm:$0xff]  }
 0x3b9   : > { %v3293_v51 = vadd.f32 %v3292_v53, %v3139_v34  ;;  %4224 = vmatprep.subr.bf16.mxu1 %v3369_v46  ;;  %v3340_v41 = vmax.f32 %v3290_v37, 0.0 }
 0x3ba   : > { %v3343_v18 = vmax.f32 %v3301_v8, 0.0  ;;  %v3400_v8 = vpop.permute.xlu0 %3399 }
 0x3bb   : > { %v3341_v44 = vmax.f32 %v3293_v51, 0.0 }
 0x3bc   : > { %v3371_v0 = vpack.c.bf16 %v3343_v18, %v3342_v62  ;;  %4225 = vmatpush3.bf16.msra.mxu1 %v3369_v46 }
 0x3bd   : > { %v3370_v35 = vpack.c.bf16 %v3341_v44, %v3340_v41  ;;  %v4216_v31 = vpop.f32.mrb[16].mxu0 }
 0x3be   : > { %v3314_v60 = vadd.f32 %v4216_v31, %v3164_v36  ;;  %v3305_v22 = vpop.f32.mrb[17].mxu0  ;;  %v3410_v53 = vpop.permute.xlu0 %3409 }
 0x3bf   : > { %v3306_v54 = vadd.f32 %v3305_v22, %v3154_v11  ;;  %v4217_v15 = vpop.f32.mrb[18].mxu0  ;;  %4226 = vmatprep.subr.bf16.mxu1 %v3370_v35  ;;  %v3405_v11 = vpop.permute.xlu1 %3404 }
 0x3c0   : > { %v3317_v59 = vadd.f32 %v4217_v15, %v3169_v14  ;;  %v3308_v52 = vpop.f32.mrb[19].mxu0  ;;  %4227 = vmatpush3.bf16.msra.mxu1 %v3370_v35  ;;  %v3346_v21 = vmax.f32 %v3314_v60, 0.0 }
 0x3c1   : > { %v3309_v3 = vadd.f32 %v3308_v52, %v3159_v23  ;;  %4228 = vmatprep.subr.bf16.mxu1 %v3371_v0  ;;  %v3344_v25 = vmax.f32 %v3306_v54, 0.0 }
 0x3c2   : > { %v3347_v43 = vmax.f32 %v3317_v59, 0.0  ;;  %v3420_v36 = vpop.permute.xlu0 %3419 }
 0x3c3   : > { %v3345_v19 = vmax.f32 %v3309_v3, 0.0  ;;  %v3415_v1 = vpop.permute.xlu1 %3414 }
 0x3c4   : > { %v3373_v57 = vpack.c.bf16 %v3347_v43, %v3346_v21  ;;  %4229 = vmatpush3.bf16.msra.mxu1 %v3371_v0 }
 0x3c5   : > { %v3372_v58 = vpack.c.bf16 %v3345_v19, %v3344_v25  ;;  %v4220_v33 = vpop.f32.mrb[20].mxu0 }
 0x3c6   : > { %v3330_v50 = vadd.f32 %v4220_v33, %v3184_v40  ;;  %v3321_v20 = vpop.f32.mrb[21].mxu0  ;;  %v3430_v35 = vpop.permute.xlu0 %3429 }
 0x3c7   : > { %v3322_v30 = vadd.f32 %v3321_v20, %v3174_v48  ;;  %v4221_v45 = vpop.f32.mrb[22].mxu0  ;;  %4230 = vmatprep.subr.bf16.mxu1 %v3372_v58  ;;  %v3425_v27 = vpop.permute.xlu1 %3424 }
 0x3c8   : > { %v3333_v38 = vadd.f32 %v4221_v45, %v3189_v7  ;;  %v3324_v55 = vpop.f32.mrb[23].mxu0  ;;  %4231 = vmatpush3.bf16.msra.mxu1 %v3372_v58  ;;  %v3350_v39 = vmax.f32 %v3330_v50, 0.0 }
 0x3c9   : > { %v3325_v12 = vadd.f32 %v3324_v55, %v3179_v10  ;;  %4232 = vmatprep.subr.bf16.mxu1 %v3373_v57  ;;  %v3348_v61 = vmax.f32 %v3322_v30, 0.0 }
 0x3ca   : > { %v3351_v34 = vmax.f32 %v3333_v38, 0.0  ;;  %v3440_v21 = vpop.permute.xlu0 %3439 }
 0x3cb   : > { %v3349_v5 = vmax.f32 %v3325_v12, 0.0  ;;  %v3435_v46 = vpop.permute.xlu1 %3434 }
 0x3cc   : > { %v3375_v28 = vpack.c.bf16 %v3351_v34, %v3350_v39  ;;  %4233 = vmatpush3.bf16.msra.mxu1 %v3373_v57 }
 0x3cd   : > { %v3374_v6 = vpack.c.bf16 %v3349_v5, %v3348_v61 }
 0x3ce   : > { %v3450_v45 = vpop.permute.xlu0 %3449 }
 0x3cf   : > { %4234 = vmatprep.subr.bf16.mxu1 %v3374_v6  ;;  %v3445_v23 = vpop.permute.xlu1 %3444 }
 0x3d0   : > { %4235 = vmatpush3.bf16.msra.mxu1 %v3374_v6 }
 0x3d1   : > { %4236 = vmatprep.subr.bf16.mxu1 %v3375_v28 }
 0x3d3   : > { %v7092_v24 = vpop.permute.xlu1 %3454 }
 0x3d4   : > { %4237 = vmatpush3.bf16.msra.mxu1 %v3375_v28 }
 0x3d7   : > { %4239 = vmatmul.mubr.bf16.vlgmr.msra.gmra.mrb[8].mxu1 %v4584_v26  ;;  %v7094_v13 = vpop.permute.xlu1 %3464 }
 0x3d8   : > { %4242 = vmatprep.mubr.bf16.mxu1 %v4585_v2 }
 0x3df   : > { %4243 = vmatmul.mubr.bf16.gmra.mrb[12].mxu1 %v4586_v42 }
 0x3e0   : > { %4246 = vmatprep.mubr.bf16.mxu1 %v4587_v32 }
 0x3e7   : > { %4247 = vmatmul.mubr.bf16.gmra.mrb[16].mxu1 %v4588_v16  ;;  %v3460_v16 = vpop.permute.xlu0 %3459 }
 0x3e8   : > { %4250 = vmatprep.mubr.bf16.mxu1 %v4589_v29 }
 0x3ef   : > { %4251 = vmatmul.mubr.bf16.gmra.mrb[20].mxu1 %v4590_v9 }
 0x436   : > { %v3620_v47 = vpop.xlane.xlu1 %3619 }
 0x437   : > { %v3660_v17 = vmax.f32 %v3620_v47, 1e-24 }
 0x439   : > { %4655 = vrsqrt.f32 %v3660_v17 }
 0x443   : > { %v4656_v37 = vpop.eup %4655 }
 0x444   : > { %v3664_v4 = vmul.f32 %v4656_v37, %v7084_v56 }
 0x446   : > { %4286 = vmatprep.mubr.f32.mxu0 %v3664_v4 }
 0x4aa   : > { %v4240_v51 = vpop.f32.mrb[8].mxu1 }
 0x4ab   : > { %v3554_v62 = vpop.f32.mrb[9].mxu1  ;;  %v7099_v44 = vadd.f32 %v4240_v51, %v3405_v11 }
 0x4ac   : > { %v7097_v18 = vadd.f32 %v3554_v62, %v3395_v63  ;;  %v4241_v14 = vpop.f32.mrb[10].mxu1 }
 0x4ad   : > { %v3557_v41 = vpop.f32.mrb[11].mxu1  ;;  %v7105_v60 = vadd.f32 %v4241_v14, %v3410_v53  ;;  %v3625_v22 = vmul.f32 %v7099_v44, %v7099_v44  ;;  %v3470_v53 = vpop.permute.xlu0 %3469 }
 0x4ae   : > { %v7101_v0 = vadd.f32 %v3557_v41, %v3400_v8  ;;  %v3623_v31 = vmul.f32 %v7097_v18, %v7097_v18 }
 0x4af   : > { %v3626_v59 = vmul.f32 %v7105_v60, %v7105_v60 }
 0x4b0   : > { %v3624_v56 = vmul.f32 %v7101_v0, %v7101_v0 }
 0x4b2   : > { %v3639_v48 = vadd.f32 %v3624_v56, %v3623_v31  ;;  %v4244_v54 = vpop.f32.mrb[12].mxu1 }
 0x4b3   : > { %v3570_v15 = vpop.f32.mrb[13].mxu1  ;;  %v7115_v25 = vadd.f32 %v4244_v54, %v3425_v27 }
 0x4b4   : > { %v3640_v52 = vadd.f32 %v3639_v48, %v3625_v22  ;;  %v7113_v10 = vadd.f32 %v3570_v15, %v3415_v1  ;;  %v4245_v3 = vpop.f32.mrb[14].mxu1 }
 0x4b5   : > { %v3573_v43 = vpop.f32.mrb[15].mxu1  ;;  %v3582_v33 = vadd.f32 %v4245_v3, %v3430_v35  ;;  %v3629_v20 = vmul.f32 %v7115_v25, %v7115_v25 }
 0x4b6   : > { %v3627_v19 = vmul.f32 %v7113_v10, %v7113_v10  ;;  %v3641_v57 = vadd.f32 %v3640_v52, %v3626_v59  ;;  %v3574_v40 = vadd.f32 %v3573_v43, %v3420_v36 }
 0x4b7   : > { %v3630_v55 = vmul.f32 %v3582_v33, %v3582_v33 }
 0x4b8   : > { %v3642_v58 = vadd.f32 %v3641_v57, %v3627_v19  ;;  %v3628_v50 = vmul.f32 %v3574_v40, %v3574_v40 }
 0x4ba   : > { %v3643_v7 = vadd.f32 %v3642_v58, %v3628_v50  ;;  %v4248_v30 = vpop.f32.mrb[16].mxu1 }
 0x4bb   : > { %v3586_v38 = vpop.f32.mrb[17].mxu1  ;;  %v3595_v5 = vadd.f32 %v4248_v30, %v3445_v23 }
 0x4bc   : > { %v3644_v12 = vadd.f32 %v3643_v7, %v3629_v20  ;;  %v3587_v39 = vadd.f32 %v3586_v38, %v3435_v46  ;;  %v4249_v34 = vpop.f32.mrb[18].mxu1 }
 0x4bd   : > { %v3589_v61 = vpop.f32.mrb[19].mxu1  ;;  %v3598_v42 = vadd.f32 %v4249_v34, %v3450_v45  ;;  %v3633_v29 = vmul.f32 %v3595_v5, %v3595_v5 }
 0x4be   : > { %v3631_v28 = vmul.f32 %v3587_v39, %v3587_v39  ;;  %v3645_v6 = vadd.f32 %v3644_v12, %v3630_v55  ;;  %v3590_v26 = vadd.f32 %v3589_v61, %v3440_v21 }
 0x4bf   : > { %v3634_v1 = vmul.f32 %v3598_v42, %v3598_v42 }
 0x4c0   : > { %v3646_v2 = vadd.f32 %v3645_v6, %v3631_v28  ;;  %v3632_v32 = vmul.f32 %v3590_v26, %v3590_v26 }
 0x4c2   : > { %v3647_v9 = vadd.f32 %v3646_v2, %v3632_v32  ;;  %v4252_v63 = vpop.f32.mrb[20].mxu1 }
 0x4c3   : > { %v3602_v11 = vpop.f32.mrb[21].mxu1  ;;  %v3611_v37 = vadd.f32 %v4252_v63, %v7094_v13 }
 0x4c4   : > { %v3648_v27 = vadd.f32 %v3647_v9, %v3633_v29  ;;  %v3603_v47 = vadd.f32 %v3602_v11, %v7092_v24  ;;  %v4253_v17 = vpop.f32.mrb[22].mxu1 }
 0x4c5   : > { %v3605_v46 = vpop.f32.mrb[23].mxu1  ;;  %v3614_v51 = vadd.f32 %v4253_v17, %v3470_v53  ;;  %v3637_v14 = vmul.f32 %v3611_v37, %v3611_v37 }
 0x4c6   : > { %v3635_v23 = vmul.f32 %v3603_v47, %v3603_v47  ;;  %v3649_v4 = vadd.f32 %v3648_v27, %v3634_v1  ;;  %v3606_v8 = vadd.f32 %v3605_v46, %v3460_v16 }
 0x4c7   : > { %v3638_v35 = vmul.f32 %v3614_v51, %v3614_v51 }
 0x4c8   : > { %v3650_v36 = vadd.f32 %v3649_v4, %v3635_v23  ;;  %v3636_v62 = vmul.f32 %v3606_v8, %v3606_v8 }
 0x4ca   : > { %v3651_v41 = vadd.f32 %v3650_v36, %v3636_v62 }
 0x4cc   : > { %v3652_v31 = vadd.f32 %v3651_v41, %v3637_v14 }
 0x4ce   : > { %v3653_v56 = vadd.f32 %v3652_v31, %v3638_v35 }
 0x4d0   : > { %v3654_v22 = vrot.slane %v3653_v56, 4 }
 0x4d2   : > { %v3655_v48 = vadd.f32 %v3654_v22, %v3653_v56 }
 0x4d4   : > { %v3656_v54 = vrot.slane %v3655_v48, 2 }
 0x4d6   : > { %v3657_v24 = vadd.f32 %v3656_v54, %v3655_v48 }
 0x4d8   : > { %v3658_v15 = vrot.slane %v3657_v24, 1 }
 0x4da   : > { %v3659_v59 = vadd.f32 %v3658_v15, %v3657_v24 }
 0x4dc   : > { %v3666_v52 = vmax.f32 %v3659_v59, 1e-24 }
 0x4de   : > { %4657 = vrsqrt.f32 %v3666_v52 }
 0x4e8   : > { %v4658_v13 = vpop.eup %4657 }
 0x4e9   : > { %v3681_v3 = vmul.f32 %v4658_v13, %v3606_v8  ;;  %v3668_v21 = vmul.f32 %v4658_v13, %v7097_v18  ;;  %v3669_v43 = vmul.f32 %v4658_v13, %v7101_v0  ;;  %v3670_v19 = vmul.f32 %v4658_v13, %v7099_v44 }
 0x4ea   : > { %v3671_v57 = vmul.f32 %v4658_v13, %v7105_v60  ;;  %v3672_v58 = vmul.f32 %v4658_v13, %v7113_v10  ;;  %v3673_v50 = vmul.f32 %v4658_v13, %v3574_v40  ;;  %v3674_v20 = vmul.f32 %v4658_v13, %v7115_v25  ;;  %v3622_v25 = vpop.xlane.xlu0 %3621 }
 0x4eb   : > { %v4289_v7 = vpack.c.bf16 %v3669_v43, %v3668_v21  ;;  %v3675_v30 = vmul.f32 %v4658_v13, %v3582_v33  ;;  %v3676_v45 = vmul.f32 %v4658_v13, %v3587_v39  ;;  %v3677_v38 = vmul.f32 %v4658_v13, %v3590_v26 }
 0x4ec   : > { %v4293_v55 = vpack.c.bf16 %v3671_v57, %v3670_v19  ;;  %v4297_v12 = vpack.c.bf16 %v3673_v50, %v3672_v58  ;;  %v3678_v34 = vmul.f32 %v4658_v13, %v3595_v5  ;;  %v3679_v61 = vmul.f32 %v4658_v13, %v3598_v42 }
 0x4ed   : > { %4290 = vmatprep.subr.bf16.mxu0 %v4289_v7  ;;  %v4301_v18 = vpack.c.bf16 %v3675_v30, %v3674_v20  ;;  %v4305_v0 = vpack.c.bf16 %v3677_v38, %v3676_v45  ;;  %v3680_v28 = vmul.f32 %v4658_v13, %v3603_v47  ;;  %v3682_v44 = vmul.f32 %v4658_v13, %v3611_v37 }
 0x4ee   : > { %4292 = vmatpush3.bf16.msra.mxu0 %v4289_v7  ;;  %v4309_v60 = vpack.c.bf16 %v3679_v61, %v3678_v34  ;;  %v3683_v6 = vmul.f32 %v4658_v13, %v3614_v51  ;;  %v3661_v33 = vmax.f32 %v3622_v25, 1e-24  ;;  %v3760_v26 = vstv %s3759_s15 }
 0x4ef   : > { %4294 = vmatprep.subr.bf16.mxu0 %v4293_v55  ;;  %v4313_v10 = vpack.c.bf16 %v3681_v3, %v3680_v28 }
 0x4f0   : > { %v4317_v40 = vpack.c.bf16 %v3683_v6, %v3682_v44  ;;  %4659 = vrsqrt.f32 %v3661_v33 }
 0x4f2   : > { %4296 = vmatpush3.bf16.msra.mxu0 %v4293_v55 }
 0x4f3   : > { %4298 = vmatprep.subr.bf16.mxu0 %v4297_v12 }
 0x4f6   : > { %4300 = vmatpush3.bf16.msra.mxu0 %v4297_v12 }
 0x4f7   : > { %4302 = vmatprep.subr.bf16.mxu0 %v4301_v18 }
 0x4fa   : > { %4304 = vmatpush3.bf16.msra.mxu0 %v4301_v18  ;;  %v4660_v39 = vpop.eup %4659 }
 0x4fb   : > { %4306 = vmatprep.subr.bf16.mxu0 %v4305_v0  ;;  %v3665_v5 = vmul.f32 %v4660_v39, %v7086_v49 }
 0x4fe   : > { %4308 = vmatpush3.bf16.msra.mxu0 %v4305_v0 }
 0x4ff   : > { %4310 = vmatprep.subr.bf16.mxu0 %v4309_v60 }
 0x502   : > { %4312 = vmatpush3.bf16.msra.mxu0 %v4309_v60 }
 0x503   : > { %4314 = vmatprep.subr.bf16.mxu0 %v4313_v10 }
 0x506   : > { %4316 = vmatpush3.bf16.msra.mxu0 %v4313_v10 }
 0x507   : > { %4318 = vmatprep.subr.bf16.mxu0 %v4317_v40 }
 0x50a   : > { %4320 = vmatpush3.bf16.msra.mxu0 %v4317_v40 }
 0x50d   : > { %4287 = vmatmul.mubr.f32.vlgmr.msra.gmra.mrb[24].mxu0 %v3665_v5 }
 0x5e0   : > { %v4288_v2 = vpop.f32.mrb[24].mxu0 }
 0x5e1   : > { %v3762_v42 = vmul.f32 %v4288_v2, %v3760_v26  ;;  %v3750_v32 = vpop.f32.mrb[25].mxu0 }
 0x5e2   : > { %v3761_v49 = vmul.f32 %v3760_v26, %v3750_v32 }
 0x5e3   : > { %3764 = vst [vmem:[%s438_s16 + $0x8] sm:$0xff] %v3762_v42 }
 0x5e4   : > { %3763 = vst [vmem:[%s438_s16] sm:$0xff] %v3761_v49 }
 0x5e5   : > { %4790 = shalt.err (!%p4787_p0)
}
 0x5e6   : > { %s4791_s22 = scalar_lea.hbm %s7137_s27, 256  ;;  %s4795_s21 = scalar_lea.hbm %s7192_s12, 512 }
 0x5e7   : > { %p4792_p6 = scmp.ne.s32.totalorder %s7137_s27, %s4791_s22  ;;  %p4796_p13 = scmp.lt.u32.totalorder %s7137_s27, %s7192_s12 }
 0x5e8   : > { %p4797_p12 = scmp.lt.u32.totalorder %s4795_s21, %s4791_s22  ;;  %p4799_p2 = scmp.lt.u32.totalorder %s4791_s22, %s7137_s27 }
 0x5e9   : > { %p4793_p9 = pnand %p4792_p6, %p7472_p3 }
 0x5ea   : > { %p4798_p1 = por %p4797_p12, %p4796_p13 }
 0x5eb   : > { %p4794_p10 = pneg %p4793_p9 }
 0x5ec   : > { %p4800_p4 = por %p4799_p2, %p4798_p1 }
 0x5ee   : > { %p4801_p7 = pnand %p4800_p4, %p4794_p10 }
 0x5f0   : > { %4804 = shalt.err (!%p4801_p7)
}
 0x5f1   : > { %s4873_s23 = smov 128   ;;  %s4874_s16 = smov 256  }
 0x5f2   : > { %s4875_s17 = smov 8  }
 0x5f3   : > { %4401 = dma.vmem_to_hbm [thread:$0]  (%p7472_p3), %s7132_s19, 256, %s7137_s27, %s7139_s13, %s4873_s23, %s4874_s16, %s4875_s17  }
 0x5f4 PF: > { %s7473_s20 = sld [smem:[#allocation19_spill]]  ;;  %s7474_s4 = sld [smem:[#allocation17_spill]] }
 0x5f5   : > { %s7475_s28 = sld [smem:[#allocation22_spill]] }
 0x5fa   : > { %p4428_p8 = scmp.ge.s32.totalorder %s7473_s20, 2  ;;  %s3793_s0 = sand.u32 1, %s7474_s4  }
 0x5fb   : > { %p7476_p11 = scmp.ne.s32.totalorder %s7475_s28, 0  ;;  %s3794_s25 = scalar_lea.sflag [#allocation6], %s3793_s0 }
 0x5fd   : > { %p4417_p5 = pnand %p4428_p8, %p7476_p11 }
 0x5ff   : > { %4834 = dma.done.wait (!%p4417_p5), %s3794_s25, 256  }
 0x600   : > { %4836 = vsyncadd (!%p4417_p5), %s3794_s25, 4294967040  ;;  %s7477_s26 = sld [smem:[#allocation20_spill]]  ;;  %s7478_s30 = sld [smem:[#allocation18_spill]] }
 0x601   : > { %s7479_s25 = sld [smem:[#allocation21_spill]]  ;;  %s7480_s23 = smov %s4843_s24 }
 0x606   : > { %p26_p0 = scmp.ge.s32.totalorder %s7477_s26, 4   ;;  %s7481_s24 = smov %s7478_s30 }
 0x608   :  { %28 = sbr.rel (!%p26_p0) target bundleno = 9 (0x9), region = 116 }
 0x60f   :  { %3799 = vsyncpa [#allocation5], 1 }
 0x610   :  { %3801 = vsyncpa [#allocation5 + $0x1], 1 }
 0x611   :  { %3802 = vsyncpa [#allocation8], 1 }
 0x612   :  { %3803 = vsyncpa [#allocation11], 1 }
 0x613   :  { %3804 = vsyncpa [#allocation6], 1 }
 0x614   :  { %3806 = vsyncpa [#allocation6 + $0x1], 1 }

</bundles_post_ra>
